<compile_context>
chip_gen: v7x
topology: tpu7x:2x2x1
jax: 0.10.0
libtpu: 0.0.40
codegen_flags: <defaults>
</compile_context>

<pallas_src>
import functools

import jax
import jax.numpy as jnp
import numpy as np
from jax import lax
from jax.experimental import pallas as pl
from jax.experimental.pallas import tpu as pltpu


def _pick_batch_block(n, hw, target_m=256):
    """Largest divisor of n with B_blk*hw <= target_m, preferring >=2 grid steps."""
    divisors = [d for d in range(1, n + 1) if n % d == 0]
    fits = [d for d in divisors if d * hw <= target_m] or [1]
    two_steps = [d for d in fits if n // d >= 2]
    return max(two_steps) if two_steps else max(fits)


def _make_resblock_kernel(B, H, W, C, ksize, pad):
    KH = KW = ksize
    Hp, Wp = H + 2 * pad, W + 2 * pad
    M = B * H * W  # boards folded into the matmul M dimension

    def kernel(xpad_ref, w1_ref, w2_ref, st_ref, out_ref, hpad_ref):
        # xpad_ref: (B, Hp, Wp, C) f32  -- spatially padded boards (real C, no lane pad)
        # w1_ref/w2_ref: (KH*KW, C, C) bf16 -- per-tap weight matrices
        # st_ref: (4, C) f32            -- [scale1; shift1; scale2; shift2]
        # out_ref: (B, H, W, C) f32
        # hpad_ref: (B, Hp, Wp, C) bf16 -- zero-bordered scratch for conv2 input
        x = xpad_ref[...]                       # f32, residual source
        xb = x.astype(jnp.bfloat16)             # bf16 once, before tap extraction

        def conv(src, w_taps):
            """src: (B, Hp, Wp, C) array or ref; w_taps: (KH*KW, C, C) bf16 array."""
            acc = jnp.zeros((M, C), jnp.float32)
            for kh in range(KH):
                for kw in range(KW):
                    tap = src[:, kh:kh + H, kw:kw + W, :].reshape(M, C)
                    acc = acc + jnp.dot(tap, w_taps[kh * KW + kw],
                                        preferred_element_type=jnp.float32)
            return acc

        # ---- conv1 + folded BN1 + ReLU -------------------------------------
        w1 = w1_ref[...]
        h = conv(xb, w1)
        h = jnp.maximum(h * st_ref[0:1, :] + st_ref[1:2, :], 0.0)

        # ---- stage conv2 input in a zero-bordered VMEM scratch --------------
        # (zeroed every step -> no cross-step state, safe under "parallel")
        hpad_ref[...] = jnp.zeros_like(hpad_ref)
        hpad_ref[:, pad:pad + H, pad:pad + W, :] = (
            h.astype(jnp.bfloat16).reshape(B, H, W, C))

        # ---- conv2 + folded BN2 ---------------------------------------------
        w2 = w2_ref[...]
        g = conv(hpad_ref, w2)
        g = g * st_ref[2:3, :] + st_ref[3:4, :]

        # ---- residual add (f32) + ReLU; eval-mode dropout = identity --------
        xc = x[:, pad:pad + H, pad:pad + W, :].reshape(M, C)
        res = jnp.maximum(xc + g, 0.0)
        out_ref[...] = res.reshape(B, H, W, C).astype(out_ref.dtype)

    return kernel


def resblock_pallas(x_nchw, params, *, kernel_size, padding):
    """x_nchw: (N, C, H, W) float32.  Returns (N, C, H, W) float32."""
    N, C, H, W = x_nchw.shape
    KH = KW = kernel_size
    assert H + 2 * padding - KH + 1 == H, "residual add requires 'same' convolution"
    Hp, Wp = H + 2 * padding, W + 2 * padding

    B_blk = _pick_batch_block(N, H * W)
    grid = (N // B_blk,)

    # --- fold conv bias + eval-mode BatchNorm into per-channel scale/shift ---
    eps = 1e-5
    s1 = params["gamma1"] / jnp.sqrt(params["var1"] + eps)
    t1 = params["beta1"] + s1 * (params["b1"] - params["mean1"])
    s2 = params["gamma2"] / jnp.sqrt(params["var2"] + eps)
    t2 = params["beta2"] + s2 * (params["b2"] - params["mean2"])
    st = jnp.stack([s1, t1, s2, t2], axis=0).astype(jnp.float32)   # (4, C)

    # --- weights OIHW -> (KH*KW, Cin, Cout) bf16 (real channels, no padding) --
    def prep_w(w):
        w = jnp.transpose(w, (2, 3, 1, 0))          # (KH, KW, Cin, Cout)
        return w.reshape(KH * KW, C, C).astype(jnp.bfloat16)

    w1 = prep_w(params["w1"])
    w2 = prep_w(params["w2"])

    # --- NCHW -> NHWC, zero-pad spatial dims only ------------------------------
    x_nhwc = jnp.transpose(x_nchw, (0, 2, 3, 1))
    x_pad = jnp.pad(x_nhwc, ((0, 0), (padding, padding),
                             (padding, padding), (0, 0)))

    kernel = _make_resblock_kernel(B_blk, H, W, C, kernel_size, padding)

    out = pl.pallas_call(
        kernel,
        out_shape=jax.ShapeDtypeStruct((N, H, W, C), jnp.float32),
        grid=grid,
        in_specs=[
            pl.BlockSpec((B_blk, Hp, Wp, C), lambda b: (b, 0, 0, 0)),
            pl.BlockSpec((KH * KW, C, C), lambda b: (0, 0, 0)),
            pl.BlockSpec((KH * KW, C, C), lambda b: (0, 0, 0)),
            pl.BlockSpec((4, C), lambda b: (0, 0)),
        ],
        out_specs=pl.BlockSpec((B_blk, H, W, C), lambda b: (b, 0, 0, 0)),
        scratch_shapes=[pltpu.VMEM((B_blk, Hp, Wp, C), jnp.bfloat16)],
        compiler_params=pltpu.CompilerParams(
            dimension_semantics=("parallel",)),
    )(x_pad, w1, w2, st)

    return jnp.transpose(out, (0, 3, 1, 2))     # NHWC -> NCHW


def resblock_reference(x, p, *, kernel_size, padding):
    """Pure-JAX reference with the same eval-mode semantics (f32 throughout)."""
    eps = 1e-5
    dn = ("NCHW", "OIHW", "NCHW")
    pads = [(padding, padding), (padding, padding)]

    h = lax.conv_general_dilated(x, p["w1"], (1, 1), pads,
                                 dimension_numbers=dn)
    h = h + p["b1"][None, :, None, None]
    h = (h - p["mean1"][None, :, None, None]) / jnp.sqrt(
        p["var1"][None, :, None, None] + eps)
    h = h * p["gamma1"][None, :, None, None] + p["beta1"][None, :, None, None]
    h = jnp.maximum(h, 0.0)

    g = lax.conv_general_dilated(h, p["w2"], (1, 1), pads,
                                 dimension_numbers=dn)
    g = g + p["b2"][None, :, None, None]
    g = (g - p["mean2"][None, :, None, None]) / jnp.sqrt(
        p["var2"][None, :, None, None] + eps)
    g = g * p["gamma2"][None, :, None, None] + p["beta2"][None, :, None, None]

    return jnp.maximum(x + g, 0.0)


if __name__ == "__main__":
    # Small Connect-4-ish shapes: batch=2, hidden=8 channels, 6x7 board.
    N, C, H, W = 2, 8, 6, 7
    kernel_size, padding = 3, 1  # params['kernel_size'], params['padding']
    # params['dropout'] only matters in training; eval-mode dropout = identity.

    key = jax.random.PRNGKey(0)
    ks = jax.random.split(key, 10)
    params = {
        "w1": 0.1 * jax.random.normal(ks[0], (C, C, kernel_size, kernel_size),
                                      jnp.float32),
        "b1": 0.1 * jax.random.normal(ks[1], (C,), jnp.float32),
        "gamma1": 1.0 + 0.1 * jax.random.normal(ks[2], (C,), jnp.float32),
        "beta1": 0.1 * jax.random.normal(ks[3], (C,), jnp.float32),
        "mean1": 0.05 * jax.random.normal(ks[4], (C,), jnp.float32),
        "var1": 1.0 + 0.1 * jnp.abs(jax.random.normal(ks[5], (C,),
                                                      jnp.float32)),
        "w2": 0.1 * jax.random.normal(ks[6], (C, C, kernel_size, kernel_size),
                                      jnp.float32),
        "b2": 0.1 * jax.random.normal(ks[7], (C,), jnp.float32),
        "gamma2": 1.0 + 0.1 * jax.random.normal(ks[8], (C,), jnp.float32),
        "beta2": 0.1 * jax.random.normal(ks[9], (C,), jnp.float32),
        "mean2": jnp.zeros((C,), jnp.float32),
        "var2": jnp.ones((C,), jnp.float32),
    }

    x = jax.random.normal(jax.random.PRNGKey(42), (N, C, H, W), jnp.float32)

    run = functools.partial(resblock_pallas, kernel_size=kernel_size,
                            padding=padding)
    out = jax.block_until_ready(jax.jit(run)(x, params))

    ref = jax.block_until_ready(
        resblock_reference(x, params, kernel_size=kernel_size,
                           padding=padding))

    # bf16 MXU operands with f32 accumulation (residual stays f32) -> relaxed
    # tolerance vs the f32 reference.
    np.testing.assert_allclose(np.asarray(out), np.asarray(ref),
                               rtol=2e-2, atol=2e-2)
    print("KERNEL_OK")
</pallas_src>

<mosaic_0001>
module attributes {stable_mosaic.version = 11 : i64} {
  func.func @kernel(%arg0: i32, %arg1: memref<1x8x9x8xf32, #tpu.memory_space<vmem>>, %arg2: memref<9x8x8xbf16, #tpu.memory_space<vmem>>, %arg3: memref<9x8x8xbf16, #tpu.memory_space<vmem>>, %arg4: memref<4x8xf32, #tpu.memory_space<vmem>>, %arg5: memref<1x6x7x8xf32, #tpu.memory_space<vmem>>, %arg6: memref<1x8x9x8xbf16, #tpu.memory_space<vmem>>) attributes {dimension_semantics = [#tpu.dimension_semantics<parallel>], iteration_bounds = array<i64: 2>, scalar_prefetch = 0 : i64, scratch_operands = 1 : i64, tpu.core_type = #tpu.core_type<tc>, window_params = [{transform_indices = @transform_0, window_bounds = array<i64: 1, 8, 9, 8>}, {pipeline_mode = #tpu.pipeline_mode<synchronous>, transform_indices = @transform_1, window_bounds = array<i64: 9, 8, 8>}, {pipeline_mode = #tpu.pipeline_mode<synchronous>, transform_indices = @transform_2, window_bounds = array<i64: 9, 8, 8>}, {pipeline_mode = #tpu.pipeline_mode<synchronous>, transform_indices = @transform_3, window_bounds = array<i64: 4, 8>}, {transform_indices = @transform_4, window_bounds = array<i64: 1, 6, 7, 8>}]} {
    %c0 = arith.constant 0 : index
    %c0_0 = arith.constant 0 : index
    %c0_1 = arith.constant 0 : index
    %c0_2 = arith.constant 0 : index
    %0 = vector.load %arg1[%c0, %c0_0, %c0_1, %c0_2] : memref<1x8x9x8xf32, #tpu.memory_space<vmem>>, vector<1x8x9x8xf32>
    %1 = arith.truncf %0 : vector<1x8x9x8xf32> to vector<1x8x9x8xbf16>
    %c0_3 = arith.constant 0 : index
    %c0_4 = arith.constant 0 : index
    %c0_5 = arith.constant 0 : index
    %2 = vector.load %arg2[%c0_3, %c0_4, %c0_5] : memref<9x8x8xbf16, #tpu.memory_space<vmem>>, vector<9x8x8xbf16>
    %cst = arith.constant 0.000000e+00 : f32
    %3 = vector.broadcast %cst : f32 to vector<42x8xf32>
    %4 = vector.extract_strided_slice %1 {offsets = [0, 0, 0, 0], sizes = [1, 6, 7, 8], strides = [1, 1, 1, 1]} : vector<1x8x9x8xbf16> to vector<1x6x7x8xbf16>
    %5 = vector.shape_cast %4 : vector<1x6x7x8xbf16> to vector<42x8xbf16>
    %6 = vector.extract_strided_slice %2 {offsets = [0, 0, 0], sizes = [1, 8, 8], strides = [1, 1, 1]} : vector<9x8x8xbf16> to vector<1x8x8xbf16>
    %7 = vector.shape_cast %6 : vector<1x8x8xbf16> to vector<8x8xbf16>
    %cst_6 = arith.constant dense<0.000000e+00> : vector<42x8xf32>
    %8 = tpu.matmul %5, %7, %cst_6 {dimension_numbers = #tpu.dot_dimension_numbers<[1], [0], [0], [1], [0, 0, 1, 1], [], []>} : vector<42x8xbf16>, vector<8x8xbf16>, vector<42x8xf32> -> vector<42x8xf32>
    %9 = arith.addf %3, %8 : vector<42x8xf32>
    %10 = vector.extract_strided_slice %1 {offsets = [0, 0, 1, 0], sizes = [1, 6, 7, 8], strides = [1, 1, 1, 1]} : vector<1x8x9x8xbf16> to vector<1x6x7x8xbf16>
    %11 = vector.shape_cast %10 : vector<1x6x7x8xbf16> to vector<42x8xbf16>
    %12 = vector.extract_strided_slice %2 {offsets = [1, 0, 0], sizes = [1, 8, 8], strides = [1, 1, 1]} : vector<9x8x8xbf16> to vector<1x8x8xbf16>
    %13 = vector.shape_cast %12 : vector<1x8x8xbf16> to vector<8x8xbf16>
    %cst_7 = arith.constant dense<0.000000e+00> : vector<42x8xf32>
    %14 = tpu.matmul %11, %13, %cst_7 {dimension_numbers = #tpu.dot_dimension_numbers<[1], [0], [0], [1], [0, 0, 1, 1], [], []>} : vector<42x8xbf16>, vector<8x8xbf16>, vector<42x8xf32> -> vector<42x8xf32>
    %15 = arith.addf %9, %14 : vector<42x8xf32>
    %16 = vector.extract_strided_slice %1 {offsets = [0, 0, 2, 0], sizes = [1, 6, 7, 8], strides = [1, 1, 1, 1]} : vector<1x8x9x8xbf16> to vector<1x6x7x8xbf16>
    %17 = vector.shape_cast %16 : vector<1x6x7x8xbf16> to vector<42x8xbf16>
    %18 = vector.extract_strided_slice %2 {offsets = [2, 0, 0], sizes = [1, 8, 8], strides = [1, 1, 1]} : vector<9x8x8xbf16> to vector<1x8x8xbf16>
    %19 = vector.shape_cast %18 : vector<1x8x8xbf16> to vector<8x8xbf16>
    %cst_8 = arith.constant dense<0.000000e+00> : vector<42x8xf32>
    %20 = tpu.matmul %17, %19, %cst_8 {dimension_numbers = #tpu.dot_dimension_numbers<[1], [0], [0], [1], [0, 0, 1, 1], [], []>} : vector<42x8xbf16>, vector<8x8xbf16>, vector<42x8xf32> -> vector<42x8xf32>
    %21 = arith.addf %15, %20 : vector<42x8xf32>
    %22 = vector.extract_strided_slice %1 {offsets = [0, 1, 0, 0], sizes = [1, 6, 7, 8], strides = [1, 1, 1, 1]} : vector<1x8x9x8xbf16> to vector<1x6x7x8xbf16>
    %23 = vector.shape_cast %22 : vector<1x6x7x8xbf16> to vector<42x8xbf16>
    %24 = vector.extract_strided_slice %2 {offsets = [3, 0, 0], sizes = [1, 8, 8], strides = [1, 1, 1]} : vector<9x8x8xbf16> to vector<1x8x8xbf16>
    %25 = vector.shape_cast %24 : vector<1x8x8xbf16> to vector<8x8xbf16>
    %cst_9 = arith.constant dense<0.000000e+00> : vector<42x8xf32>
    %26 = tpu.matmul %23, %25, %cst_9 {dimension_numbers = #tpu.dot_dimension_numbers<[1], [0], [0], [1], [0, 0, 1, 1], [], []>} : vector<42x8xbf16>, vector<8x8xbf16>, vector<42x8xf32> -> vector<42x8xf32>
    %27 = arith.addf %21, %26 : vector<42x8xf32>
    %28 = vector.extract_strided_slice %1 {offsets = [0, 1, 1, 0], sizes = [1, 6, 7, 8], strides = [1, 1, 1, 1]} : vector<1x8x9x8xbf16> to vector<1x6x7x8xbf16>
    %29 = vector.shape_cast %28 : vector<1x6x7x8xbf16> to vector<42x8xbf16>
    %30 = vector.extract_strided_slice %2 {offsets = [4, 0, 0], sizes = [1, 8, 8], strides = [1, 1, 1]} : vector<9x8x8xbf16> to vector<1x8x8xbf16>
    %31 = vector.shape_cast %30 : vector<1x8x8xbf16> to vector<8x8xbf16>
    %cst_10 = arith.constant dense<0.000000e+00> : vector<42x8xf32>
    %32 = tpu.matmul %29, %31, %cst_10 {dimension_numbers = #tpu.dot_dimension_numbers<[1], [0], [0], [1], [0, 0, 1, 1], [], []>} : vector<42x8xbf16>, vector<8x8xbf16>, vector<42x8xf32> -> vector<42x8xf32>
    %33 = arith.addf %27, %32 : vector<42x8xf32>
    %34 = vector.extract_strided_slice %1 {offsets = [0, 1, 2, 0], sizes = [1, 6, 7, 8], strides = [1, 1, 1, 1]} : vector<1x8x9x8xbf16> to vector<1x6x7x8xbf16>
    %35 = vector.shape_cast %34 : vector<1x6x7x8xbf16> to vector<42x8xbf16>
    %36 = vector.extract_strided_slice %2 {offsets = [5, 0, 0], sizes = [1, 8, 8], strides = [1, 1, 1]} : vector<9x8x8xbf16> to vector<1x8x8xbf16>
    %37 = vector.shape_cast %36 : vector<1x8x8xbf16> to vector<8x8xbf16>
    %cst_11 = arith.constant dense<0.000000e+00> : vector<42x8xf32>
    %38 = tpu.matmul %35, %37, %cst_11 {dimension_numbers = #tpu.dot_dimension_numbers<[1], [0], [0], [1], [0, 0, 1, 1], [], []>} : vector<42x8xbf16>, vector<8x8xbf16>, vector<42x8xf32> -> vector<42x8xf32>
    %39 = arith.addf %33, %38 : vector<42x8xf32>
    %40 = vector.extract_strided_slice %1 {offsets = [0, 2, 0, 0], sizes = [1, 6, 7, 8], strides = [1, 1, 1, 1]} : vector<1x8x9x8xbf16> to vector<1x6x7x8xbf16>
    %41 = vector.shape_cast %40 : vector<1x6x7x8xbf16> to vector<42x8xbf16>
    %42 = vector.extract_strided_slice %2 {offsets = [6, 0, 0], sizes = [1, 8, 8], strides = [1, 1, 1]} : vector<9x8x8xbf16> to vector<1x8x8xbf16>
    %43 = vector.shape_cast %42 : vector<1x8x8xbf16> to vector<8x8xbf16>
    %cst_12 = arith.constant dense<0.000000e+00> : vector<42x8xf32>
    %44 = tpu.matmul %41, %43, %cst_12 {dimension_numbers = #tpu.dot_dimension_numbers<[1], [0], [0], [1], [0, 0, 1, 1], [], []>} : vector<42x8xbf16>, vector<8x8xbf16>, vector<42x8xf32> -> vector<42x8xf32>
    %45 = arith.addf %39, %44 : vector<42x8xf32>
    %46 = vector.extract_strided_slice %1 {offsets = [0, 2, 1, 0], sizes = [1, 6, 7, 8], strides = [1, 1, 1, 1]} : vector<1x8x9x8xbf16> to vector<1x6x7x8xbf16>
    %47 = vector.shape_cast %46 : vector<1x6x7x8xbf16> to vector<42x8xbf16>
    %48 = vector.extract_strided_slice %2 {offsets = [7, 0, 0], sizes = [1, 8, 8], strides = [1, 1, 1]} : vector<9x8x8xbf16> to vector<1x8x8xbf16>
    %49 = vector.shape_cast %48 : vector<1x8x8xbf16> to vector<8x8xbf16>
    %cst_13 = arith.constant dense<0.000000e+00> : vector<42x8xf32>
    %50 = tpu.matmul %47, %49, %cst_13 {dimension_numbers = #tpu.dot_dimension_numbers<[1], [0], [0], [1], [0, 0, 1, 1], [], []>} : vector<42x8xbf16>, vector<8x8xbf16>, vector<42x8xf32> -> vector<42x8xf32>
    %51 = arith.addf %45, %50 : vector<42x8xf32>
    %52 = vector.extract_strided_slice %1 {offsets = [0, 2, 2, 0], sizes = [1, 6, 7, 8], strides = [1, 1, 1, 1]} : vector<1x8x9x8xbf16> to vector<1x6x7x8xbf16>
    %53 = vector.shape_cast %52 : vector<1x6x7x8xbf16> to vector<42x8xbf16>
    %54 = vector.extract_strided_slice %2 {offsets = [8, 0, 0], sizes = [1, 8, 8], strides = [1, 1, 1]} : vector<9x8x8xbf16> to vector<1x8x8xbf16>
    %55 = vector.shape_cast %54 : vector<1x8x8xbf16> to vector<8x8xbf16>
    %cst_14 = arith.constant dense<0.000000e+00> : vector<42x8xf32>
    %56 = tpu.matmul %53, %55, %cst_14 {dimension_numbers = #tpu.dot_dimension_numbers<[1], [0], [0], [1], [0, 0, 1, 1], [], []>} : vector<42x8xbf16>, vector<8x8xbf16>, vector<42x8xf32> -> vector<42x8xf32>
    %57 = arith.addf %51, %56 : vector<42x8xf32>
    %c0_15 = arith.constant 0 : index
    %c0_16 = arith.constant 0 : index
    %58 = vector.load %arg4[%c0_15, %c0_16] : memref<4x8xf32, #tpu.memory_space<vmem>>, vector<1x8xf32>
    %59 = vector.broadcast %58 : vector<1x8xf32> to vector<42x8xf32>
    %60 = arith.mulf %57, %59 : vector<42x8xf32>
    %c1 = arith.constant 1 : index
    %c0_17 = arith.constant 0 : index
    %61 = vector.load %arg4[%c1, %c0_17] : memref<4x8xf32, #tpu.memory_space<vmem>>, vector<1x8xf32>
    %62 = vector.broadcast %61 : vector<1x8xf32> to vector<42x8xf32>
    %63 = arith.addf %60, %62 : vector<42x8xf32>
    %cst_18 = arith.constant 0.000000e+00 : f32
    %64 = vector.broadcast %cst_18 : f32 to vector<42x8xf32>
    %65 = arith.maximumf %63, %64 : vector<42x8xf32>
    %cst_19 = arith.constant 0.000000e+00 : bf16
    %66 = vector.broadcast %cst_19 : bf16 to vector<1x8x9x8xbf16>
    %c0_20 = arith.constant 0 : index
    %c0_21 = arith.constant 0 : index
    %c0_22 = arith.constant 0 : index
    %c0_23 = arith.constant 0 : index
    %67 = vector.load %arg6[%c0_20, %c0_21, %c0_22, %c0_23] : memref<1x8x9x8xbf16, #tpu.memory_space<vmem>>, vector<1x8x9x8xbf16>
    tpu.vector_store %arg6[%c0_20, %c0_21, %c0_22, %c0_23], %66 {strides = array<i32>} : memref<1x8x9x8xbf16, #tpu.memory_space<vmem>>, vector<1x8x9x8xbf16>,
    %68 = arith.truncf %65 : vector<42x8xf32> to vector<42x8xbf16>
    %69 = vector.shape_cast %68 : vector<42x8xbf16> to vector<1x6x7x8xbf16>
    %c0_24 = arith.constant 0 : index
    %c1_25 = arith.constant 1 : index
    %c1_26 = arith.constant 1 : index
    %c0_27 = arith.constant 0 : index
    %70 = vector.load %arg6[%c0_24, %c1_25, %c1_26, %c0_27] : memref<1x8x9x8xbf16, #tpu.memory_space<vmem>>, vector<1x6x7x8xbf16>
    tpu.vector_store %arg6[%c0_24, %c1_25, %c1_26, %c0_27], %69 {strides = array<i32>} : memref<1x8x9x8xbf16, #tpu.memory_space<vmem>>, vector<1x6x7x8xbf16>,
    %c0_28 = arith.constant 0 : index
    %c0_29 = arith.constant 0 : index
    %c0_30 = arith.constant 0 : index
    %71 = vector.load %arg3[%c0_28, %c0_29, %c0_30] : memref<9x8x8xbf16, #tpu.memory_space<vmem>>, vector<9x8x8xbf16>
    %cst_31 = arith.constant 0.000000e+00 : f32
    %72 = vector.broadcast %cst_31 : f32 to vector<42x8xf32>
    %c0_32 = arith.constant 0 : index
    %c0_33 = arith.constant 0 : index
    %c0_34 = arith.constant 0 : index
    %c0_35 = arith.constant 0 : index
    %73 = vector.load %arg6[%c0_32, %c0_33, %c0_34, %c0_35] : memref<1x8x9x8xbf16, #tpu.memory_space<vmem>>, vector<1x6x7x8xbf16>
    %74 = vector.shape_cast %73 : vector<1x6x7x8xbf16> to vector<42x8xbf16>
    %75 = vector.extract_strided_slice %71 {offsets = [0, 0, 0], sizes = [1, 8, 8], strides = [1, 1, 1]} : vector<9x8x8xbf16> to vector<1x8x8xbf16>
    %76 = vector.shape_cast %75 : vector<1x8x8xbf16> to vector<8x8xbf16>
    %cst_36 = arith.constant dense<0.000000e+00> : vector<42x8xf32>
    %77 = tpu.matmul %74, %76, %cst_36 {dimension_numbers = #tpu.dot_dimension_numbers<[1], [0], [0], [1], [0, 0, 1, 1], [], []>} : vector<42x8xbf16>, vector<8x8xbf16>, vector<42x8xf32> -> vector<42x8xf32>
    %78 = arith.addf %72, %77 : vector<42x8xf32>
    %c0_37 = arith.constant 0 : index
    %c0_38 = arith.constant 0 : index
    %c1_39 = arith.constant 1 : index
    %c0_40 = arith.constant 0 : index
    %79 = vector.load %arg6[%c0_37, %c0_38, %c1_39, %c0_40] : memref<1x8x9x8xbf16, #tpu.memory_space<vmem>>, vector<1x6x7x8xbf16>
    %80 = vector.shape_cast %79 : vector<1x6x7x8xbf16> to vector<42x8xbf16>
    %81 = vector.extract_strided_slice %71 {offsets = [1, 0, 0], sizes = [1, 8, 8], strides = [1, 1, 1]} : vector<9x8x8xbf16> to vector<1x8x8xbf16>
    %82 = vector.shape_cast %81 : vector<1x8x8xbf16> to vector<8x8xbf16>
    %cst_41 = arith.constant dense<0.000000e+00> : vector<42x8xf32>
    %83 = tpu.matmul %80, %82, %cst_41 {dimension_numbers = #tpu.dot_dimension_numbers<[1], [0], [0], [1], [0, 0, 1, 1], [], []>} : vector<42x8xbf16>, vector<8x8xbf16>, vector<42x8xf32> -> vector<42x8xf32>
    %84 = arith.addf %78, %83 : vector<42x8xf32>
    %c0_42 = arith.constant 0 : index
    %c0_43 = arith.constant 0 : index
    %c2 = arith.constant 2 : index
    %c0_44 = arith.constant 0 : index
    %85 = vector.load %arg6[%c0_42, %c0_43, %c2, %c0_44] : memref<1x8x9x8xbf16, #tpu.memory_space<vmem>>, vector<1x6x7x8xbf16>
    %86 = vector.shape_cast %85 : vector<1x6x7x8xbf16> to vector<42x8xbf16>
    %87 = vector.extract_strided_slice %71 {offsets = [2, 0, 0], sizes = [1, 8, 8], strides = [1, 1, 1]} : vector<9x8x8xbf16> to vector<1x8x8xbf16>
    %88 = vector.shape_cast %87 : vector<1x8x8xbf16> to vector<8x8xbf16>
    %cst_45 = arith.constant dense<0.000000e+00> : vector<42x8xf32>
    %89 = tpu.matmul %86, %88, %cst_45 {dimension_numbers = #tpu.dot_dimension_numbers<[1], [0], [0], [1], [0, 0, 1, 1], [], []>} : vector<42x8xbf16>, vector<8x8xbf16>, vector<42x8xf32> -> vector<42x8xf32>
    %90 = arith.addf %84, %89 : vector<42x8xf32>
    %c0_46 = arith.constant 0 : index
    %c1_47 = arith.constant 1 : index
    %c0_48 = arith.constant 0 : index
    %c0_49 = arith.constant 0 : index
    %91 = vector.load %arg6[%c0_46, %c1_47, %c0_48, %c0_49] : memref<1x8x9x8xbf16, #tpu.memory_space<vmem>>, vector<1x6x7x8xbf16>
    %92 = vector.shape_cast %91 : vector<1x6x7x8xbf16> to vector<42x8xbf16>
    %93 = vector.extract_strided_slice %71 {offsets = [3, 0, 0], sizes = [1, 8, 8], strides = [1, 1, 1]} : vector<9x8x8xbf16> to vector<1x8x8xbf16>
    %94 = vector.shape_cast %93 : vector<1x8x8xbf16> to vector<8x8xbf16>
    %cst_50 = arith.constant dense<0.000000e+00> : vector<42x8xf32>
    %95 = tpu.matmul %92, %94, %cst_50 {dimension_numbers = #tpu.dot_dimension_numbers<[1], [0], [0], [1], [0, 0, 1, 1], [], []>} : vector<42x8xbf16>, vector<8x8xbf16>, vector<42x8xf32> -> vector<42x8xf32>
    %96 = arith.addf %90, %95 : vector<42x8xf32>
    %c0_51 = arith.constant 0 : index
    %c1_52 = arith.constant 1 : index
    %c1_53 = arith.constant 1 : index
    %c0_54 = arith.constant 0 : index
    %97 = vector.load %arg6[%c0_51, %c1_52, %c1_53, %c0_54] : memref<1x8x9x8xbf16, #tpu.memory_space<vmem>>, vector<1x6x7x8xbf16>
    %98 = vector.shape_cast %97 : vector<1x6x7x8xbf16> to vector<42x8xbf16>
    %99 = vector.extract_strided_slice %71 {offsets = [4, 0, 0], sizes = [1, 8, 8], strides = [1, 1, 1]} : vector<9x8x8xbf16> to vector<1x8x8xbf16>
    %100 = vector.shape_cast %99 : vector<1x8x8xbf16> to vector<8x8xbf16>
    %cst_55 = arith.constant dense<0.000000e+00> : vector<42x8xf32>
    %101 = tpu.matmul %98, %100, %cst_55 {dimension_numbers = #tpu.dot_dimension_numbers<[1], [0], [0], [1], [0, 0, 1, 1], [], []>} : vector<42x8xbf16>, vector<8x8xbf16>, vector<42x8xf32> -> vector<42x8xf32>
    %102 = arith.addf %96, %101 : vector<42x8xf32>
    %c0_56 = arith.constant 0 : index
    %c1_57 = arith.constant 1 : index
    %c2_58 = arith.constant 2 : index
    %c0_59 = arith.constant 0 : index
    %103 = vector.load %arg6[%c0_56, %c1_57, %c2_58, %c0_59] : memref<1x8x9x8xbf16, #tpu.memory_space<vmem>>, vector<1x6x7x8xbf16>
    %104 = vector.shape_cast %103 : vector<1x6x7x8xbf16> to vector<42x8xbf16>
    %105 = vector.extract_strided_slice %71 {offsets = [5, 0, 0], sizes = [1, 8, 8], strides = [1, 1, 1]} : vector<9x8x8xbf16> to vector<1x8x8xbf16>
    %106 = vector.shape_cast %105 : vector<1x8x8xbf16> to vector<8x8xbf16>
    %cst_60 = arith.constant dense<0.000000e+00> : vector<42x8xf32>
    %107 = tpu.matmul %104, %106, %cst_60 {dimension_numbers = #tpu.dot_dimension_numbers<[1], [0], [0], [1], [0, 0, 1, 1], [], []>} : vector<42x8xbf16>, vector<8x8xbf16>, vector<42x8xf32> -> vector<42x8xf32>
    %108 = arith.addf %102, %107 : vector<42x8xf32>
    %c0_61 = arith.constant 0 : index
    %c2_62 = arith.constant 2 : index
    %c0_63 = arith.constant 0 : index
    %c0_64 = arith.constant 0 : index
    %109 = vector.load %arg6[%c0_61, %c2_62, %c0_63, %c0_64] : memref<1x8x9x8xbf16, #tpu.memory_space<vmem>>, vector<1x6x7x8xbf16>
    %110 = vector.shape_cast %109 : vector<1x6x7x8xbf16> to vector<42x8xbf16>
    %111 = vector.extract_strided_slice %71 {offsets = [6, 0, 0], sizes = [1, 8, 8], strides = [1, 1, 1]} : vector<9x8x8xbf16> to vector<1x8x8xbf16>
    %112 = vector.shape_cast %111 : vector<1x8x8xbf16> to vector<8x8xbf16>
    %cst_65 = arith.constant dense<0.000000e+00> : vector<42x8xf32>
    %113 = tpu.matmul %110, %112, %cst_65 {dimension_numbers = #tpu.dot_dimension_numbers<[1], [0], [0], [1], [0, 0, 1, 1], [], []>} : vector<42x8xbf16>, vector<8x8xbf16>, vector<42x8xf32> -> vector<42x8xf32>
    %114 = arith.addf %108, %113 : vector<42x8xf32>
    %c0_66 = arith.constant 0 : index
    %c2_67 = arith.constant 2 : index
    %c1_68 = arith.constant 1 : index
    %c0_69 = arith.constant 0 : index
    %115 = vector.load %arg6[%c0_66, %c2_67, %c1_68, %c0_69] : memref<1x8x9x8xbf16, #tpu.memory_space<vmem>>, vector<1x6x7x8xbf16>
    %116 = vector.shape_cast %115 : vector<1x6x7x8xbf16> to vector<42x8xbf16>
    %117 = vector.extract_strided_slice %71 {offsets = [7, 0, 0], sizes = [1, 8, 8], strides = [1, 1, 1]} : vector<9x8x8xbf16> to vector<1x8x8xbf16>
    %118 = vector.shape_cast %117 : vector<1x8x8xbf16> to vector<8x8xbf16>
    %cst_70 = arith.constant dense<0.000000e+00> : vector<42x8xf32>
    %119 = tpu.matmul %116, %118, %cst_70 {dimension_numbers = #tpu.dot_dimension_numbers<[1], [0], [0], [1], [0, 0, 1, 1], [], []>} : vector<42x8xbf16>, vector<8x8xbf16>, vector<42x8xf32> -> vector<42x8xf32>
    %120 = arith.addf %114, %119 : vector<42x8xf32>
    %c0_71 = arith.constant 0 : index
    %c2_72 = arith.constant 2 : index
    %c2_73 = arith.constant 2 : index
    %c0_74 = arith.constant 0 : index
    %121 = vector.load %arg6[%c0_71, %c2_72, %c2_73, %c0_74] : memref<1x8x9x8xbf16, #tpu.memory_space<vmem>>, vector<1x6x7x8xbf16>
    %122 = vector.shape_cast %121 : vector<1x6x7x8xbf16> to vector<42x8xbf16>
    %123 = vector.extract_strided_slice %71 {offsets = [8, 0, 0], sizes = [1, 8, 8], strides = [1, 1, 1]} : vector<9x8x8xbf16> to vector<1x8x8xbf16>
    %124 = vector.shape_cast %123 : vector<1x8x8xbf16> to vector<8x8xbf16>
    %cst_75 = arith.constant dense<0.000000e+00> : vector<42x8xf32>
    %125 = tpu.matmul %122, %124, %cst_75 {dimension_numbers = #tpu.dot_dimension_numbers<[1], [0], [0], [1], [0, 0, 1, 1], [], []>} : vector<42x8xbf16>, vector<8x8xbf16>, vector<42x8xf32> -> vector<42x8xf32>
    %126 = arith.addf %120, %125 : vector<42x8xf32>
    %c2_76 = arith.constant 2 : index
    %c0_77 = arith.constant 0 : index
    %127 = vector.load %arg4[%c2_76, %c0_77] : memref<4x8xf32, #tpu.memory_space<vmem>>, vector<1x8xf32>
    %128 = vector.broadcast %127 : vector<1x8xf32> to vector<42x8xf32>
    %129 = arith.mulf %126, %128 : vector<42x8xf32>
    %c3 = arith.constant 3 : index
    %c0_78 = arith.constant 0 : index
    %130 = vector.load %arg4[%c3, %c0_78] : memref<4x8xf32, #tpu.memory_space<vmem>>, vector<1x8xf32>
    %131 = vector.broadcast %130 : vector<1x8xf32> to vector<42x8xf32>
    %132 = arith.addf %129, %131 : vector<42x8xf32>
    %133 = vector.extract_strided_slice %0 {offsets = [0, 1, 1, 0], sizes = [1, 6, 7, 8], strides = [1, 1, 1, 1]} : vector<1x8x9x8xf32> to vector<1x6x7x8xf32>
    %134 = vector.shape_cast %133 : vector<1x6x7x8xf32> to vector<42x8xf32>
    %135 = arith.addf %134, %132 : vector<42x8xf32>
    %cst_79 = arith.constant 0.000000e+00 : f32
    %136 = vector.broadcast %cst_79 : f32 to vector<42x8xf32>
    %137 = arith.maximumf %135, %136 : vector<42x8xf32>
    %138 = vector.shape_cast %137 : vector<42x8xf32> to vector<1x6x7x8xf32>
    %c0_80 = arith.constant 0 : index
    %c0_81 = arith.constant 0 : index
    %c0_82 = arith.constant 0 : index
    %c0_83 = arith.constant 0 : index
    %139 = vector.load %arg5[%c0_80, %c0_81, %c0_82, %c0_83] : memref<1x6x7x8xf32, #tpu.memory_space<vmem>>, vector<1x6x7x8xf32>
    tpu.vector_store %arg5[%c0_80, %c0_81, %c0_82, %c0_83], %138 {strides = array<i32>} : memref<1x6x7x8xf32, #tpu.memory_space<vmem>>, vector<1x6x7x8xf32>,
    return
  }
  func.func @transform_0(%arg0: i32) -> (i32, i32, i32, i32) {
    %c0_i32 = arith.constant 0 : i32
    %c0_i32_0 = arith.constant 0 : i32
    %c0_i32_1 = arith.constant 0 : i32
    %c0_i32_2 = arith.constant 0 : i32
    return %arg0, %c0_i32, %c0_i32_0, %c0_i32_1 : i32, i32, i32, i32
  }
  func.func @transform_1(%arg0: i32) -> (i32, i32, i32) {
    %c0_i32 = arith.constant 0 : i32
    %c0_i32_0 = arith.constant 0 : i32
    %c0_i32_1 = arith.constant 0 : i32
    %c0_i32_2 = arith.constant 0 : i32
    return %c0_i32, %c0_i32_0, %c0_i32_1 : i32, i32, i32
  }
  func.func @transform_2(%arg0: i32) -> (i32, i32, i32) {
    %c0_i32 = arith.constant 0 : i32
    %c0_i32_0 = arith.constant 0 : i32
    %c0_i32_1 = arith.constant 0 : i32
    %c0_i32_2 = arith.constant 0 : i32
    return %c0_i32, %c0_i32_0, %c0_i32_1 : i32, i32, i32
  }
  func.func @transform_3(%arg0: i32) -> (i32, i32) {
    %c0_i32 = arith.constant 0 : i32
    %c0_i32_0 = arith.constant 0 : i32
    %c0_i32_1 = arith.constant 0 : i32
    return %c0_i32, %c0_i32_0 : i32, i32
  }
  func.func @transform_4(%arg0: i32) -> (i32, i32, i32, i32) {
    %c0_i32 = arith.constant 0 : i32
    %c0_i32_0 = arith.constant 0 : i32
    %c0_i32_1 = arith.constant 0 : i32
    %c0_i32_2 = arith.constant 0 : i32
    return %arg0, %c0_i32, %c0_i32_0, %c0_i32_1 : i32, i32, i32, i32
  }
}

</mosaic_0001>

<bundles_post_ra>
// kernel: resblock_pallas.1
= control target key start
LH: loop header
LB: loop body
LE: loop exit
PB: predicated region body
PF: predicated region fallthrough
CT: control target
= control target key end

     0   :  { %s8926_s15 = smov 0   ;;  %s11321_s0 = inlined_call_operand.vmem [shape: f32[2,8,9,8], index: 0, kind: input, shape index: {}]   ;;  %s11322_s1 = inlined_call_operand.vmem [shape: bf16[9,8,8], index: 1, kind: input, shape index: {}]   ;;  %s11323_s2 = inlined_call_operand.vmem [shape: bf16[9,8,8], index: 2, kind: input, shape index: {}]   ;;  %s11324_s3 = inlined_call_operand.vmem [shape: f32[4,8], index: 3, kind: input, shape index: {}]   ;;  %s11325_s4 = inlined_call_operand.vmem [shape: f32[2,6,7,8], index: 4, kind: output, shape index: {}]  }
   0x1 LB: > { %s8040_s16 = sadd.s32 4294967295, %s8894_s15   ;;  %p8044_p0 = scmp.ge.s32.totalorder %s8894_s15, 1  ;;  %s8894_s15 = sphi %s8926_s15, %s14_s15  }
   0x2   : > { %p162_p1 = scmp.lt.s32.totalorder %s8894_s15, 3 }
   0x4   : > { %p163_p2 = pnand %p8044_p0, %p162_p1 }
   0x6   : > { %166 = sbr.rel (%p163_p2) target bundleno = 997 (0x3e5), region = 36 }
   0xd   : > { %v224_v0 = vld [vmem:[%s11322_s1 + $0x4] sm:$0xf]  ;;  %vm598_vm0 = vcmask 1043456   ;;  %p188_p3 = scmp.lt.s32.totalorder %s8040_s16, 1  ;;  %v241_v1 = vlaneseq  ;;  %v11329_v2 = vmov 0.0   ;;  %vm8897_vm1 = vmmov 0  }
   0xe   : > { %8424 = vmatprep.subr.bf16.mxu0 %v11329_v2  ;;  %v600_v3 = vsel %vm598_vm0, %v224_v0, 0  ;;  %8426 = vmatprep.mubr.msk.bf16.mxu0 %vm8897_vm1, %v11329_v2  ;;  %v8898_v4 = vmov 1966171168   ;;  %v223_v8 = vld [vmem:[%s11322_s1] sm:$0xf]  ;;  %vm588_vm2 = vcmask 64512  }
   0xf   : > { %8425 = vmatpush3.bf16.msra.mxu0 %v600_v3  ;;  %s11418_s16 = smov (!%p188_p3, %s8040_s16), 1  ;;  %v239_v5 = vunpack.c.l.s4 %v8898_v4  ;;  %v8943_v6 = vshrl.u32 %v241_v1, 7  ;;  %8550 = vmatprep.subr.bf16.mxu1 %v11329_v2  ;;  %v225_v9 = vld [vmem:[%s11322_s1 + $0x8] sm:$0xf]  ;;  %v226_v10 = vld [vmem:[%s11322_s1 + $0xc] sm:$0xf] }
  0x10   : > { %8438 = vmatprep.subr.bf16.mxu0 %v11329_v2  ;;  %8552 = vmatprep.mubr.msk.bf16.mxu1 %vm8897_vm1, %v11329_v2  ;;  %s8351_s19 = sshll.u32 %s11418_s16, 7  ;;  %v227_v11 = vld [vmem:[%s11322_s1 + $0x10] sm:$0xf]  ;;  %v8977_v21 = vsel %vm598_vm0, %v223_v8, 0  ;;  %v8987_v28 = vsel %vm598_vm0, %v225_v9, 0  ;;  %v8995_v32 = vsel %vm598_vm0, %v226_v10, 0 }
  0x11   : > { %11346 = vst [vmem:[#allocation3_spill] sm:$0xff] %v8943_v6  ;;  %v240_v7 = vunpack.c.0.s8 %v239_v5  ;;  %s8956_s24 = scalar_lea.vmem %s11321_s0, %s8351_s19  ;;  %11347 = vst [vmem:[#allocation4_spill] sm:$0xff] %v8995_v32  ;;  %v8998_v33 = vsel %vm598_vm0, %v227_v11, 0  ;;  %vm2489_vm3 = vcmask 60416   ;;  %vm2491_vm4 = vcmask 57344   ;;  %s8868_s17 = smul.u32 48, %s11418_s16 }
  0x12   : > { %v199_v12 = vld [vmem:[%s8956_s24] sm:$0xff]  ;;  %v200_v13 = vld [vmem:[%s8956_s24 + $0x8] sm:$0x1]  ;;  %v201_v14 = vld [vmem:[%s8956_s24 + $0x10] sm:$0xff]  ;;  %11348 = vst [vmem:[#allocation5_spill] sm:$0xff] %v8998_v33  ;;  %vm7978_vm9 = vcmask 63488  }
  0x13   : > { %v8971_v15 = vsub.s32 %v240_v7, %v8943_v6  ;;  %v202_v16 = vld [vmem:[%s8956_s24 + $0x18] sm:$0x1]  ;;  %v203_v17 = vld [vmem:[%s8956_s24 + $0x20] sm:$0xff]  ;;  %v204_v18 = vld [vmem:[%s8956_s24 + $0x28] sm:$0x1]  ;;  %v215_v19 = vpack.c.bf16 %v200_v13, %v199_v12  ;;  %v8076_v20 = vpack.c.bf16 %v200_v13, %v200_v13  ;;  %s11166_s19 = scalar_lea.vmem %s11325_s4, %s8868_s17 }
  0x14   : > { %v216_v22 = vpack.c.bf16 %v202_v16, %v201_v14  ;;  %v217_v23 = vpack.c.bf16 %v204_v18, %v203_v17  ;;  %v8077_v24 = vpack.c.bf16 %v202_v16, %v202_v16  ;;  %v205_v25 = vld [vmem:[%s8956_s24 + $0x30] sm:$0xff]  ;;  %v8981_v26 = vld [vmem:[%s8956_s24 + $0x38] sm:$0x1]  ;;  %v8984_v27 = vld [vmem:[%s8956_s24 + $0x40] sm:$0xff]  ;;  %v8078_v36 = vpack.c.bf16 %v204_v18, %v204_v18 }
  0x15   : > { %v244_v29 = vrot.slane %v215_v19, %v8971_v15  ;;  %v8991_v30 = vld [vmem:[%s8956_s24 + $0x48] sm:$0x1]  ;;  %v218_v31 = vpack.c.bf16 %v8981_v26, %v205_v25  ;;  %v9003_v37 = vrot.slane %v8076_v20, %v8971_v15  ;;  %vm2492_vm5 = vsmask.f32 256 }
  0x16   : > { %v268_v34 = vrot.slane %v216_v22, %v8971_v15  ;;  %v292_v35 = vrot.slane %v217_v23, %v8971_v15  ;;  %v908_v40 = vrot.slane %v8077_v24, %v8971_v15  ;;  %v219_v41 = vpack.c.bf16 %v8991_v30, %v8984_v27  ;;  %vm9921_vm6 = vmand %vm2491_vm4, %vm2492_vm5 }
  0x17   : > { %v245_v38 = vcombine.high %v244_v29, %v244_v29  ;;  %v9006_v39 = vrot.slane %v244_v29, %v8971_v15  ;;  %v316_v49 = vrot.slane %v218_v31, %v8971_v15  ;;  %v923_v7 = vrot.slane %v8078_v36, %v8971_v15 }
  0x18   : > { %v269_v42 = vcombine.high %v268_v34, %v268_v34  ;;  %v9012_v43 = vrot.slane %v268_v34, %v8971_v15  ;;  %v293_v44 = vcombine.high %v292_v35, %v292_v35  ;;  %v9015_v45 = vrot.slane %v292_v35, %v8971_v15 }
  0x19   : > { %v9018_v46 = vrot.slane %v245_v38, %v8971_v15  ;;  %v9022_v47 = vcombine.high %v9006_v39, %v9006_v39  ;;  %v383_v48 = vunpack.i.h.s16 %v9006_v39  ;;  %v9061_v5 = vrot.slane %v908_v40, %v8971_v15 }
  0x1a   : > { %v9027_v50 = vrot.slane %v269_v42, %v8971_v15  ;;  %v9031_v51 = vcombine.high %v9012_v43, %v9012_v43  ;;  %v9034_v52 = vrot.slane %v293_v44, %v8971_v15  ;;  %v390_v53 = vunpack.i.h.s16 %v9012_v43 }
  0x1b   : > { %v9039_v54 = vcombine.high %v9018_v46, %v9018_v46  ;;  %v385_v55 = vunpack.i.h.s16 %v9018_v46  ;;  %v387_v56 = vunpack.i.h.s16 %v9022_v47  ;;  %v397_v57 = vunpack.i.h.s16 %v9015_v45 }
  0x1c   : > { %v9046_v58 = vcombine.high %v9027_v50, %v9027_v50  ;;  %v392_v59 = vunpack.i.h.s16 %v9027_v50  ;;  %v394_v60 = vunpack.i.h.s16 %v9031_v51  ;;  %v8048_v61 = vpack.i.b16 %v9018_v46, %v383_v48 }
  0x1d   : > { %v424_v62 = vunpack.i.h.s16 %v9039_v54  ;;  %v8049_v63 = vpack.i.b16 %v9022_v47, %v385_v55  ;;  %v8050_v0 = vpack.i.b16 %v9039_v54, %v387_v56  ;;  %v9055_v1 = vpack.i.b16 %v9034_v52, %v397_v57 }
  0x1e   : > { %v425_v3 = vunpack.i.h.s16 %v9046_v58  ;;  %v453_v4 = vcombine.low %v9027_v50, %v9031_v51  ;;  %v9067_v11 = vpack.i.b16 %v9027_v50, %v390_v53  ;;  %v9071_v13 = vpack.i.b16 %v9031_v51, %v392_v59 }
  0x1f   : > { %v433_v8 = vpack.i.b16 %v390_v53, %v424_v62  ;;  %v451_v9 = vcombine.low %v8048_v61, %v8049_v63  ;;  %v454_v10 = vcombine.low %v9046_v58, %v9055_v1  ;;  %v9074_v14 = vpack.i.b16 %v9046_v58, %v394_v60 }
  0x20   : > { %v475_v12 = vrot.slane %v453_v4, %v8971_v15  ;;  %v9078_v16 = vpack.i.b16 %v397_v57, %v425_v3  ;;  %v8106_v20 = vpack.i.b16 %v9034_v52, %v9061_v5  ;;  %v9088_v23 = vcombine.high %v9015_v45, %v9015_v45 }
  0x21   : > { %v452_v17 = vcombine.low %v8050_v0, %v433_v8  ;;  %v461_v18 = vrot.slane %v451_v9, %v8971_v15  ;;  %v482_v19 = vrot.slane %v454_v10, %v8971_v15  ;;  %v9092_v24 = vcombine.high %v9034_v52, %v9034_v52 }
  0x22   : > { %v317_v25 = vcombine.high %v316_v49, %v316_v49  ;;  %v1665_v31 = vcombine.low %v9046_v58, %v8106_v20  ;;  %v9097_v34 = vrot.slane %v316_v49, %v8971_v15  ;;  %v340_v36 = vrot.slane %v219_v41, %v8971_v15 }
  0x23   : > { %v468_v27 = vrot.slane %v452_v17, %v8971_v15  ;;  %v484_v29 = vcombine.low %v475_v12, %v482_v19  ;;  %v399_v38 = vunpack.i.h.s16 %v9034_v52  ;;  %v401_v40 = vunpack.i.h.s16 %v9088_v23 }
  0x24   : > { %v9100_v35 = vrot.slane %v317_v25, %v8971_v15  ;;  %v1673_v48 = vrot.slane %v1665_v31, %v8971_v15  ;;  %v404_v53 = vunpack.i.h.s16 %v9097_v34  ;;  %v341_v55 = vcombine.high %v340_v36, %v340_v36  ;;  %v209_v25 = vld [vmem:[%s8956_s24 + $0x50] sm:$0xff] }
  0x25   : > { %v483_v42 = vcombine.low %v461_v18, %v468_v27  ;;  %v498_v44 = vrot.slane %v484_v29, %v8971_v15  ;;  %v9109_v49 = vrot.slane %v340_v36, %v8971_v15  ;;  %v426_v56 = vunpack.i.h.s16 %v9092_v24  ;;  %v9148_v27 = vld [vmem:[%s8956_s24 + $0x58] sm:$0x1] }
  0x26   : > { %v8052_v57 = vpack.i.b16 %v9088_v23, %v399_v38  ;;  %v9114_v59 = vcombine.low %v475_v12, %v1673_v48  ;;  %v9117_v60 = vpack.i.b16 %v9092_v24, %v401_v40  ;;  %v9122_v62 = vrot.slane %v341_v55, %v8971_v15 }
  0x27   : > { %v491_v41 = vrot.slane %v483_v42, %v8971_v15  ;;  %v9126_v63 = vcombine.high %v9109_v49, %v9109_v49  ;;  %v11326_v0 = vunpack.i.h.s16 %v9109_v49  ;;  %v440_v4 = vpack.i.b16 %v404_v53, %v426_v56 }
  0x28   : > { %v682_v9 = vcombine.low %v9067_v11, %v9071_v13  ;;  %v500_v10 = vcombine.low %v8052_v57, %v9117_v60  ;;  %v8057_v12 = vcombine.high %v9097_v34, %v9100_v35  ;;  %v413_v17 = vunpack.i.h.s16 %v9122_v62 }
  0x29   : > { %v499_v8 = vcombine.low %v491_v41, %v498_v44  ;;  %v9140_v18 = vpack.i.b16 %v9122_v62, %v11326_v0  ;;  %v501_v19 = vcombine.low %v440_v4, %v9100_v35  ;;  %v9144_v20 = vrot.slane %v923_v7, %v8971_v15 }
  0x2a   : > { %v9152_v11 = vrot.slane %v500_v10, %v8971_v15  ;;  %v1246_v29 = vcombine.low %v9055_v1, %v8052_v57  ;;  %v2083_v36 = vcombine.low %v9117_v60, %v440_v4  ;;  %v9162_v7 = vpack.i.b16 %v9126_v63, %v413_v17 }
  0x2b   : > { %8427 = vmatmul.mubr.msk.bf16.vlgmr.msra.gmra.mrb[0].mxu0 %vm588_vm2, %v499_v8  ;;  %v517_v38 = vrot.slane %v501_v19, %v8971_v15  ;;  %v8107_v40 = vpack.i.b16 %v9144_v20, %v426_v56  ;;  %v415_v42 = vunpack.i.h.s16 %v9126_v63  ;;  %v9170_v1 = vpack.i.b16 %v9061_v5, %v425_v3 }
  0x2c   : > { %8439 = vmatpush3.bf16.msra.mxu0 %v8977_v21  ;;  %8430 = vmatprep.mubr.msk.bf16.mxu0 %vm8897_vm1, %v11329_v2  ;;  %v9173_v44 = vrot.slane %v8057_v12, %v8971_v15  ;;  %v220_v21 = vpack.c.bf16 %v9148_v27, %v209_v25  ;;  %v9178_v48 = vcombine.high %v9122_v62, %v9122_v62  ;;  %v406_v22 = vunpack.i.h.s16 %v9100_v35 }
  0x2d   : > { %8452 = vmatprep.subr.bf16.mxu0 %v11329_v2  ;;  %v503_v55 = vcombine.low %v9140_v18, %v9162_v7  ;;  %v532_v56 = vcombine.low %v9152_v11, %v517_v38  ;;  %v1666_v57 = vcombine.low %v8107_v40, %v9100_v35  ;;  %v8061_v3 = vpack.i.b16 %v9012_v43, %v9039_v54 }
  0x2e   : > { %11349 = vst [vmem:[#allocation6_spill] sm:$0xff] %v9173_v44  ;;  %v364_v5 = vrot.slane %v220_v21, %v8971_v15  ;;  %v11327_v41 = vunpack.i.h.s16 %v9178_v48  ;;  %v9190_v4 = vpack.i.b16 %v9178_v48, %v415_v42  ;;  %v680_v8 = vcombine.low %v9006_v39, %v9018_v46 }
  0x2f   : > { %v531_v10 = vrot.slane %v503_v55, %v8971_v15  ;;  %v540_v12 = vrot.slane %v532_v56, %v8971_v15  ;;  %v9197_v17 = vrot.slane %v1666_v57, %v8971_v15  ;;  %v681_v19 = vcombine.low %v9022_v47, %v8061_v3 }
  0x30   : > { %v365_v25 = vcombine.high %v364_v5, %v364_v5  ;;  %v9201_v38 = vrot.slane %v364_v5, %v8971_v15  ;;  %v683_v40 = vcombine.low %v9074_v14, %v9015_v45  ;;  %v690_v42 = vrot.slane %v680_v8, %v8971_v15 }
  0x31   : > { %v533_v39 = vcombine.low %v9173_v44, %v531_v10  ;;  %v1682_v21 = vcombine.low %v9152_v11, %v9197_v17  ;;  %v697_v55 = vrot.slane %v681_v19, %v8971_v15  ;;  %v9211_v56 = vrot.slane %v682_v9, %v8971_v15 }
  0x32   : > { %v9214_v57 = vrot.slane %v365_v25, %v8971_v15  ;;  %v9218_v3 = vcombine.high %v9201_v38, %v9201_v38  ;;  %v418_v5 = vunpack.i.h.s16 %v9201_v38  ;;  %v711_v8 = vrot.slane %v683_v40, %v8971_v15 }
  0x33   : > { %v547_v11 = vrot.slane %v533_v39, %v8971_v15  ;;  %v9226_v17 = vrot.slane %v1246_v29, %v8971_v15  ;;  %v9230_v9 = vcombine.high %v9097_v34, %v9097_v34  ;;  %v712_v10 = vcombine.low %v690_v42, %v697_v55 }
  0x34   : > { %v9234_v19 = vcombine.high %v9214_v57, %v9214_v57  ;;  %v9238_v25 = vpack.i.b16 %v418_v5, %v11327_v41  ;;  %v550_v40 = vcombine.low %v9214_v57, %v9218_v3  ;;  %v9243_v29 = vrot.slane %v2083_v36, %v8971_v15 }
  0x35   : > { %v548_v39 = vcombine.low %v540_v12, %v547_v11  ;;  %v9247_v0 = vcombine.high %v9100_v35, %v9100_v35  ;;  %v713_v12 = vcombine.low %v9211_v56, %v711_v8  ;;  %v408_v36 = vunpack.i.h.s16 %v9230_v9 }
  0x36   : > { %11350 = vst [vmem:[#allocation7_spill] sm:$0xff] %v9238_v25  ;;  %11351 = vst [vmem:[#allocation8_spill] sm:$0xff] %v9243_v29  ;;  %v549_v31 = vcombine.low %v9190_v4, %v9238_v25  ;;  %v9253_v41 = vrot.slane %v550_v40, %v8971_v15  ;;  %v571_v61 = vrot.slane %v9234_v19, %v8971_v15  ;;  %vm2886_vm7 = vsmask.f32 7938 }
  0x37   : > { %8431 = vmatmul.mubr.msk.bf16.gmra.mrb[4].mxu0 %vm588_vm2, %v548_v39  ;;  %v8065_v42 = vpack.i.b16 %v9097_v34, %v9092_v24  ;;  %v9265_v55 = vpack.i.b16 %v9100_v35, %v404_v53  ;;  %v9268_v11 = vpack.i.b16 %v9230_v9, %v406_v22  ;;  %v720_v39 = vrot.slane %v712_v10, %v8971_v15  ;;  %vm9988_vm8 = vmand %vm2489_vm3, %vm2886_vm7 }
  0x38   : > { %11352 = vst [vmem:[#allocation9_spill] sm:$0xff] %v9253_v41  ;;  %8434 = vmatprep.mubr.msk.bf16.mxu0 %vm8897_vm1, %v11329_v2  ;;  %v557_v8 = vrot.slane %v549_v31, %v8971_v15  ;;  %v586_v40 = vrot.slane %v571_v61, %v8971_v15  ;;  %v729_v6 = vcombine.low %v9034_v52, %v9088_v23 }
  0x39   : > { %11353 = vst [vmem:[#allocation10_spill] sm:$0xff] %v9265_v55  ;;  %v9278_v33 = vpack.i.b16 %v9247_v0, %v408_v36  ;;  %v730_v53 = vcombine.low %v8065_v42, %v9265_v55  ;;  %v732_v22 = vcombine.low %v9109_v49, %v9122_v62  ;;  %v1464_v2 = vcombine.low %v9092_v24, %v9265_v55 }
  0x3a   : > { %v572_v31 = vcombine.low %v557_v8, %v9253_v41  ;;  %v9287_v61 = vrot.slane %v729_v6, %v8971_v15  ;;  %v1883_v10 = vcombine.low %v9088_v23, %v8065_v42  ;;  %v727_v6 = vrot.slane %v713_v12, %v8971_v15 }
  0x3b   : > { %v731_v36 = vcombine.low %v9268_v11, %v9278_v33  ;;  %v746_v29 = vrot.slane %v730_v53, %v8971_v15  ;;  %v760_v44 = vrot.slane %v732_v22, %v8971_v15  ;;  %v9297_v32 = vrot.slane %v1464_v2, %v8971_v15 }
  0x3c   : > { %v579_v8 = vrot.slane %v572_v31, %v8971_v15  ;;  %v420_v41 = vunpack.i.h.s16 %v9214_v57  ;;  %v422_v23 = vunpack.i.h.s16 %v9218_v3  ;;  %v9311_v2 = vpack.i.b16 %v9201_v38, %v9178_v48 }
  0x3d   : > { %v9304_v42 = vrot.slane %v731_v36, %v8971_v15  ;;  %v761_v25 = vcombine.low %v9287_v61, %v746_v29  ;;  %v9314_v31 = vpack.i.b16 %v9214_v57, %v418_v5  ;;  %v9323_v36 = vrot.slane %v1682_v21, %v8971_v15 }
  0x3e   : > { %11354 = vst [vmem:[#allocation11_spill] sm:$0xff] %v9311_v2  ;;  %v587_v22 = vcombine.low %v579_v8, %v586_v40  ;;  %v9317_v12 = vpack.i.b16 %v9218_v3, %v420_v41  ;;  %v9320_v55 = vpack.i.b16 %v9234_v19, %v422_v23  ;;  %v778_v53 = vcombine.low %v9126_v63, %v9311_v2 }
  0x3f   : > { %11355 = vst [vmem:[#allocation12_spill] sm:$0xff] %v9314_v31  ;;  %v762_v29 = vcombine.low %v9304_v42, %v760_v44  ;;  %v900_v40 = vrot.slane %v9003_v37, %v8971_v15  ;;  %v728_v5 = vcombine.low %v720_v39, %v727_v6  ;;  %v991_v8 = vcombine.low %v9018_v46, %v9022_v47 }
  0x40   : > { %8435 = vmatmul.mubr.msk.bf16.gmra.mrb[8].mxu0 %vm588_vm2, %v587_v22  ;;  %v779_v41 = vcombine.low %v9314_v31, %v9317_v12  ;;  %v993_v21 = vcombine.low %v9071_v13, %v9074_v14  ;;  %v11356_v23 = vmov 0.0   ;;  %v9340_v44 = vrot.slane %v761_v25, %v8971_v15 }
  0x41   : > { %8440 = vmatprep.mubr.msk.bf16.mxu0 %vm8897_vm1, %v11356_v23  ;;  %v786_v37 = vrot.slane %v778_v53, %v8971_v15  ;;  %v8082_v22 = vpack.i.b16 %v9027_v50, %v900_v40  ;;  %v994_v39 = vcombine.low %v9170_v1, %v9034_v52  ;;  %v776_v6 = vrot.slane %v762_v29, %v8971_v15 }
  0x42   : > { %v9348_v46 = vrot.slane %v779_v41, %v8971_v15  ;;  %v800_v47 = vrot.slane %v9320_v55, %v8971_v15  ;;  %v1015_v13 = vrot.slane %v993_v21, %v8971_v15  ;;  %v1001_v2 = vrot.slane %v991_v8, %v8971_v15 }
  0x43   : > { %v992_v25 = vcombine.low %v9039_v54, %v8082_v22  ;;  %v1022_v53 = vrot.slane %v994_v39, %v8971_v15  ;;  %v11357_v29 = vpack.c.bf16 %v8981_v26, %v8981_v26  ;;  %v8084_v31 = vpack.i.b16 %v9100_v35, %v9144_v20 }
  0x44   : > { %v801_v1 = vcombine.low %v786_v37, %v9348_v46  ;;  %v8088_v21 = vcombine.high %v9015_v45, %v9034_v52  ;;  %v9367_v54 = vrot.slane %v1883_v10, %v8971_v15  ;;  %v1043_v37 = vcombine.low %v9122_v62, %v9126_v63 }
  0x45   : > { %v938_v41 = vrot.slane %v11357_v29, %v8971_v15  ;;  %v1008_v8 = vrot.slane %v992_v25, %v8971_v15  ;;  %v1024_v22 = vcombine.low %v1015_v13, %v1022_v53  ;;  %v9373_v39 = vrot.slane %v800_v47, %v8971_v15 }
  0x46   : > { %v1041_v20 = vcombine.low %v8084_v31, %v9268_v11  ;;  %v1050_v29 = vrot.slane %v8088_v21, %v8971_v15  ;;  %v777_v40 = vcombine.low %v9340_v44, %v776_v6  ;;  %v9382_v10 = vrot.slane %v801_v1, %v8971_v15 }
  0x47   : > { %v9376_v26 = vrot.slane %v938_v41, %v8971_v15  ;;  %v1023_v25 = vcombine.low %v1001_v2, %v1008_v8  ;;  %v2281_v13 = vcombine.low %v9092_v24, %v8084_v31  ;;  %v9387_v63 = vrot.slane %v1024_v22, %v8971_v15 }
  0x48   : > { %8441 = vmatmul.mubr.msk.bf16.vlgmr.msra.gmra.mrb[0].mxu0 %vm588_vm2, %v728_v5  ;;  %v11358_v47 = vunpack.i.h.s16 %v9247_v0  ;;  %v1057_v41 = vrot.slane %v1041_v20, %v8971_v15  ;;  %v8080_v44 = vpack.c.bf16 %v8991_v30, %v8991_v30  ;;  %v9404_v2 = vrot.slane %v1043_v37, %v8971_v15 }
  0x49   : > { %8453 = vmatpush3.bf16.msra.mxu0 %v8987_v28  ;;  %8444 = vmatprep.mubr.msk.bf16.mxu0 %vm8897_vm1, %v11356_v23  ;;  %v9401_v24 = vrot.slane %v1023_v25, %v8971_v15  ;;  %v429_v31 = vunpack.i.h.s16 %v9234_v19  ;;  %v8081_v5 = vpack.c.bf16 %v9148_v27, %v9148_v27  ;;  %v816_v21 = vcombine.low %v9382_v10, %v9373_v39 }
  0x4a   : > { %v9392_v53 = vpack.i.b16 %v9376_v26, %v11358_v47  ;;  %8466 = vmatprep.subr.bf16.mxu0 %v11356_v23  ;;  %v1072_v28 = vcombine.low %v1050_v29, %v1057_v41  ;;  %v953_v1 = vrot.slane %v8080_v44, %v8971_v15  ;;  %v9418_v8 = vrot.slane %v2281_v13, %v8971_v15 }
  0x4b   : > { %v968_v22 = vrot.slane %v8081_v5, %v8971_v15  ;;  %v8092_v27 = vpack.i.b16 %v9015_v45, %v9046_v58  ;;  %v1090_v25 = vcombine.low %v9317_v12, %v9320_v55  ;;  %v1244_v58 = vcombine.low %v9012_v43, %v9027_v50 }
  0x4c   : > { %v1042_v30 = vcombine.low %v9278_v33, %v9392_v53  ;;  %v9427_v29 = vrot.slane %v953_v1, %v8971_v15  ;;  %v9432_v39 = vrot.slane %v1072_v28, %v8971_v15  ;;  %v11359_v44 = vcombine.low %v9117_v60, %v9097_v34 }
  0x4d   : > { %v9435_v10 = vrot.slane %v968_v22, %v8971_v15  ;;  %v1245_v13 = vcombine.low %v9031_v51, %v8092_v27  ;;  %v1254_v50 = vrot.slane %v1244_v58, %v8971_v15  ;;  %v1293_v28 = vcombine.low %v9100_v35, %v9230_v9 }
  0x4e   : > { %v1064_v20 = vrot.slane %v1042_v30, %v8971_v15  ;;  %v9443_v41 = vpack.i.b16 %v9214_v57, %v9427_v29  ;;  %v1275_v5 = vrot.slane %v11359_v44, %v8971_v15  ;;  %v8093_v30 = vpack.i.b16 %v9109_v49, %v9247_v0 }
  0x4f   : > { %v9454_v43 = vpack.i.b16 %v9435_v10, %v429_v31  ;;  %v1261_v51 = vrot.slane %v1245_v13, %v8971_v15  ;;  %v9464_v60 = vrot.slane %v1090_v25, %v8971_v15  ;;  %v1295_v35 = vcombine.low %v9162_v7, %v9190_v4  ;;  %v9478_v25 = vld [vmem:[%s8956_s24 + $0x68] sm:$0x1] }
  0x50   : > { %v1073_v47 = vcombine.low %v1064_v20, %v9404_v2  ;;  %8445 = vmatmul.mubr.msk.bf16.gmra.mrb[4].mxu0 %vm588_vm2, %v777_v40  ;;  %v1089_v34 = vcombine.low %v9178_v48, %v9443_v41  ;;  %v1277_v1 = vcombine.low %v9226_v17, %v1275_v5  ;;  %v1294_v22 = vcombine.low %v8093_v30, %v9140_v18  ;;  %v211_v40 = vld [vmem:[%s8956_s24 + $0x60] sm:$0xff] }
  0x51   : > { %8448 = vmatprep.mubr.msk.bf16.mxu0 %vm8897_vm1, %v11356_v23  ;;  %v1111_v27 = vrot.slane %v9454_v43, %v8971_v15  ;;  %v1276_v20 = vcombine.low %v1254_v50, %v1261_v51  ;;  %v1296_v9 = vcombine.low %v9201_v38, %v9214_v57  ;;  %v9486_v5 = vrot.slane %v1293_v28, %v8971_v15 }
  0x52   : > { %v9481_v58 = vrot.slane %v1073_v47, %v8971_v15  ;;  %v1097_v13 = vrot.slane %v1089_v34, %v8971_v15  ;;  %v1291_v44 = vrot.slane %v1277_v1, %v8971_v15  ;;  %v1310_v51 = vrot.slane %v1294_v22, %v8971_v15 }
  0x53   : > { %v9489_v30 = vrot.slane %v1111_v27, %v8971_v15  ;;  %v1284_v50 = vrot.slane %v1276_v20, %v8971_v15  ;;  %v9494_v6 = vrot.slane %v1295_v35, %v8971_v15  ;;  %v1324_v37 = vrot.slane %v1296_v9, %v8971_v15 }
  0x54   : > { %v1112_v47 = vcombine.low %v1097_v13, %v9464_v60  ;;  %v2084_v34 = vcombine.low %v9247_v0, %v9140_v18  ;;  %v221_v28 = vpack.c.bf16 %v9478_v25, %v211_v40  ;;  %v1325_v27 = vcombine.low %v9486_v5, %v1310_v51 }
  0x55   : > { %v9501_v1 = vcombine.low %v1284_v50, %v1291_v44  ;;  %v11360_v22 = vcombine.low %v9074_v14, %v9078_v16  ;;  %v11361_v35 = vcombine.low %v9287_v61, %v9297_v32  ;;  %v1326_v18 = vcombine.low %v9494_v6, %v1324_v37 }
  0x56   : > { %v9515_v9 = vrot.slane %v1112_v47, %v8971_v15  ;;  %v9519_v40 = vrot.slane %v2084_v34, %v8971_v15  ;;  %v1210_v44 = vrot.slane %v221_v28, %v8971_v15  ;;  %v1333_v50 = vrot.slane %v1325_v27, %v8971_v15 }
  0x57   : > { %v1471_v20 = vrot.slane %v11360_v22, %v8971_v15  ;;  %v9512_v13 = vrot.slane %v11361_v35, %v8971_v15  ;;  %v11363_v16 = vunpack.i.h.s16 %v9247_v0  ;;  %v11364_v32 = vunpack.i.h.s16 %v9109_v49 }
  0x58   : > { %v8101_v47 = vcombine.high %v9109_v49, %v9122_v62  ;;  %8449 = vmatmul.mubr.msk.bf16.gmra.mrb[8].mxu0 %vm588_vm2, %v816_v21  ;;  %v1340_v34 = vrot.slane %v1326_v18, %v8971_v15  ;;  %v1211_v27 = vcombine.high %v1210_v44, %v1210_v44  ;;  %v9539_v0 = vrot.slane %v1210_v44, %v8971_v15 }
  0x59   : > { %11362 = vst [vmem:[#allocation13_spill] sm:$0xff] %v9512_v13  ;;  %v1479_v14 = vcombine.low %v9211_v56, %v1471_v20  ;;  %v1458_v51 = vpack.i.b16 %v11364_v32, %v11363_v16  ;;  %8454 = vmatprep.mubr.msk.bf16.mxu0 %vm8897_vm1, %v11356_v23  ;;  %v11365_v44 = vrot.slane %v9114_v59, %v8971_v15 }
  0x5a   : > { %v9546_v22 = vrot.slane %v8101_v47, %v8971_v15  ;;  %v9550_v35 = vcombine.low %v1333_v50, %v1340_v34  ;;  %v9553_v18 = vrot.slane %v1211_v27, %v8971_v15  ;;  %v1229_v32 = vunpack.i.h.s16 %v9539_v0 }
  0x5b   : > { %v9542_v56 = vrot.slane %v1479_v14, %v8971_v15  ;;  %v1496_v21 = vcombine.low %v1458_v51, %v9122_v62  ;;  %v9559_v16 = vcombine.low %v11365_v44, %v9323_v36  ;;  %v9563_v14 = vcombine.high %v9539_v0, %v9539_v0 }
  0x5c   : > { %v8094_v51 = vpack.i.b16 %v9539_v0, %v9234_v19  ;;  %v9572_v47 = vcombine.high %v9553_v18, %v9553_v18  ;;  %v1231_v59 = vunpack.i.h.s16 %v9553_v18  ;;  %v1513_v34 = vcombine.low %v9546_v22, %v9348_v46 }
  0x5d   : > { %11366 = vst [vmem:[#allocation14_spill] sm:$0xff] %v9559_v16  ;;  %v1504_v36 = vrot.slane %v1496_v21, %v8971_v15  ;;  %v1233_v27 = vunpack.i.h.s16 %v9563_v14  ;;  %v8095_v44 = vpack.i.b16 %v9553_v18, %v1229_v32  ;;  %v1459_v50 = vpack.i.b16 %v1229_v32, %v429_v31 }
  0x5e   : > { %v1342_v20 = vcombine.low %v9218_v3, %v8094_v51  ;;  %v8096_v28 = vpack.i.b16 %v9563_v14, %v1231_v59  ;;  %v9586_v16 = vrot.slane %v1513_v34, %v8971_v15  ;;  %v1530_v21 = vcombine.low %v9553_v18, %v9563_v14  ;;  %v11368_v34 = vld [vmem:[#allocation4_spill] sm:$0xff] }
  0x5f   : > { %v1512_v37 = vcombine.low %v9304_v42, %v1504_v36  ;;  %v9591_v46 = vpack.i.b16 %v9572_v47, %v1233_v27  ;;  %v1529_v3 = vcombine.low %v9320_v55, %v1459_v50  ;;  %v1551_v31 = vrot.slane %v9572_v47, %v8971_v15 }
  0x60   : > { %v1350_v13 = vrot.slane %v1342_v20, %v8971_v15  ;;  %v11367_v32 = vcombine.low %v9401_v24, %v9387_v63  ;;  %v1343_v51 = vcombine.low %v8095_v44, %v8096_v28  ;;  %v9605_v36 = vrot.slane %v1530_v21, %v8971_v15 }
  0x61   : > { %v9602_v59 = vrot.slane %v1512_v37, %v8971_v15  ;;  %v8108_v20 = vpack.i.b16 %v9122_v62, %v9376_v26  ;;  %v1364_v63 = vrot.slane %v9591_v46, %v8971_v15  ;;  %v1537_v24 = vrot.slane %v1529_v3, %v8971_v15 }
  0x62   : > { %8455 = vmatmul.mubr.msk.bf16.vlgmr.msra.gmra.mrb[0].mxu0 %vm588_vm2, %v11367_v32  ;;  %v9616_v50 = vrot.slane %v1551_v31, %v8971_v15  ;;  %v9621_v27 = vrot.slane %v1343_v51, %v8971_v15  ;;  %v11369_v44 = vunpack.i.h.s16 %v9178_v48  ;;  %v8110_v51 = vpack.i.b16 %v9553_v18, %v9435_v10 }
  0x63   : > { %8467 = vmatpush3.bf16.msra.mxu0 %v11368_v34  ;;  %8458 = vmatprep.mubr.msk.bf16.mxu0 %vm8897_vm1, %v11356_v23  ;;  %v1698_v32 = vcombine.low %v8108_v20, %v9162_v7  ;;  %v1379_v3 = vrot.slane %v1364_v63, %v8971_v15  ;;  %v1552_v31 = vcombine.low %v1537_v24, %v9605_v36  ;;  %v11370_v24 = vld [vmem:[#allocation6_spill] sm:$0xff] }
  0x64   : > { %8480 = vmatprep.subr.bf16.mxu0 %v11356_v23  ;;  %v8109_v21 = vpack.i.b16 %v9427_v29, %v11369_v44  ;;  %v8105_v34 = vpack.c.bf16 %v9478_v25, %v9478_v25  ;;  %v1365_v37 = vcombine.low %v1350_v13, %v9621_v27  ;;  %v1732_v29 = vcombine.low %v8096_v28, %v9591_v46 }
  0x65   : > { %v1706_v48 = vrot.slane %v1698_v32, %v8971_v15  ;;  %v9640_v7 = vrot.slane %v1552_v31, %v8971_v15  ;;  %v1731_v63 = vcombine.low %v9234_v19, %v8110_v51  ;;  %v1882_v25 = vcombine.low %v9015_v45, %v9034_v52 }
  0x66   : > { %v1699_v26 = vcombine.low %v9190_v4, %v8109_v21  ;;  %v1650_v20 = vrot.slane %v8105_v34, %v8971_v15  ;;  %v1372_v10 = vrot.slane %v1365_v37, %v8971_v15  ;;  %v1746_v44 = vrot.slane %v1732_v29, %v8971_v15  ;;  %v213_v29 = vld [vmem:[%s8956_s24 + $0x70] sm:$0xff] }
  0x67   : > { %v1714_v4 = vcombine.low %v11370_v24, %v1706_v48  ;;  %v1567_v28 = vcombine.low %v9640_v7, %v9616_v50  ;;  %v1739_v19 = vrot.slane %v1731_v63, %v8971_v15  ;;  %v1885_v45 = vcombine.low %v9278_v33, %v9109_v49  ;;  %v11377_v24 = vld [vmem:[#allocation12_spill] sm:$0xff]  ;;  %v231_v7 = vld [vmem:[%s11322_s1 + $0x20] sm:$0xf] }
  0x68   : > { %v1713_v13 = vrot.slane %v1699_v26, %v8971_v15  ;;  %v9653_v21 = vrot.slane %v1650_v20, %v8971_v15  ;;  %v11371_v52 = vcombine.low %v9432_v39, %v9481_v58  ;;  %v9662_v37 = vcombine.low %v1372_v10, %v1379_v3  ;;  %v11372_v26 = vld [vmem:[#allocation9_spill] sm:$0xff]  ;;  %v11374_v39 = vld [vmem:[#allocation10_spill] sm:$0xff] }
  0x69   : > { %v1722_v31 = vrot.slane %v1714_v4, %v8971_v15  ;;  %v1892_v34 = vrot.slane %v1882_v25, %v8971_v15  ;;  %v11373_v51 = vunpack.i.h.s16 %v9572_v47  ;;  %v1754_v49 = vcombine.low %v1739_v19, %v1746_v44  ;;  %v9679_v20 = vld [vmem:[%s8956_s24 + $0x78] sm:$0x1]  ;;  %v11378_v4 = vld [vmem:[#allocation11_spill] sm:$0xff] }
  0x6a   : > { %8459 = vmatmul.mubr.msk.bf16.gmra.mrb[4].mxu0 %vm588_vm2, %v11371_v52  ;;  %v1715_v32 = vcombine.low %v1713_v13, %v11372_v26  ;;  %v11375_v58 = vcombine.low %v11374_v39, %v9268_v11  ;;  %v1913_v48 = vrot.slane %v1885_v45, %v8971_v15  ;;  %v11376_v63 = vcombine.low %v9486_v5, %v9519_v40 }
  0x6b   : > { %8462 = vmatprep.mubr.msk.bf16.mxu0 %vm8897_vm1, %v11356_v23  ;;  %v8111_v33 = vpack.i.b16 %v9653_v21, %v11373_v51  ;;  %v1914_v13 = vcombine.low %v1892_v34, %v9367_v54  ;;  %v1931_v44 = vcombine.low %v11378_v4, %v11377_v24  ;;  %v1761_v19 = vrot.slane %v1754_v49, %v8971_v15 }
  0x6c   : > { %v1906_v3 = vrot.slane %v11375_v58, %v8971_v15  ;;  %v9685_v25 = vrot.slane %v11376_v63, %v8971_v15  ;;  %v1729_v10 = vrot.slane %v1715_v32, %v8971_v15  ;;  %v1932_v52 = vcombine.low %v9539_v0, %v9553_v18  ;;  %v11381_v58 = vld [vmem:[#allocation7_spill] sm:$0xff] }
  0x6d   : > { %v1753_v11 = vrot.slane %v8111_v33, %v8971_v15  ;;  %v9698_v5 = vrot.slane %v1914_v13, %v8971_v15  ;;  %v1939_v40 = vrot.slane %v1931_v44, %v8971_v15  ;;  %v222_v54 = vpack.c.bf16 %v9679_v20, %v213_v29  ;;  %v11379_v33 = vld [vmem:[#allocation8_spill] sm:$0xff] }
  0x6e   : > { %v1915_v45 = vcombine.low %v1906_v3, %v1913_v48  ;;  %v9695_v26 = vcombine.low %v1722_v31, %v1729_v10  ;;  %v1946_v51 = vrot.slane %v1932_v52, %v8971_v15  ;;  %v2099_v49 = vcombine.low %v9226_v17, %v11379_v33 }
  0x6f   : > { %v1768_v32 = vrot.slane %v1753_v11, %v8971_v15  ;;  %v11380_v0 = vcombine.low %v9392_v53, %v9122_v62  ;;  %v1947_v31 = vcombine.low %v9404_v2, %v1939_v40  ;;  %v1852_v39 = vrot.slane %v222_v54, %v8971_v15 }
  0x70   : > { %v9704_v34 = vrot.slane %v1915_v45, %v8971_v15  ;;  %v2116_v3 = vcombine.low %v11381_v58, %v9214_v57  ;;  %v1948_v63 = vcombine.low %v9464_v60, %v1946_v51  ;;  %v9723_v17 = vrot.slane %v2099_v49, %v8971_v15 }
  0x71   : > { %v2296_v18 = vrot.slane %v11380_v0, %v8971_v15  ;;  %v9717_v48 = vcombine.low %v1761_v19, %v1768_v32  ;;  %v11382_v62 = vcombine.low %v9515_v9, %v9489_v30  ;;  %v9730_v53 = vrot.slane %v1947_v31, %v8971_v15 }
  0x72   : > { %v1930_v29 = vcombine.low %v9698_v5, %v9704_v34  ;;  %v1853_v2 = vcombine.high %v1852_v39, %v1852_v39  ;;  %v1860_v10 = vrot.slane %v1852_v39, %v8971_v15  ;;  %v8122_v13 = vcombine.high %v9201_v38, %v9214_v57 }
  0x73   : > { %8463 = vmatmul.mubr.msk.bf16.gmra.mrb[8].mxu0 %vm588_vm2, %v11382_v62  ;;  %v9738_v60 = vrot.slane %v1948_v63, %v8971_v15  ;;  %v2115_v30 = vcombine.low %v9723_v17, %v9685_v25  ;;  %v2124_v9 = vrot.slane %v2116_v3, %v8971_v15  ;;  %v2297_v24 = vcombine.low %v9287_v61, %v9418_v8  ;;  %v2907_v17 = vld [vmem:[%s11323_s2 + $0x4] sm:$0xf] }
  0x74   : > { %8468 = vmatprep.mubr.msk.bf16.mxu0 %vm8897_vm1, %v11356_v23  ;;  %v1867_v4 = vrot.slane %v1853_v2, %v8971_v15  ;;  %v1868_v44 = vcombine.high %v1860_v10, %v1860_v10  ;;  %v1871_v11 = vunpack.i.h.s16 %v1860_v10  ;;  %v8115_v38 = vpack.i.b16 %v1860_v10, %v9572_v47  ;;  %v11384_v10 = vld [vmem:[#allocation5_spill] sm:$0xff] }
  0x75   : > { %v1963_v57 = vcombine.low %v9730_v53, %v9738_v60  ;;  %v2131_v19 = vrot.slane %v8122_v13, %v8971_v15  ;;  %v2132_v45 = vcombine.low %v9494_v6, %v2124_v9  ;;  %v2298_v52 = vcombine.low %v9304_v42, %v2296_v18  ;;  %v2502_v60 = vld [vmem:[#allocation2 + $0x14] sm:$0x1] }
  0x76   : > { %v1869_v40 = vcombine.high %v1867_v4, %v1867_v4  ;;  %v1873_v54 = vunpack.i.h.s16 %v1867_v4  ;;  %v1875_v32 = vunpack.i.h.s16 %v1868_v44  ;;  %v8116_v51 = vpack.i.b16 %v1867_v4, %v1871_v11 }
  0x77   : > { %v1964_v61 = vcombine.low %v9563_v14, %v8115_v38  ;;  %v2133_v8 = vcombine.low %v2131_v19, %v9621_v27  ;;  %v9755_v33 = vrot.slane %v2132_v45, %v8971_v15  ;;  %v11383_v49 = vunpack.i.h.s16 %v9572_v47 }
  0x78   : > { %v8117_v31 = vpack.i.b16 %v1868_v44, %v1873_v54  ;;  %v8118_v39 = vpack.i.b16 %v1869_v40, %v1875_v32  ;;  %v2150_v58 = vcombine.low %v1867_v4, %v1868_v44  ;;  %v2171_v6 = vrot.slane %v1869_v40, %v8971_v15 }
  0x79   : > { %v2079_v0 = vpack.i.b16 %v1871_v11, %v11383_v49  ;;  %v1972_v42 = vrot.slane %v1964_v61, %v8971_v15  ;;  %v9762_v18 = vrot.slane %v2133_v8, %v8971_v15  ;;  %v9766_v27 = vrot.slane %v2297_v24, %v8971_v15 }
  0x7a   : > { %v1965_v3 = vcombine.low %v8116_v51, %v8117_v31  ;;  %v1986_v63 = vrot.slane %v8118_v39, %v8971_v15  ;;  %v2164_v62 = vrot.slane %v2150_v58, %v8971_v15  ;;  %v9773_v2 = vrot.slane %v2171_v6, %v8971_v15 }
  0x7b   : > { %v2149_v14 = vcombine.low %v9591_v46, %v2079_v0  ;;  %8469 = vmatmul.mubr.msk.bf16.vlgmr.msra.gmra.mrb[0].mxu0 %vm588_vm2, %v9501_v1  ;;  %v2148_v46 = vcombine.low %v9755_v33, %v9762_v18  ;;  %v9782_v1 = vrot.slane %v2298_v52, %v8971_v15  ;;  %v2314_v44 = vcombine.low %v9443_v41, %v9317_v12  ;;  %v2510_v18 = vld [vmem:[#allocation2 + $0x24] sm:$0x1] }
  0x7c   : > { %8481 = vmatpush3.bf16.msra.mxu0 %v11384_v10  ;;  %8472 = vmatprep.mubr.msk.bf16.mxu0 %vm8897_vm1, %v11356_v23  ;;  %v1979_v9 = vrot.slane %v1965_v3, %v8971_v15  ;;  %v2001_v24 = vrot.slane %v1986_v63, %v8971_v15  ;;  %v2315_v11 = vcombine.low %v9320_v55, %v9454_v43  ;;  %v2078_v41 = vunpack.i.h.s16 %v1869_v40 }
  0x7d   : > { %v2157_v13 = vrot.slane %v2149_v14, %v8971_v15  ;;  %8494 = vmatprep.subr.bf16.mxu0 %v11356_v23  ;;  %v2313_v19 = vcombine.low %v9766_v27, %v9782_v1  ;;  %v8126_v45 = vpack.c.bf16 %v9679_v20, %v9679_v20  ;;  %v8127_v52 = vpack.i.b16 %v1867_v4, %v9653_v21  ;;  %v2518_v1 = vld [vmem:[#allocation2 + $0x34] sm:$0x1] }
  0x7e   : > { %v1987_v54 = vcombine.low %v1972_v42, %v1979_v9  ;;  %v2322_v32 = vrot.slane %v2314_v44, %v8971_v15  ;;  %v2329_v51 = vrot.slane %v2315_v11, %v8971_v15  ;;  %v2348_v61 = vcombine.low %v8117_v31, %v8118_v39  ;;  %v9952_v11 = vld [vmem:[%s11324_s3 + $0x1] ss:$0 sm:$0xff] }
  0x7f   : > { %v2172_v38 = vcombine.low %v2157_v13, %v2164_v62  ;;  %v2270_v55 = vrot.slane %v8126_v45, %v8971_v15  ;;  %v2347_v43 = vcombine.low %v9572_v47, %v8127_v52  ;;  %v11385_v62 = vld [vmem:[#allocation13_spill] sm:$0xff]  ;;  %v8899_v25 = vmov 0  }
  0x80   : > { %v1994_v8 = vrot.slane %v1987_v54, %v8971_v15  ;;  %v2330_v20 = vcombine.low %v9546_v22, %v2322_v32  ;;  %v2331_v21 = vcombine.low %v2329_v51, %v9605_v36  ;;  %v2362_v4 = vrot.slane %v2348_v61, %v8971_v15  ;;  %2497 = vst.msk [vmem:[#allocation2 + $0x8] sm:$0xf] %vm2489_vm3, %v8899_v25 }
  0x81   : > { %v9799_v12 = vrot.slane %v2172_v38, %v8971_v15  ;;  %v2277_v0 = vrot.slane %v2270_v55, %v8971_v15  ;;  %v2355_v31 = vrot.slane %v2347_v43, %v8971_v15  ;;  %2501 = vst.msk [vmem:[#allocation2 + $0x10] sm:$0xf] %vm2489_vm3, %v8899_v25  ;;  %2490 = vst.msk [vmem:[#allocation2] sm:$0xf] %vm2489_vm3, %v8899_v25  ;;  %v11389_v5 = vmov 0 }
  0x82   : > { %v2002_v40 = vcombine.low %v1994_v8, %v2001_v24  ;;  %v2338_v47 = vrot.slane %v2330_v20, %v8971_v15  ;;  %v2345_v39 = vrot.slane %v2331_v21, %v8971_v15  ;;  %2505 = vst.msk [vmem:[#allocation2 + $0x18] sm:$0xf] %vm2489_vm3, %v8899_v25  ;;  %2509 = vst.msk [vmem:[#allocation2 + $0x20] sm:$0xf] %vm2489_vm3, %v8899_v25  ;;  %v11390_v5 = vsel %vm9921_vm6, 4294967295, %v11389_v5 }
  0x83   : > { %v2187_v49 = vcombine.low %v9799_v12, %v9773_v2  ;;  %8473 = vmatmul.mubr.msk.bf16.gmra.mrb[4].mxu0 %vm588_vm2, %v9550_v35  ;;  %v8128_v22 = vpack.i.b16 %v2277_v0, %v2078_v41  ;;  %v2370_v36 = vcombine.low %v2355_v31, %v2362_v4  ;;  %v228_v35 = vld [vmem:[%s11322_s1 + $0x14] sm:$0xf]  ;;  %v11386_v2 = vcombine.low %v9542_v56, %v11385_v62  ;;  %v229_v56 = vld [vmem:[%s11322_s1 + $0x18] sm:$0xf]  ;;  %v9947_v24 = vld [vmem:[%s11324_s3] ss:$0 sm:$0xff] }
  0x84   : > { %8476 = vmatprep.mubr.msk.bf16.mxu0 %vm8897_vm1, %v11356_v23  ;;  %v2346_v58 = vcombine.low %v2338_v47, %v2345_v39  ;;  %v1780_v63 = vsel %vm598_vm0, %v228_v35, 0  ;;  %v2013_v10 = vsel %vm598_vm0, %v229_v56, 0  ;;  %2513 = vst.msk [vmem:[#allocation2 + $0x28] sm:$0xf] %vm2489_vm3, %v8899_v25  ;;  %2517 = vst.msk [vmem:[#allocation2 + $0x30] sm:$0xf] %vm2489_vm3, %v8899_v25 }
  0x85   : > { %v2369_v6 = vrot.slane %v8128_v22, %v8971_v15  ;;  %v2377_v42 = vrot.slane %v2370_v36, %v8971_v15  ;;  %2521 = vst.msk [vmem:[#allocation2 + $0x38] sm:$0xf] %vm2489_vm3, %v8899_v25  ;;  %11391 = vst [vmem:[#allocation4_spill] sm:$0xff] %v11390_v5  ;;  %v3287_v53 = vsel %vm598_vm0, %v2907_v17, 0  ;;  %v2511_v27 = vsel %vm9921_vm6, 0, %v2510_v18 }
  0x86   : > { %8551 = vmatpush3.bf16.msra.mxu1 %v3287_v53  ;;  %2512 = vst [vmem:[#allocation2 + $0x24] sm:$0x1] %v2511_v27  ;;  %v2519_v9 = vsel %vm9921_vm6, 0, %v2518_v1  ;;  %v8900_v41 = vmov 1935823168  }
  0x87   : > { %v2384_v14 = vrot.slane %v2369_v6, %v8971_v15  ;;  %8564 = vmatprep.subr.bf16.mxu1 %v11356_v23  ;;  %2520 = vst [vmem:[#allocation2 + $0x34] sm:$0x1] %v2519_v9  ;;  %v2737_v55 = vunpack.c.l.s4 %v8900_v41 }
  0x89   : > { %v2385_v3 = vcombine.low %v2377_v42, %v2384_v14 }
  0x8b   : > { %8477 = vmatmul.mubr.msk.bf16.gmra.mrb[8].mxu0 %vm588_vm2, %v9662_v37  ;;  %v11387_v37 = vcombine.low %v9602_v59, %v9586_v16  ;;  %v11388_v16 = vld [vmem:[#allocation14_spill] sm:$0xff] }
  0x8c   : > { %8482 = vmatprep.mubr.msk.bf16.mxu0 %vm8897_vm1, %v11356_v23  ;;  %v230_v59 = vld [vmem:[%s11322_s1 + $0x1c] sm:$0xf] }
  0x8d   : > { %v2198_v50 = vsel %vm598_vm0, %v230_v59, 0 }
  0x93   : > { %8483 = vmatmul.mubr.msk.bf16.vlgmr.msra.gmra.mrb[0].mxu0 %vm588_vm2, %v11386_v2  ;;  %v11392_v2 = vld [vmem:[#allocation3_spill] sm:$0xff] }
  0x94   : > { %8495 = vmatpush3.bf16.msra.mxu0 %v1780_v63  ;;  %8486 = vmatprep.mubr.msk.bf16.mxu0 %vm8897_vm1, %v11356_v23 }
  0x95   : > { %8508 = vmatprep.subr.bf16.mxu0 %v11356_v23 }
  0x9b   : > { %8487 = vmatmul.mubr.msk.bf16.gmra.mrb[4].mxu0 %vm588_vm2, %v11387_v37 }
  0x9c   : > { %8490 = vmatprep.mubr.msk.bf16.mxu0 %vm8897_vm1, %v11356_v23 }
  0xa3   : > { %8491 = vmatmul.mubr.msk.bf16.gmra.mrb[8].mxu0 %vm588_vm2, %v1567_v28  ;;  %v2396_v28 = vsel %vm598_vm0, %v231_v7, 0 }
  0xa4   : > { %8496 = vmatprep.mubr.msk.bf16.mxu0 %vm8897_vm1, %v11356_v23 }
  0xab   : > { %8497 = vmatmul.mubr.msk.bf16.vlgmr.msra.gmra.mrb[0].mxu0 %vm588_vm2, %v11388_v16 }
  0xac   : > { %8509 = vmatpush3.bf16.msra.mxu0 %v2013_v10  ;;  %8500 = vmatprep.mubr.msk.bf16.mxu0 %vm8897_vm1, %v11356_v23 }
  0xad   : > { %8522 = vmatprep.subr.bf16.mxu0 %v11356_v23 }
  0xb3   : > { %8501 = vmatmul.mubr.msk.bf16.gmra.mrb[4].mxu0 %vm588_vm2, %v9695_v26  ;;  %v2494_v26 = vld [vmem:[#allocation2 + $0x4] sm:$0x1] }
  0xb4   : > { %8504 = vmatprep.mubr.msk.bf16.mxu0 %vm8897_vm1, %v11356_v23  ;;  %v2495_v34 = vsel %vm9921_vm6, 0, %v2494_v26 }
  0xb5   : > { %2496 = vst [vmem:[#allocation2 + $0x4] sm:$0x1] %v2495_v34 }
  0xbb   : > { %8505 = vmatmul.mubr.msk.bf16.gmra.mrb[8].mxu0 %vm588_vm2, %v9717_v48  ;;  %v2498_v48 = vld [vmem:[#allocation2 + $0xc] sm:$0x1] }
  0xbc   : > { %8510 = vmatprep.mubr.msk.bf16.mxu0 %vm8897_vm1, %v11356_v23 }
  0xc3   : > { %8511 = vmatmul.mubr.msk.bf16.vlgmr.msra.gmra.mrb[0].mxu0 %vm588_vm2, %v1930_v29  ;;  %v2499_v29 = vsel %vm9921_vm6, 0, %v2498_v48 }
  0xc4   : > { %8523 = vmatpush3.bf16.msra.mxu0 %v2198_v50  ;;  %8514 = vmatprep.mubr.msk.bf16.mxu0 %vm8897_vm1, %v11356_v23  ;;  %2500 = vst [vmem:[#allocation2 + $0xc] sm:$0x1] %v2499_v29 }
  0xc5   : > { %8536 = vmatprep.subr.bf16.mxu0 %v11356_v23 }
  0xcb   : > { %8515 = vmatmul.mubr.msk.bf16.gmra.mrb[4].mxu0 %vm588_vm2, %v1963_v57  ;;  %v2506_v57 = vld [vmem:[#allocation2 + $0x1c] sm:$0x1] }
  0xcc   : > { %8518 = vmatprep.mubr.msk.bf16.mxu0 %vm8897_vm1, %v11356_v23  ;;  %v2507_v33 = vsel %vm9921_vm6, 0, %v2506_v57 }
  0xcd   : > { %2508 = vst [vmem:[#allocation2 + $0x1c] sm:$0x1] %v2507_v33 }
  0xd3   : > { %8519 = vmatmul.mubr.msk.bf16.gmra.mrb[8].mxu0 %vm588_vm2, %v2002_v40  ;;  %v2738_v40 = vunpack.c.0.s8 %v2737_v55 }
  0xd4   : > { %8524 = vmatprep.mubr.msk.bf16.mxu0 %vm8897_vm1, %v11356_v23 }
  0xd5   : > { %v9969_v37 = vsub.s32 %v2738_v40, %v11392_v2 }
  0xdb   : > { %8525 = vmatmul.mubr.msk.bf16.vlgmr.msra.gmra.mrb[0].mxu0 %vm588_vm2, %v2115_v30  ;;  %v2503_v30 = vsel %vm9921_vm6, 0, %v2502_v60 }
  0xdc   : > { %8537 = vmatpush3.bf16.msra.mxu0 %v2396_v28  ;;  %8528 = vmatprep.mubr.msk.bf16.mxu0 %vm8897_vm1, %v11356_v23  ;;  %2504 = vst [vmem:[#allocation2 + $0x14] sm:$0x1] %v2503_v30 }
  0xe3   : > { %8529 = vmatmul.mubr.msk.bf16.gmra.mrb[4].mxu0 %vm588_vm2, %v2148_v46  ;;  %v2514_v46 = vld [vmem:[#allocation2 + $0x2c] sm:$0x1] }
  0xe4   : > { %8532 = vmatprep.mubr.msk.bf16.mxu0 %vm8897_vm1, %v11356_v23  ;;  %v2515_v13 = vsel %vm9921_vm6, 0, %v2514_v46 }
  0xe5   : > { %2516 = vst [vmem:[#allocation2 + $0x2c] sm:$0x1] %v2515_v13 }
  0xeb   : > { %8533 = vmatmul.mubr.msk.bf16.gmra.mrb[8].mxu0 %vm588_vm2, %v2187_v49 }
  0xec   : > { %8538 = vmatprep.mubr.msk.bf16.mxu0 %vm8897_vm1, %v11356_v23 }
  0xf3   : > { %8539 = vmatmul.mubr.msk.bf16.vlgmr.msra.gmra.mrb[0].mxu0 %vm588_vm2, %v2313_v19 }
  0xf4   : > { %8542 = vmatprep.mubr.msk.bf16.mxu0 %vm8897_vm1, %v11356_v23 }
  0xfb   : > { %8543 = vmatmul.mubr.msk.bf16.gmra.mrb[4].mxu0 %vm588_vm2, %v2346_v58 }
  0xfc   : > { %8546 = vmatprep.mubr.msk.bf16.mxu0 %vm8897_vm1, %v11356_v23 }
 0x103   : > { %8547 = vmatmul.mubr.msk.bf16.gmra.mrb[8].mxu0 %vm588_vm2, %v2385_v3  ;;  %v8149_v3 = vld.sshfl [vmem:[#allocation2] sm:$0x33 pattern:$0x75316420] }
 0x104   : > { %v2934_v34 = vcombine.high %v8149_v3, %v8149_v3  ;;  %v9974_v9 = vrot.slane %v8149_v3, %v8971_v15  ;;  %v2891_v3 = vld [vmem:[#allocation2 + $0x10] sm:$0xf] }
 0x1c6   : > { %v2432_v44 = vpop.f32.mrb[0].mxu0 }
 0x1c7   : > { %v2466_v38 = vmul.f32 %v9947_v24, %v2432_v44  ;;  %v8540_v19 = vpop.f32.mrb[1].mxu0 }
 0x1c8   : > { %v2435_v45 = vpop.f32.mrb[2].mxu0 }
 0x1c9   : > { %v2477_v52 = vadd.f32 %v9952_v11, %v2466_v38  ;;  %v2467_v54 = vmul.f32 %v9947_v24, %v2435_v45  ;;  %v8541_v32 = vpop.f32.mrb[3].mxu0 }
 0x1ca   : > { %v3072_v32 = vunpack.i.h.s16 %v9974_v9 }
 0x1cb   : > { %v2478_v51 = vadd.f32 %v9952_v11, %v2467_v54  ;;  %v2483_v61 = vmax.f32 %v2477_v52, 0.0  ;;  %v9978_v54 = vrot.slane %v2934_v34, %v8971_v15 }
 0x1cd   : > { %v2484_v12 = vmax.f32 %v2478_v51, 0.0 }
 0x1ce   : > { %v2440_v43 = vpop.f32.mrb[4].mxu0 }
 0x1cf   : > { %v2525_v8 = vpack.c.bf16 %v2484_v12, %v2483_v61  ;;  %v8134_v20 = vpack.c.bf16 %v2484_v12, %v2484_v12  ;;  %v2468_v21 = vmul.f32 %v9947_v24, %v2440_v43  ;;  %v8544_v4 = vpop.f32.mrb[5].mxu0 }
 0x1d0   : > { %v2443_v49 = vpop.f32.mrb[6].mxu0 }
 0x1d1   : > { %v2538_v0 = vrot.slane %v2525_v8, %v8971_v15  ;;  %v2545_v31 = vrot.slane %v8134_v20, %v8971_v15  ;;  %v2469_v47 = vmul.f32 %v9947_v24, %v2443_v49  ;;  %v8545_v39 = vpop.f32.mrb[7].mxu0  ;;  %v2479_v22 = vadd.f32 %v9952_v11, %v2468_v21 }
 0x1d3   : > { %v2546_v36 = vcombine.high %v2538_v0, %v2538_v0  ;;  %v2547_v58 = vcombine.high %v2545_v31, %v2545_v31  ;;  %v2554_v6 = vrot.slane %v2538_v0, %v8971_v15  ;;  %v2561_v42 = vrot.slane %v2545_v31, %v8971_v15 }
 0x1d4   : > { %v2480_v14 = vadd.f32 %v9952_v11, %v2469_v47  ;;  %v2485_v16 = vmax.f32 %v2479_v22, 0.0  ;;  %v2888_v47 = vld [vmem:[#allocation2 + $0x8] sm:$0xf] }
 0x1d5   : > { %v2568_v35 = vrot.slane %v2546_v36, %v8971_v15  ;;  %v2575_v63 = vrot.slane %v2547_v58, %v8971_v15  ;;  %v2576_v62 = vcombine.high %v2554_v6, %v2554_v6  ;;  %v2577_v56 = vcombine.high %v2561_v42, %v2561_v42 }
 0x1d6   : > { %v2669_v10 = vunpack.i.h.s16 %v2554_v6  ;;  %v2486_v59 = vmax.f32 %v2480_v14, 0.0  ;;  %v2448_v50 = vpop.f32.mrb[8].mxu0  ;;  %v8137_v29 = vpack.i.b16 %v2554_v6, %v2554_v6 }
 0x1d7   : > { %v2578_v7 = vcombine.high %v2568_v35, %v2568_v35  ;;  %v2671_v28 = vunpack.i.h.s16 %v2568_v35  ;;  %v2673_v25 = vunpack.i.h.s16 %v2576_v62  ;;  %v8548_v26 = vpop.f32.mrb[9].mxu0  ;;  %v2579_v48 = vcombine.high %v2575_v63, %v2575_v63 }
 0x1d8   : > { %v2526_v17 = vpack.c.bf16 %v2486_v59, %v2485_v16  ;;  %v8135_v53 = vpack.c.bf16 %v2486_v59, %v2486_v59  ;;  %v2451_v60 = vpop.f32.mrb[10].mxu0  ;;  %v8138_v57 = vpack.i.b16 %v2568_v35, %v2669_v10  ;;  %v2759_v46 = vcombine.low %v2561_v42, %v2577_v56 }
 0x1d9   : > { %v2675_v30 = vunpack.i.h.s16 %v2578_v7  ;;  %v8139_v33 = vpack.i.b16 %v2576_v62, %v2671_v28  ;;  %v8140_v18 = vpack.i.b16 %v2578_v7, %v2673_v25  ;;  %v8549_v27 = vpop.f32.mrb[11].mxu0  ;;  %v2683_v51 = vunpack.i.h.s16 %v2579_v48 }
 0x1da   : > { %v2587_v13 = vrot.slane %v2526_v17, %v8971_v15  ;;  %v2594_v1 = vrot.slane %v8135_v53, %v8971_v15  ;;  %v2773_v55 = vrot.slane %v2759_v46, %v9969_v37  ;;  %v8141_v31 = vpack.i.b16 %v2579_v48, %v2579_v48 }
 0x1db   : > { %v2714_v44 = vpack.i.b16 %v2675_v30, %v2675_v30  ;;  %v2734_v38 = vcombine.low %v8137_v29, %v8139_v33  ;;  %v2735_v19 = vcombine.low %v8138_v57, %v8140_v18  ;;  %v2470_v14 = vmul.f32 %v9947_v24, %v2448_v50 }
 0x1dc   : > { %v2595_v45 = vcombine.high %v2587_v13, %v2587_v13  ;;  %v2603_v52 = vrot.slane %v2587_v13, %v8971_v15  ;;  %v2596_v43 = vcombine.high %v2594_v1, %v2594_v1  ;;  %v2610_v35 = vrot.slane %v2594_v1, %v8971_v15 }
 0x1dd   : > { %v2742_v61 = vrot.slane %v2734_v38, %v9969_v37  ;;  %v2749_v12 = vrot.slane %v2735_v19, %v9969_v37  ;;  %v2758_v41 = vcombine.low %v2714_v44, %v2575_v63  ;;  %v3074_v59 = vunpack.i.h.s16 %v9978_v54  ;;  %v2894_v44 = vld [vmem:[#allocation2 + $0x18] sm:$0xf]  ;;  %v2897_v38 = vld [vmem:[#allocation2 + $0x20] sm:$0xf] }
 0x1de   : > { %v2617_v8 = vrot.slane %v2595_v45, %v8971_v15  ;;  %v2625_v20 = vcombine.high %v2603_v52, %v2603_v52  ;;  %v2685_v49 = vunpack.i.h.s16 %v2603_v52  ;;  %v8142_v0 = vpack.i.b16 %v2603_v52, %v2683_v51 }
 0x1df   : > { %v2750_v21 = vcombine.low %v2742_v61, %v2749_v12  ;;  %v2766_v4 = vrot.slane %v2758_v41, %v9969_v37  ;;  %v2624_v63 = vrot.slane %v2596_v43, %v8971_v15  ;;  %v10002_v50 = vcombine.high %v9974_v9, %v9974_v9 }
 0x1e0   : > { %v2627_v39 = vcombine.high %v2617_v8, %v2617_v8  ;;  %v2687_v22 = vunpack.i.h.s16 %v2617_v8  ;;  %v2689_v36 = vunpack.i.h.s16 %v2625_v20  ;;  %v8143_v42 = vpack.i.b16 %v2617_v8, %v2685_v49 }
 0x1e1   : > { %v2757_v58 = vrot.slane %v2750_v21, %v9969_v37  ;;  %v2774_v6 = vcombine.low %v2766_v4, %v2773_v55  ;;  %v2481_v34 = vadd.f32 %v9952_v11, %v2470_v14  ;;  %v2471_v48 = vmul.f32 %v9947_v24, %v2451_v60 }
 0x1e2   : > { %v8144_v62 = vpack.i.b16 %v2625_v20, %v2687_v22  ;;  %v2722_v2 = vpack.i.b16 %v2689_v36, %v2689_v36  ;;  %v2782_v16 = vcombine.low %v8141_v31, %v8143_v42  ;;  %v2807_v25 = vcombine.low %v2627_v39, %v2624_v63 }
 0x1e3   : > { %v2781_v56 = vrot.slane %v2774_v6, %v9969_v37  ;;  %v2889_v10 = vsel %vm9988_vm8, %v2757_v58, %v2888_v47  ;;  %v2482_v57 = vadd.f32 %v9952_v11, %v2471_v48  ;;  %v10015_v33 = vcombine.high %v9978_v54, %v9978_v54 }
 0x1e4   : > { %2890 = vst [vmem:[#allocation2 + $0x8] sm:$0xf] %v2889_v10  ;;  %v2783_v7 = vcombine.low %v8142_v0, %v8144_v62  ;;  %v2806_v28 = vcombine.low %v2722_v2, %v2610_v35  ;;  %v2790_v29 = vrot.slane %v2782_v16, %v9969_v37  ;;  %v2821_v30 = vrot.slane %v2807_v25, %v9969_v37 }
 0x1e5   : > { %v2892_v26 = vsel %vm9988_vm8, %v2781_v56, %v2891_v3  ;;  %v8155_v18 = vpack.i.b16 %v9978_v54, %v3072_v32  ;;  %v8156_v27 = vpack.i.b16 %v10002_v50, %v3074_v59  ;;  %v3076_v46 = vunpack.i.h.s16 %v10002_v50 }
 0x1e6   : > { %2893 = vst [vmem:[#allocation2 + $0x10] sm:$0xf] %v2892_v26  ;;  %v2797_v17 = vrot.slane %v2783_v7, %v9969_v37  ;;  %v2814_v53 = vrot.slane %v2806_v28, %v9969_v37  ;;  %v2626_v13 = vcombine.high %v2610_v35, %v2610_v35  ;;  %v2628_v1 = vcombine.high %v2624_v63, %v2624_v63  ;;  %v2906_v26 = vld [vmem:[%s11323_s2] sm:$0xf] }
 0x1e7   : > { %v2487_v19 = vmax.f32 %v2481_v34, 0.0  ;;  %v2488_v45 = vmax.f32 %v2482_v57, 0.0  ;;  %v3113_v32 = vunpack.i.h.s16 %v10015_v33  ;;  %v3140_v41 = vcombine.low %v8155_v18, %v8156_v27 }
 0x1e8   : > { %v2798_v24 = vcombine.low %v2790_v29, %v2797_v17  ;;  %v2822_v60 = vcombine.low %v2814_v53, %v2821_v30  ;;  %v2697_v21 = vunpack.i.h.s16 %v2626_v13  ;;  %v2699_v4 = vunpack.i.h.s16 %v2628_v1  ;;  %v10061_v53 = vld.sshfl [vmem:[#allocation2] sm:$0x32 pattern:$0x75316420] }
 0x1e9   : > { %v2527_v51 = vpack.c.bf16 %v2488_v45, %v2487_v19  ;;  %v8136_v61 = vpack.c.bf16 %v2488_v45, %v2488_v45  ;;  %v8157_v31 = vpack.i.b16 %v10015_v33, %v3076_v46  ;;  %v8145_v3 = vpack.i.b16 %v2626_v13, %v2626_v13 }
 0x1ea   : > { %v2805_v11 = vrot.slane %v2798_v24, %v9969_v37  ;;  %v2829_v52 = vrot.slane %v2822_v60, %v9969_v37  ;;  %v3150_v63 = vrot.slane %v3140_v41, %v8971_v15  ;;  %v3367_v62 = vcombine.low %v9974_v9, %v9978_v54 }
 0x1eb   : > { %v8150_v12 = vld.sshfl [vmem:[#allocation2 + $0x8] sm:$0x33 pattern:$0x75316420]  ;;  %v2636_v49 = vrot.slane %v2527_v51, %v8971_v15  ;;  %v2643_v47 = vrot.slane %v8136_v61, %v8971_v15  ;;  %v8146_v59 = vpack.i.b16 %v2628_v1, %v2697_v21  ;;  %v3514_v13 = vsel %vm598_vm0, %v2906_v26, 0 }
 0x1ec   : > { %v2895_v55 = vsel %vm9988_vm8, %v2805_v11, %v2894_v44  ;;  %v2898_v43 = vsel %vm9988_vm8, %v2829_v52, %v2897_v38  ;;  %v2958_v8 = vcombine.high %v8150_v12, %v8150_v12  ;;  %v10028_v20 = vrot.slane %v8150_v12, %v8971_v15 }
 0x1ed   : > { %2896 = vst [vmem:[#allocation2 + $0x18] sm:$0xf] %v2895_v55  ;;  %2899 = vst [vmem:[#allocation2 + $0x20] sm:$0xf] %v2898_v43  ;;  %v2644_v58 = vcombine.high %v2636_v49, %v2636_v49  ;;  %v2651_v6 = vrot.slane %v2636_v49, %v8971_v15  ;;  %v2658_v7 = vrot.slane %v2643_v47, %v8971_v15 }
 0x1ee   : > { %v8151_v0 = vld.sshfl [vmem:[#allocation2 + $0x10] sm:$0x33 pattern:$0x75316420]  ;;  %v10034_v39 = vrot.slane %v2958_v8, %v8971_v15  ;;  %v10042_v42 = vcombine.high %v10028_v20, %v10028_v20  ;;  %v3079_v14 = vunpack.i.h.s16 %v10028_v20  ;;  %v3604_v45 = vcombine.high %v10061_v53, %v10061_v53 }
 0x1ef   : > { %v2982_v22 = vcombine.high %v8151_v0, %v8151_v0  ;;  %v10037_v36 = vrot.slane %v8151_v0, %v8971_v15  ;;  %v2665_v2 = vrot.slane %v2644_v58, %v8971_v15  ;;  %v2666_v56 = vcombine.high %v2651_v6, %v2651_v6  ;;  %v2900_v0 = vld [vmem:[#allocation2 + $0x28] sm:$0xf] }
 0x1f0   : > { %v2701_v10 = vunpack.i.h.s16 %v2651_v6  ;;  %v8147_v16 = vpack.i.b16 %v2651_v6, %v2699_v4  ;;  %v3122_v25 = vpack.i.b16 %v3079_v14, %v3113_v32  ;;  %v3142_v17 = vcombine.low %v10034_v39, %v10042_v42 }
 0x1f1   : > { %v10046_v35 = vrot.slane %v2982_v22, %v8971_v15  ;;  %v11339_v28 = vunpack.i.h.s16 %v10037_v36  ;;  %v2703_v34 = vunpack.i.h.s16 %v2665_v2  ;;  %v2855_v30 = vcombine.low %v2666_v56, %v2658_v7  ;;  %v2903_v56 = vld [vmem:[#allocation2 + $0x30] sm:$0xf] }
 0x1f2   : > { %v8148_v48 = vpack.i.b16 %v2665_v2, %v2701_v10  ;;  %v2830_v29 = vcombine.low %v8145_v3, %v8147_v16  ;;  %v10065_v57 = vcombine.high %v10034_v39, %v10034_v39  ;;  %v3141_v27 = vcombine.low %v8157_v31, %v3122_v25 }
 0x1f3   : > { %v10070_v18 = vpack.i.b16 %v10046_v35, %v11339_v28  ;;  %v2667_v24 = vcombine.high %v2665_v2, %v2665_v2  ;;  %v2730_v60 = vpack.i.b16 %v2703_v34, %v2703_v34  ;;  %v3081_v1 = vunpack.i.h.s16 %v10034_v39 }
 0x1f4   : > { %v2831_v46 = vcombine.low %v8146_v59, %v8148_v48  ;;  %v3157_v38 = vrot.slane %v3141_v27, %v8971_v15  ;;  %v8152_v19 = vld.sshfl [vmem:[#allocation2 + $0x18] sm:$0x33 pattern:$0x75316420]  ;;  %v2838_v11 = vrot.slane %v2830_v29, %v9969_v37  ;;  %v3164_v61 = vrot.slane %v3142_v17, %v8971_v15 }
 0x1f5   : > { %v3143_v44 = vcombine.low %v10065_v57, %v10070_v18  ;;  %v2854_v51 = vcombine.low %v2730_v60, %v2667_v24  ;;  %v8153_v12 = vld.sshfl [vmem:[#allocation2 + $0x20] sm:$0x33 pattern:$0x75316420]  ;;  %v2869_v32 = vrot.slane %v2855_v30, %v9969_v37  ;;  %v10086_v43 = vcombine.high %v10037_v36, %v10037_v36 }
 0x1f6   : > { %v2845_v52 = vrot.slane %v2831_v46, %v9969_v37  ;;  %v3172_v55 = vcombine.low %v3150_v63, %v3157_v38  ;;  %v10091_v4 = vcombine.high %v10046_v35, %v10046_v35  ;;  %v3006_v49 = vcombine.high %v8152_v19, %v8152_v19 }
 0x1f7   : > { %v3171_v41 = vrot.slane %v3143_v44, %v8971_v15  ;;  %v2862_v21 = vrot.slane %v2854_v51, %v9969_v37  ;;  %v10095_v22 = vrot.slane %v8152_v19, %v8971_v15  ;;  %v3030_v58 = vcombine.high %v8153_v12, %v8153_v12  ;;  %v10142_v19 = vld.sshfl [vmem:[#allocation2 + $0x4] sm:$0x1 pattern:$0x75316420] }
 0x1f8   : > { %v2846_v8 = vcombine.low %v2838_v11, %v2845_v52  ;;  %v3180_v47 = vrot.slane %v3172_v55, %v8971_v15  ;;  %v10099_v63 = vrot.slane %v3006_v49, %v8971_v15  ;;  %v10102_v2 = vrot.slane %v8153_v12, %v8971_v15 }
 0x1f9   : > { %v3173_v31 = vcombine.low %v3164_v61, %v3171_v41  ;;  %v2870_v3 = vcombine.low %v2862_v21, %v2869_v32  ;;  %v10106_v16 = vrot.slane %v3030_v58, %v8971_v15  ;;  %v3088_v59 = vunpack.i.h.s16 %v10046_v35 }
 0x1fa   : > { %v2853_v6 = vrot.slane %v2846_v8, %v9969_v37  ;;  %v3090_v7 = vunpack.i.h.s16 %v10086_v43  ;;  %v10115_v34 = vcombine.high %v10102_v2, %v10102_v2  ;;  %v3093_v48 = vunpack.i.h.s16 %v10095_v22 }
 0x1fb   : > { %v3187_v10 = vrot.slane %v3173_v31, %v8971_v15  ;;  %v2877_v25 = vrot.slane %v2870_v3, %v9969_v37  ;;  %v11338_v17 = vunpack.i.h.s16 %v10102_v2  ;;  %v3102_v30 = vunpack.i.h.s16 %v10106_v16 }
 0x1fc   : > { %v2901_v26 = vsel %vm9988_vm8, %v2853_v6, %v2900_v0  ;;  %v3115_v27 = vunpack.i.h.s16 %v10091_v4  ;;  %v10124_v24 = vpack.i.b16 %v10086_v43, %v3088_v59  ;;  %v10127_v60 = vpack.i.b16 %v10091_v4, %v3090_v7 }
 0x1fd   : > { %2902 = vst [vmem:[#allocation2 + $0x28] sm:$0xf] %v2901_v26  ;;  %v3188_v29 = vcombine.low %v3180_v47, %v3187_v10  ;;  %v2904_v37 = vsel %vm9988_vm8, %v2877_v25, %v2903_v56  ;;  %v8164_v46 = vcombine.high %v10095_v22, %v10099_v63  ;;  %v10137_v40 = vpack.i.b16 %v10106_v16, %v11338_v17 }
 0x1fe   : > { %2905 = vst [vmem:[#allocation2 + $0x30] sm:$0xf] %v2904_v37  ;;  %v3129_v44 = vpack.i.b16 %v3093_v48, %v3115_v27  ;;  %v10140_v38 = vpack.i.b16 %v10115_v34, %v3102_v30  ;;  %v3083_v11 = vunpack.i.h.s16 %v10042_v42  ;;  %v3189_v52 = vcombine.low %v10124_v24, %v10127_v60 }
 0x1ff   : > { %8553 = vmatmul.mubr.msk.bf16.vlgmr.msra.gmra.mrb[0].mxu1 %vm588_vm2, %v3188_v29  ;;  %v10157_v12 = vrot.slane %v3367_v62, %v8971_v15  ;;  %v8170_v32 = vpack.i.b16 %v10042_v42, %v3081_v1  ;;  %v3213_v41 = vrot.slane %v8164_v46, %v8971_v15  ;;  %v10166_v55 = vrot.slane %v3604_v45, %v8971_v15  ;;  %v8185_v46 = vld.sshfl [vmem:[#allocation2 + $0x8] sm:$0x32 pattern:$0x75316420] }
 0x200   : > { %8565 = vmatpush3.bf16.msra.mxu1 %v3514_v13  ;;  %8556 = vmatprep.mubr.msk.bf16.mxu1 %vm8897_vm1, %v11356_v23  ;;  %v3190_v51 = vcombine.low %v3129_v44, %v10099_v63  ;;  %v3192_v61 = vcombine.low %v10137_v40, %v10140_v38  ;;  %v10161_v13 = vrot.slane %v10061_v53, %v8971_v15  ;;  %v3095_v0 = vunpack.i.h.s16 %v10099_v63 }
 0x201   : > { %8578 = vmatprep.subr.bf16.mxu1 %v11356_v23  ;;  %v3634_v8 = vrot.slane %v10142_v19, %v8971_v15  ;;  %v3199_v21 = vrot.slane %v3189_v52, %v8971_v15  ;;  %v10175_v62 = vcombine.high %v10095_v22, %v10095_v22  ;;  %v10178_v53 = vpack.i.b16 %v10065_v57, %v3083_v11 }
 0x202   : > { %v3206_v9 = vrot.slane %v3190_v51, %v8971_v15  ;;  %v3220_v54 = vrot.slane %v3192_v61, %v8971_v15  ;;  %v10182_v45 = vcombine.high %v10106_v16, %v10106_v16  ;;  %v10186_v49 = vcombine.high %v10099_v63, %v10099_v63  ;;  %v8186_v61 = vld.sshfl [vmem:[#allocation2 + $0xc] sm:$0x1 pattern:$0x75316420] }
 0x203   : > { %v8169_v3 = vpack.i.b16 %v10034_v39, %v3079_v14  ;;  %v3104_v56 = vunpack.i.h.s16 %v10115_v34  ;;  %v3097_v10 = vunpack.i.h.s16 %v10175_v62  ;;  %v3619_v59 = vcombine.high %v10161_v13, %v10161_v13 }
 0x204   : > { %v8154_v1 = vld.sshfl [vmem:[#allocation2 + $0x28] sm:$0x33 pattern:$0x75316420]  ;;  %v3221_v31 = vcombine.low %v3199_v21, %v3206_v9  ;;  %v3222_v47 = vcombine.low %v3213_v41, %v3220_v54  ;;  %v3117_v30 = vunpack.i.h.s16 %v10182_v45  ;;  %v8174_v27 = vpack.i.b16 %v10175_v62, %v3095_v0 }
 0x205   : > { %v3054_v58 = vcombine.high %v8154_v1, %v8154_v1  ;;  %v10190_v6 = vrot.slane %v8154_v1, %v8971_v15  ;;  %v8175_v37 = vpack.i.b16 %v10186_v49, %v3097_v10  ;;  %v8168_v44 = vpack.i.b16 %v10028_v20, %v10015_v33 }
 0x206   : > { %v3229_v7 = vrot.slane %v3221_v31, %v8971_v15  ;;  %v3236_v25 = vrot.slane %v3222_v47, %v8971_v15  ;;  %v3369_v11 = vcombine.low %v8169_v3, %v8170_v32  ;;  %v3370_v52 = vcombine.low %v10178_v53, %v10037_v36 }
 0x207   : > { %v10202_v26 = vrot.slane %v3054_v58, %v8971_v15  ;;  %v10206_v29 = vcombine.high %v10190_v6, %v10190_v6  ;;  %v3107_v14 = vunpack.i.h.s16 %v10190_v6  ;;  %v10221_v41 = vpack.i.b16 %v10182_v45, %v3104_v56 }
 0x208   : > { %v3237_v51 = vcombine.low %v3229_v7, %v3236_v25  ;;  %v10229_v33 = vpack.i.b16 %v10099_v63, %v3093_v48  ;;  %v3642_v1 = vcombine.high %v8185_v46, %v8185_v46  ;;  %v3418_v31 = vcombine.low %v8174_v27, %v8175_v37 }
 0x209   : > { %v10218_v13 = vcombine.high %v10202_v26, %v10202_v26  ;;  %v3136_v21 = vpack.i.b16 %v3107_v14, %v3117_v30  ;;  %v3239_v9 = vcombine.low %v10202_v26, %v10206_v29  ;;  %v3109_v32 = vunpack.i.h.s16 %v10202_v26 }
 0x20a   : > { %8557 = vmatmul.mubr.msk.bf16.gmra.mrb[4].mxu1 %vm588_vm2, %v3237_v51  ;;  %v3649_v47 = vrot.slane %v8185_v46, %v8971_v15  ;;  %v10239_v58 = vrot.slane %v8186_v61, %v8971_v15  ;;  %v3368_v48 = vcombine.low %v10002_v50, %v8168_v44  ;;  %v10243_v3 = vrot.slane %v3369_v11, %v8971_v15 }
 0x20b   : > { %8560 = vmatprep.mubr.msk.bf16.mxu1 %vm8897_vm1, %v11356_v23  ;;  %v3238_v0 = vcombine.low %v10221_v41, %v3136_v21  ;;  %v3398_v56 = vrot.slane %v3370_v52, %v8971_v15  ;;  %v8172_v10 = vpack.i.b16 %v10095_v22, %v10091_v4  ;;  %v3253_v25 = vrot.slane %v3239_v9, %v8971_v15 }
 0x20c   : > { %11395 = vst [vmem:[#allocation6_spill] sm:$0xff] %v10239_v58  ;;  %v3260_v30 = vrot.slane %v10218_v13, %v8971_v15  ;;  %v3419_v27 = vcombine.low %v10102_v2, %v10106_v16  ;;  %v3416_v50 = vcombine.low %v10046_v35, %v10086_v43  ;;  %v8178_v46 = vpack.i.b16 %v10206_v29, %v3109_v32 }
 0x20d   : > { %v3246_v7 = vrot.slane %v3238_v0, %v8971_v15  ;;  %v3417_v37 = vcombine.low %v8172_v10, %v10229_v33  ;;  %v10259_v44 = vrot.slane %v3642_v1, %v8971_v15  ;;  %v10262_v52 = vrot.slane %v3418_v31, %v8971_v15  ;;  %v8188_v31 = vld.sshfl [vmem:[#allocation2 + $0x14] sm:$0x1 pattern:$0x75316420] }
 0x20e   : > { %v3111_v51 = vunpack.i.h.s16 %v10206_v29  ;;  %v10266_v61 = vcombine.low %v10166_v55, %v3619_v59  ;;  %v8176_v21 = vpack.i.b16 %v10190_v6, %v10182_v45  ;;  %v8177_v35 = vpack.i.b16 %v10202_v26, %v3107_v14  ;;  %v8189_v10 = vld.sshfl [vmem:[#allocation2 + $0x18] sm:$0x32 pattern:$0x75316420] }
 0x20f   : > { %11396 = vst [vmem:[#allocation9_spill] sm:$0xff] %v10259_v44  ;;  %v3261_v11 = vcombine.low %v3246_v7, %v3253_v25  ;;  %v10271_v43 = vcombine.high %v3649_v47, %v3649_v47  ;;  %v10275_v9 = vcombine.high %v10259_v44, %v10259_v44  ;;  %v3275_v1 = vrot.slane %v3260_v30, %v8971_v15  ;;  %v8187_v25 = vld.sshfl [vmem:[#allocation2 + $0x10] sm:$0x32 pattern:$0x75316420] }
 0x210   : > { %v3384_v0 = vrot.slane %v3368_v48, %v8971_v15  ;;  %v3447_v59 = vrot.slane %v3419_v27, %v8971_v15  ;;  %v3400_v45 = vcombine.low %v10243_v3, %v3398_v56  ;;  %v10283_v14 = vrot.slane %v3416_v50, %v8971_v15  ;;  %v8190_v27 = vld.sshfl [vmem:[#allocation2 + $0x1c] sm:$0x1 pattern:$0x75316420] }
 0x211   : > { %11397 = vst [vmem:[#allocation10_spill] sm:$0xff] %v10271_v43  ;;  %11398 = vst [vmem:[#allocation12_spill] sm:$0xff] %v10275_v9  ;;  %v3268_v32 = vrot.slane %v3261_v11, %v8971_v15  ;;  %v3433_v47 = vrot.slane %v3417_v37, %v8971_v15  ;;  %v3466_v7 = vcombine.low %v8177_v35, %v8178_v46  ;;  %v3837_v48 = vunpack.i.h.s16 %v10275_v9 }
 0x212   : > { %v3449_v11 = vcombine.low %v10262_v52, %v3447_v59  ;;  %v10288_v30 = vpack.i.b16 %v10218_v13, %v3111_v51  ;;  %v3465_v28 = vcombine.low %v10115_v34, %v8176_v21  ;;  %v3833_v56 = vunpack.i.h.s16 %v10259_v44 }
 0x213   : > { %v3276_v17 = vcombine.low %v3268_v32, %v3275_v1  ;;  %v3835_v50 = vunpack.i.h.s16 %v10271_v43  ;;  %v3718_v54 = vcombine.high %v8189_v10, %v8189_v10  ;;  %v3399_v37 = vcombine.low %v10157_v12, %v3384_v0  ;;  %v8192_v0 = vld.sshfl [vmem:[#allocation2 + $0x24] sm:$0x1 pattern:$0x75316420] }
 0x214   : > { %v3680_v46 = vcombine.high %v8187_v25, %v8187_v25  ;;  %v8195_v51 = vpack.i.b16 %v10259_v44, %v3634_v8  ;;  %v3898_v35 = vrot.slane %v10266_v61, %v8971_v15  ;;  %v3448_v34 = vcombine.low %v10283_v14, %v3433_v47  ;;  %v2908_v8 = vld [vmem:[%s11323_s2 + $0x8] sm:$0xf] }
 0x215   : > { %8561 = vmatmul.mubr.msk.bf16.gmra.mrb[8].mxu1 %vm588_vm2, %v3276_v17  ;;  %v10306_v21 = vrot.slane %v3466_v7, %v8971_v15  ;;  %v10309_v17 = vrot.slane %v8188_v31, %v8971_v15  ;;  %v10312_v12 = vrot.slane %v8190_v27, %v8971_v15  ;;  %v3414_v19 = vrot.slane %v3400_v45, %v8971_v15  ;;  %v8191_v7 = vld.sshfl [vmem:[#allocation2 + $0x20] sm:$0x32 pattern:$0x75316420] }
 0x216   : > { %8566 = vmatprep.mubr.msk.bf16.mxu1 %vm8897_vm1, %v11356_v23  ;;  %v3463_v61 = vrot.slane %v3449_v11, %v8971_v15  ;;  %v8198_v32 = vpack.i.b16 %v10239_v58, %v3837_v48  ;;  %v10321_v1 = vrot.slane %v3718_v54, %v8971_v15  ;;  %v3473_v59 = vrot.slane %v3465_v28, %v8971_v15  ;;  %v2909_v28 = vld [vmem:[%s11323_s2 + $0xc] sm:$0xf] }
 0x217   : > { %v3487_v31 = vrot.slane %v10288_v30, %v8971_v15  ;;  %v8196_v47 = vpack.i.b16 %v10271_v43, %v3833_v56  ;;  %v8197_v45 = vpack.i.b16 %v10275_v9, %v3835_v50  ;;  %v3407_v27 = vrot.slane %v3399_v37, %v8971_v15 }
 0x218   : > { %v10330_v11 = vrot.slane %v3680_v46, %v8971_v15  ;;  %v11399_v54 = vcombine.high %v10166_v55, %v10166_v55  ;;  %v10339_v5 = vrot.slane %v8189_v10, %v8971_v15  ;;  %v4035_v56 = vsel %vm598_vm0, %v2908_v8, 0 }
 0x219   : > { %v3456_v50 = vrot.slane %v3448_v34, %v8971_v15  ;;  %v3488_v37 = vcombine.low %v3473_v59, %v10306_v21  ;;  %v10345_v46 = vrot.slane %v8192_v0, %v8971_v15  ;;  %v3415_v9 = vcombine.low %v3407_v27, %v3414_v19  ;;  %v8193_v0 = vld.sshfl [vmem:[#allocation2 + $0x28] sm:$0x32 pattern:$0x75316420] }
 0x21a   : > { %v3889_v48 = vcombine.low %v11399_v54, %v8195_v51  ;;  %11400 = vst [vmem:[#allocation11_spill] sm:$0xff] %v10339_v5  ;;  %v3891_v55 = vcombine.low %v8198_v32, %v10330_v11  ;;  %v3734_v51 = vcombine.high %v10321_v1, %v10321_v1  ;;  %v3756_v54 = vcombine.high %v8191_v7, %v8191_v7 }
 0x21b   : > { %v3464_v44 = vcombine.low %v3456_v50, %v3463_v61  ;;  %v3502_v10 = vrot.slane %v3487_v31, %v8971_v15  ;;  %v3890_v43 = vcombine.low %v8196_v47, %v8197_v45  ;;  %v10352_v8 = vsel %vm598_vm0, %v2909_v28, 0 }
 0x21c   : > { %v3905_v34 = vrot.slane %v3889_v48, %v8971_v15  ;;  %v3733_v19 = vcombine.high %v10339_v5, %v10339_v5  ;;  %v3763_v32 = vrot.slane %v8191_v7, %v8971_v15  ;;  %v8217_v59 = vpack.i.b16 %v10037_v36, %v10065_v57 }
 0x21d   : > { %8567 = vmatmul.mubr.msk.bf16.vlgmr.msra.gmra.mrb[0].mxu1 %vm588_vm2, %v3415_v9  ;;  %v3495_v61 = vrot.slane %v3488_v37, %v8971_v15  ;;  %v10365_v31 = vrot.slane %v8187_v25, %v8971_v15  ;;  %v3847_v9 = vunpack.i.h.s16 %v10321_v1  ;;  %v4319_v47 = vcombine.low %v10028_v20, %v10034_v39 }
 0x21e   : > { %8579 = vmatpush3.bf16.msra.mxu1 %v4035_v56  ;;  %8570 = vmatprep.mubr.msk.bf16.mxu1 %vm8897_vm1, %v11356_v23  ;;  %v3919_v45 = vrot.slane %v3891_v55, %v8971_v15  ;;  %v10373_v7 = vrot.slane %v3756_v54, %v8971_v15  ;;  %v3851_v27 = vunpack.i.h.s16 %v3734_v51  ;;  %v4320_v48 = vcombine.low %v10042_v42, %v8217_v59 }
 0x21f   : > { %8592 = vmatprep.subr.bf16.mxu1 %v11356_v23  ;;  %v3912_v28 = vrot.slane %v3890_v43, %v8971_v15  ;;  %v3794_v56 = vcombine.high %v8193_v0, %v8193_v0  ;;  %v4321_v25 = vcombine.low %v10070_v18, %v10124_v24  ;;  %v4322_v50 = vcombine.low %v10127_v60, %v10095_v22 }
 0x220   : > { %v10381_v20 = vcombine.low %v3898_v35, %v3905_v34  ;;  %v10383_v39 = vcombine.high %v3763_v32, %v3763_v32  ;;  %v3849_v37 = vunpack.i.h.s16 %v3733_v19  ;;  %v3801_v55 = vrot.slane %v8193_v0, %v8971_v15 }
 0x221   : > { %v8200_v54 = vpack.i.b16 %v3733_v19, %v3847_v9  ;;  %v4329_v5 = vrot.slane %v4319_v47, %v8971_v15  ;;  %v4336_v42 = vrot.slane %v4320_v48, %v8971_v15  ;;  %v4343_v43 = vrot.slane %v4321_v25, %v8971_v15 }
 0x222   : > { %v3503_v59 = vcombine.low %v3495_v61, %v3502_v10  ;;  %v3921_v58 = vcombine.low %v3912_v28, %v3919_v45  ;;  %v8199_v18 = vpack.i.b16 %v10321_v1, %v10309_v17  ;;  %v8202_v22 = vpack.i.b16 %v10312_v12, %v3851_v27 }
 0x223   : > { %v8207_v24 = vcombine.high %v10365_v31, %v10330_v11  ;;  %v10395_v60 = vrot.slane %v3794_v56, %v8971_v15  ;;  %v4350_v35 = vrot.slane %v4322_v50, %v8971_v15  ;;  %v4351_v34 = vcombine.low %v4329_v5, %v4336_v42  ;;  %v10423_v56 = vld.sshfl [vmem:[#allocation2 + $0x30] sm:$0x33 pattern:$0x75316420] }
 0x224   : > { %v8201_v19 = vpack.i.b16 %v3734_v51, %v3849_v37  ;;  %v10399_v32 = vcombine.high %v3801_v55, %v3801_v55  ;;  %v8221_v10 = vpack.i.b16 %v10102_v2, %v10186_v49  ;;  %v4368_v0 = vcombine.low %v10099_v63, %v10175_v62 }
 0x225   : > { %8571 = vmatmul.mubr.msk.bf16.gmra.mrb[4].mxu1 %vm588_vm2, %v3464_v44  ;;  %v3928_v61 = vrot.slane %v10381_v20, %v8971_v15  ;;  %v3938_v9 = vcombine.low %v8199_v18, %v8200_v54  ;;  %v3940_v5 = vcombine.low %v10373_v7, %v10383_v39  ;;  %v4352_v44 = vcombine.low %v4343_v43, %v4350_v35 }
 0x226   : > { %8574 = vmatprep.mubr.msk.bf16.mxu1 %vm8897_vm1, %v11356_v23  ;;  %v3939_v51 = vcombine.low %v8201_v19, %v8202_v22  ;;  %v4369_v47 = vcombine.low %v8221_v10, %v10137_v40  ;;  %v4370_v45 = vcombine.low %v10140_v38, %v10221_v41  ;;  %v4693_v27 = vunpack.i.h.s16 %v10065_v57 }
 0x227   : > { %v10417_v63 = vcombine.high %v10395_v60, %v10395_v60  ;;  %v4359_v62 = vrot.slane %v4351_v34, %v8971_v15  ;;  %v4366_v48 = vrot.slane %v4352_v44, %v8971_v15  ;;  %v4371_v28 = vcombine.low %v10190_v6, %v10202_v26 }
 0x228   : > { %v3861_v40 = vunpack.i.h.s16 %v10395_v60  ;;  %v3863_v25 = vunpack.i.h.s16 %v10399_v32  ;;  %v4378_v38 = vrot.slane %v4368_v0, %v8971_v15  ;;  %v4385_v57 = vrot.slane %v4369_v47, %v8971_v15 }
 0x229   : > { %v3954_v41 = vrot.slane %v3938_v9, %v8971_v15  ;;  %v10430_v50 = vcombine.low %v4359_v62, %v4366_v48  ;;  %v4392_v20 = vrot.slane %v4370_v45, %v8971_v15  ;;  %v4399_v37 = vrot.slane %v4371_v28, %v8971_v15  ;;  %v8194_v28 = vld.sshfl [vmem:[#allocation2 + $0x2c] sm:$0x1 pattern:$0x75316420] }
 0x22a   : > { %v4400_v55 = vcombine.low %v4378_v38, %v4385_v57  ;;  %v10436_v6 = vrot.slane %v10423_v56, %v8971_v15  ;;  %v11401_v26 = vunpack.i.h.s16 %v10037_v36  ;;  %v4753_v42 = vcombine.low %v10091_v4, %v10229_v33 }
 0x22b   : > { %v3935_v43 = vrot.slane %v3921_v58, %v8971_v15  ;;  %v3947_v18 = vrot.slane %v8207_v24, %v8971_v15  ;;  %v10446_v22 = vcombine.high %v10373_v7, %v10373_v7  ;;  %v4401_v35 = vcombine.low %v4392_v20, %v4399_v37 }
 0x22c   : > { %v4732_v54 = vpack.i.b16 %v11401_v26, %v4693_v27  ;;  %v3961_v34 = vrot.slane %v3939_v51, %v8971_v15  ;;  %v8204_v19 = vpack.i.b16 %v10399_v32, %v3861_v40  ;;  %v8205_v36 = vpack.i.b16 %v10417_v63, %v3863_v25 }
 0x22d   : > { %8575 = vmatmul.mubr.msk.bf16.gmra.mrb[8].mxu1 %vm588_vm2, %v3503_v59  ;;  %v8225_v4 = vpack.i.b16 %v10436_v6, %v10218_v13  ;;  %v3968_v33 = vrot.slane %v3940_v5, %v8971_v15  ;;  %v4408_v58 = vrot.slane %v4400_v55, %v8971_v15  ;;  %v4415_v24 = vrot.slane %v4401_v35, %v8971_v15 }
 0x22e   : > { %8580 = vmatprep.mubr.msk.bf16.mxu1 %vm8897_vm1, %v11356_v23  ;;  %v4751_v59 = vcombine.low %v10178_v53, %v4732_v54  ;;  %v3969_v10 = vcombine.low %v3947_v18, %v3954_v41  ;;  %v4781_v9 = vrot.slane %v4753_v42, %v8971_v15  ;;  %v4707_v44 = vunpack.i.h.s16 %v10186_v49 }
 0x22f   : > { %v10461_v0 = vcombine.low %v10206_v29, %v8225_v4  ;;  %v8203_v51 = vpack.i.b16 %v10395_v60, %v10345_v46  ;;  %v10467_v47 = vcombine.low %v4408_v58, %v4415_v24  ;;  %v8247_v45 = vcombine.high %v10102_v2, %v10106_v16  ;;  %v11403_v4 = vld [vmem:[#allocation6_spill] sm:$0xff]  ;;  %v11405_v24 = vld [vmem:[#allocation9_spill] sm:$0xff] }
 0x230   : > { %v4767_v5 = vrot.slane %v4751_v59, %v8971_v15  ;;  %v3970_v27 = vcombine.low %v3961_v34, %v3968_v33  ;;  %v3987_v53 = vcombine.low %v8204_v19, %v8205_v36  ;;  %v4783_v62 = vcombine.low %v10283_v14, %v4781_v9  ;;  %v11404_v58 = vld [vmem:[#allocation10_spill] sm:$0xff] }
 0x231   : > { %v11402_v29 = vunpack.i.h.s16 %v10102_v2  ;;  %v4292_v49 = vunpack.i.h.s16 %v10436_v6  ;;  %v4823_v25 = vrot.slane %v8247_v45, %v8971_v15  ;;  %v4721_v38 = vunpack.i.h.s16 %v10218_v13  ;;  %v11406_v45 = vld [vmem:[#allocation12_spill] sm:$0xff] }
 0x232   : > { %v4782_v40 = vcombine.low %v10243_v3, %v4767_v5  ;;  %v3936_v57 = vcombine.low %v3928_v61, %v3935_v43  ;;  %v3865_v41 = vunpack.i.h.s16 %v10417_v63  ;;  %v10481_v20 = vrot.slane %v4783_v62, %v8971_v15 }
 0x233   : > { %v4739_v48 = vpack.i.b16 %v11402_v29, %v4707_v44  ;;  %v3986_v2 = vcombine.low %v10446_v22, %v8203_v51  ;;  %v4832_v55 = vcombine.low %v4823_v25, %v10306_v21  ;;  %v10491_v3 = vpack.i.b16 %v4292_v49, %v4721_v38 }
 0x234   : > { %v10486_v37 = vrot.slane %v4782_v40, %v8971_v15  ;;  %v3977_v13 = vrot.slane %v3969_v10, %v8971_v15  ;;  %v3984_v61 = vrot.slane %v3970_v27, %v8971_v15  ;;  %v10497_v26 = vrot.slane %v8194_v28, %v8971_v15 }
 0x235   : > { %v4800_v14 = vcombine.low %v4739_v48, %v10106_v16  ;;  %8581 = vmatmul.mubr.msk.bf16.vlgmr.msra.gmra.mrb[0].mxu1 %vm588_vm2, %v3936_v57  ;;  %v4001_v21 = vrot.slane %v3987_v53, %v8971_v15  ;;  %v4848_v42 = vcombine.low %v10288_v30, %v10491_v3  ;;  %v5222_v43 = vunpack.i.h.s16 %v10330_v11  ;;  %v8280_v3 = vld.sshfl [vmem:[#allocation2 + $0x18] sm:$0x33 pattern:$0x75316420] }
 0x236   : > { %8593 = vmatpush3.bf16.msra.mxu1 %v10352_v8  ;;  %8584 = vmatprep.mubr.msk.bf16.mxu1 %vm8897_vm1, %v11356_v23  ;;  %v4798_v54 = vcombine.low %v10486_v37, %v10481_v20  ;;  %v8206_v18 = vpack.i.b16 %v10497_v26, %v3865_v41  ;;  %v10513_v8 = vrot.slane %v4832_v55, %v8971_v15  ;;  %v5236_v29 = vunpack.i.h.s16 %v10373_v7 }
 0x237   : > { %v4816_v16 = vrot.slane %v4800_v14, %v8971_v15  ;;  %8606 = vmatprep.subr.bf16.mxu1 %v11356_v23  ;;  %v5046_v34 = vcombine.high %v10365_v31, %v10365_v31  ;;  %v3994_v19 = vrot.slane %v3986_v2, %v8971_v15  ;;  %v5047_v36 = vcombine.high %v10330_v11, %v10330_v11  ;;  %v10543_v14 = vld.sshfl [vmem:[#allocation2 + $0x30] sm:$0x32 pattern:$0x75316420] }
 0x238   : > { %v8263_v33 = vpack.i.b16 %v10330_v11, %v11403_v4  ;;  %v5277_v59 = vcombine.low %v11405_v24, %v11404_v58  ;;  %v3985_v10 = vcombine.low %v3977_v13, %v3984_v61  ;;  %v4239_v31 = vcombine.high %v10423_v56, %v10423_v56 }
 0x239   : > { %v4831_v35 = vcombine.low %v10262_v52, %v4816_v16  ;;  %v5224_v9 = vunpack.i.h.s16 %v5046_v34  ;;  %v8264_v44 = vpack.i.b16 %v5046_v34, %v5222_v43  ;;  %v4009_v51 = vcombine.low %v3994_v19, %v4001_v21 }
 0x23a   : > { %v5226_v5 = vunpack.i.h.s16 %v5047_v36  ;;  %v5278_v27 = vcombine.low %v11406_v45, %v8263_v33  ;;  %v4008_v53 = vrot.slane %v8206_v18, %v8971_v15  ;;  %v5287_v28 = vrot.slane %v5277_v59, %v8971_v15 }
 0x23b   : > { %v10525_v52 = vrot.slane %v4831_v35, %v8971_v15  ;;  %v8265_v62 = vpack.i.b16 %v5047_v36, %v5224_v9  ;;  %v5238_v25 = vunpack.i.h.s16 %v10383_v39  ;;  %v5240_v38 = vunpack.i.h.s16 %v10446_v22 }
 0x23c   : > { %v8266_v48 = vpack.i.b16 %v10309_v17, %v5226_v5  ;;  %v5294_v40 = vrot.slane %v5278_v27, %v8971_v15  ;;  %v8267_v57 = vpack.i.b16 %v10373_v7, %v10312_v12  ;;  %v8268_v41 = vpack.i.b16 %v10383_v39, %v5236_v29  ;;  %v11407_v12 = vld [vmem:[#allocation11_spill] sm:$0xff] }
 0x23d   : > { %v4847_v11 = vcombine.low %v10525_v52, %v10513_v8  ;;  %8585 = vmatmul.mubr.msk.bf16.gmra.mrb[4].mxu1 %vm588_vm2, %v3985_v10  ;;  %v5279_v56 = vcombine.low %v8264_v44, %v8265_v62  ;;  %v4016_v17 = vrot.slane %v4009_v51, %v8971_v15  ;;  %v10549_v2 = vrot.slane %v4239_v31, %v8971_v15 }
 0x23e   : > { %8588 = vmatprep.mubr.msk.bf16.mxu1 %vm8897_vm1, %v11356_v23  ;;  %v5280_v55 = vcombine.low %v8266_v48, %v10321_v1  ;;  %v5309_v13 = vcombine.low %v5287_v28, %v5294_v40  ;;  %v8269_v61 = vpack.i.b16 %v10446_v22, %v5238_v25  ;;  %v8270_v16 = vpack.i.b16 %v10345_v46, %v5240_v38 }
 0x23f   : > { %v8275_v7 = vcombine.high %v11407_v12, %v10321_v1  ;;  %v5327_v39 = vcombine.low %v8267_v57, %v8268_v41  ;;  %v5301_v21 = vrot.slane %v5279_v56, %v8971_v15  ;;  %v5329_v18 = vcombine.low %v10395_v60, %v10399_v32  ;;  %v10612_v56 = vld.sshfl [vmem:[#allocation2 + $0x38] sm:$0x33 pattern:$0x75316420] }
 0x240   : > { %v5308_v43 = vrot.slane %v5280_v55, %v8971_v15  ;;  %v5183_v35 = vcombine.high %v10543_v14, %v10543_v14  ;;  %v4023_v34 = vrot.slane %v4008_v53, %v8971_v15  ;;  %v5328_v19 = vcombine.low %v8269_v61, %v8270_v16 }
 0x241   : > { %v5336_v22 = vrot.slane %v8275_v7, %v8971_v15  ;;  %v5343_v46 = vrot.slane %v5327_v39, %v8971_v15  ;;  %v5357_v1 = vrot.slane %v5329_v18, %v8971_v15  ;;  %v4294_v58 = vunpack.i.h.s16 %v10549_v2 }
 0x242   : > { %v5310_v36 = vcombine.low %v5301_v21, %v5308_v43  ;;  %v10567_v4 = vrot.slane %v5183_v35, %v8971_v15  ;;  %v4024_v33 = vcombine.low %v4016_v17, %v4023_v34  ;;  %v5350_v60 = vrot.slane %v5328_v19, %v8971_v15  ;;  %v2522_v21 = vld [vmem:[#allocation2 + $0x3c] sm:$0x1] }
 0x243   : > { %v5358_v32 = vcombine.low %v5336_v22, %v5343_v46  ;;  %v5317_v24 = vrot.slane %v5309_v13, %v8971_v15  ;;  %v4254_v9 = vcombine.high %v10436_v6, %v10436_v6  ;;  %v8226_v53 = vpack.i.b16 %v10549_v2, %v4292_v49 }
 0x244   : > { %v5324_v59 = vrot.slane %v5310_v36, %v8971_v15  ;;  %v8271_v10 = vpack.i.b16 %v10567_v4, %v10497_v26  ;;  %v5359_v44 = vcombine.low %v5350_v60, %v5357_v1  ;;  %v2910_v26 = vld [vmem:[%s11323_s2 + $0x10] sm:$0xf]  ;;  %v5761_v49 = vcombine.low %v10436_v6, %v10549_v2  ;;  %v10674_v36 = vld.sshfl [vmem:[#allocation2 + $0x38] sm:$0x32 pattern:$0x75316420] }
 0x245   : > { %8589 = vmatmul.mubr.msk.bf16.gmra.mrb[8].mxu1 %vm588_vm2, %v4024_v33  ;;  %v8227_v5 = vpack.i.b16 %v4254_v9, %v4294_v58  ;;  %v5366_v45 = vrot.slane %v5358_v32, %v8971_v15  ;;  %v4897_v29 = vsel %vm598_vm0, %v2910_v26, 0  ;;  %v4296_v28 = vunpack.i.h.s16 %v4254_v9  ;;  %v8262_v1 = vld.sshfl [vmem:[#allocation2 + $0x34] sm:$0x1 pattern:$0x75316420] }
 0x246   : > { %8594 = vmatprep.mubr.msk.bf16.mxu1 %vm8897_vm1, %v11356_v23  ;;  %v10580_v51 = vcombine.low %v5317_v24, %v5324_v59  ;;  %v10583_v31 = vcombine.low %v10417_v63, %v8271_v10  ;;  %v5373_v27 = vrot.slane %v5359_v44, %v8971_v15  ;;  %v4255_v63 = vcombine.high %v10549_v2, %v10549_v2  ;;  %v8279_v60 = vld.sshfl [vmem:[#allocation2 + $0x10] sm:$0x33 pattern:$0x75316420]  ;;  %v2912_v10 = vld [vmem:[%s11323_s2 + $0x18] sm:$0xf] }
 0x247   : > { %v4418_v48 = vcombine.low %v8226_v53, %v8227_v5  ;;  %v10617_v57 = vrot.slane %v10612_v56, %v8971_v15  ;;  %v4849_v43 = vcombine.low %v10549_v2, %v4254_v9  ;;  %v2523_v34 = vsel %vm9921_vm6, 0, %v2522_v21  ;;  %v8282_v53 = vld.sshfl [vmem:[#allocation2 + $0x28] sm:$0x33 pattern:$0x75316420] }
 0x248   : > { %v10593_v62 = vcombine.low %v5366_v45, %v5373_v27  ;;  %v10608_v25 = vpack.i.b16 %v4255_v63, %v4296_v28  ;;  %v6111_v12 = vunpack.i.h.s16 %v4255_v63  ;;  %v4856_v19 = vrot.slane %v4848_v42, %v8971_v15  ;;  %2524 = vst [vmem:[#allocation2 + $0x3c] sm:$0x1] %v2523_v34 }
 0x249   : > { %v10603_v40 = vrot.slane %v4418_v48, %v8971_v15  ;;  %v8293_v17 = vpack.i.b16 %v10617_v57, %v4255_v63  ;;  %v5682_v16 = vunpack.i.h.s16 %v10617_v57  ;;  %v5190_v20 = vrot.slane %v10543_v14, %v8971_v15 }
 0x24a   : > { %v4439_v41 = vrot.slane %v10608_v25, %v8971_v15  ;;  %v4863_v37 = vrot.slane %v4849_v43, %v8971_v15  ;;  %v4870_v46 = vrot.slane %v4255_v63, %v8971_v15  ;;  %v5199_v8 = vcombine.high %v10567_v4, %v10567_v4 }
 0x24b   : > { %v10627_v55 = vcombine.low %v4254_v9, %v8293_v17  ;;  %v10640_v39 = vpack.i.b16 %v5682_v16, %v6111_v12  ;;  %v10661_v22 = vcombine.high %v5190_v20, %v5190_v20  ;;  %v5250_v52 = vunpack.i.h.s16 %v10567_v4 }
 0x24c   : > { %v4454_v13 = vrot.slane %v4439_v41, %v8971_v15  ;;  %v4885_v14 = vrot.slane %v4870_v46, %v8971_v15  ;;  %v5533_v33 = vcombine.high %v8280_v3, %v8280_v3  ;;  %v10681_v32 = vrot.slane %v8280_v3, %v8971_v15 }
 0x24d   : > { %8595 = vmatmul.mubr.msk.bf16.vlgmr.msra.gmra.mrb[0].mxu1 %vm588_vm2, %v10430_v50  ;;  %v4425_v50 = vrot.slane %v10461_v0, %v8971_v15  ;;  %v6238_v18 = vcombine.low %v10608_v25, %v10640_v39  ;;  %v6719_v42 = vcombine.low %v10567_v4, %v10661_v22  ;;  %v6573_v24 = vcombine.high %v10674_v36, %v10674_v36 }
 0x24e   : > { %8607 = vmatpush3.bf16.msra.mxu1 %v4897_v29  ;;  %8598 = vmatprep.mubr.msk.bf16.mxu1 %vm8897_vm1, %v11356_v23  ;;  %v5213_v59 = vrot.slane %v8262_v1, %v8971_v15  ;;  %v8272_v9 = vpack.i.b16 %v10661_v22, %v5250_v52  ;;  %v5509_v5 = vcombine.high %v8279_v60, %v8279_v60  ;;  %v5856_v29 = vsel %vm598_vm0, %v2912_v10, 0 }
 0x24f   : > { %8620 = vmatprep.subr.bf16.mxu1 %v11356_v23  ;;  %v4440_v38 = vcombine.low %v4425_v50, %v10603_v40  ;;  %v10694_v45 = vrot.slane %v5533_v33, %v8971_v15  ;;  %v10698_v27 = vcombine.high %v10681_v32, %v10681_v32  ;;  %v10701_v26 = vrot.slane %v6573_v24, %v8971_v15 }
 0x250   : > { %v10706_v28 = vrot.slane %v5509_v5, %v8971_v15  ;;  %v5581_v17 = vcombine.high %v8282_v53, %v8282_v53  ;;  %v10726_v21 = vrot.slane %v8279_v60, %v8971_v15  ;;  %v5383_v20 = vrot.slane %v10583_v31, %v8971_v15 }
 0x251   : > { %v4447_v0 = vrot.slane %v4440_v38, %v8971_v15  ;;  %v8339_v48 = vpack.i.b16 %v10701_v26, %v5213_v59  ;;  %v10710_v50 = vcombine.high %v10694_v45, %v10694_v45  ;;  %v5656_v38 = vunpack.i.h.s16 %v10694_v45 }
 0x252   : > { %v5658_v41 = vunpack.i.h.s16 %v10698_v27  ;;  %v10732_v35 = vcombine.high %v10706_v28, %v10706_v28  ;;  %v10736_v34 = vrot.slane %v5581_v17, %v8971_v15  ;;  %v10752_v1 = vcombine.high %v10726_v21, %v10726_v21 }
 0x253   : > { %v4455_v61 = vcombine.low %v4447_v0, %v4454_v13  ;;  %v10715_v0 = vrot.slane %v8282_v53, %v8971_v15  ;;  %v10717_v13 = vcombine.low %v5199_v8, %v8339_v48  ;;  %v8287_v43 = vpack.i.b16 %v10698_v27, %v5656_v38 }
 0x254   : > { %v5629_v31 = vcombine.high %v10612_v56, %v10612_v56  ;;  %v5670_v33 = vunpack.i.h.s16 %v10736_v34  ;;  %v6079_v6 = vunpack.i.h.s16 %v10706_v28  ;;  %v6081_v2 = vunpack.i.h.s16 %v10752_v1 }
 0x255   : > { %8599 = vmatmul.mubr.msk.bf16.gmra.mrb[4].mxu1 %vm588_vm2, %v10467_v47  ;;  %v2911_v47 = vld [vmem:[%s11323_s2 + $0x14] sm:$0xf]  ;;  %v5668_v56 = vunpack.i.h.s16 %v10715_v0  ;;  %v6773_v4 = vrot.slane %v10717_v13, %v8971_v15 }
 0x256   : > { %8602 = vmatprep.mubr.msk.bf16.mxu1 %vm8897_vm1, %v11356_v23  ;;  %v5424_v7 = vsel %vm598_vm0, %v2911_v47, 0  ;;  %v5254_v47 = vunpack.i.h.s16 %v5199_v8  ;;  %v8882_v13 = vld [vmem:[%s8956_s24 + $0x10] sm:$0xff] }
 0x25d   : > { %8603 = vmatmul.mubr.msk.bf16.gmra.mrb[8].mxu1 %vm588_vm2, %v4455_v61  ;;  %v5654_v61 = vunpack.i.h.s16 %v10681_v32 }
 0x25e   : > { %8608 = vmatprep.mubr.msk.bf16.mxu1 %vm8897_vm1, %v11356_v23 }
 0x265   : > { %8609 = vmatmul.mubr.msk.bf16.vlgmr.msra.gmra.mrb[0].mxu1 %vm588_vm2, %v4798_v54  ;;  %v4871_v54 = vcombine.low %v4856_v19, %v4863_v37  ;;  %v5596_v19 = vcombine.high %v10715_v0, %v10715_v0  ;;  %v8286_v37 = vpack.i.b16 %v10694_v45, %v5654_v61 }
 0x266   : > { %8621 = vmatpush3.bf16.msra.mxu1 %v5424_v7  ;;  %8612 = vmatprep.mubr.msk.bf16.mxu1 %vm8897_vm1, %v11356_v23  ;;  %v8281_v7 = vld.sshfl [vmem:[#allocation2 + $0x20] sm:$0x33 pattern:$0x75316420] }
 0x267   : > { %8634 = vmatprep.subr.bf16.mxu1 %v11356_v23  ;;  %v4878_v30 = vrot.slane %v4871_v54, %v8971_v15  ;;  %v8274_v54 = vpack.i.b16 %v5213_v59, %v5254_v47  ;;  %v10746_v46 = vrot.slane %v8281_v7, %v8971_v15  ;;  %v5557_v3 = vcombine.high %v8281_v7, %v8281_v7 }
 0x268   : > { %v8291_v53 = vpack.i.b16 %v5596_v19, %v5670_v33 }
 0x269   : > { %v4886_v58 = vcombine.low %v4878_v30, %v4885_v14  ;;  %v8285_v30 = vpack.i.b16 %v10681_v32, %v10732_v35  ;;  %v5397_v60 = vrot.slane %v8274_v54, %v8971_v15  ;;  %v10765_v59 = vrot.slane %v5557_v3, %v8971_v15 }
 0x26a   : > { %v10790_v47 = vcombine.high %v10746_v46, %v10746_v46 }
 0x26b   : > { %v5710_v24 = vcombine.low %v10752_v1, %v8285_v30  ;;  %v5412_v48 = vrot.slane %v5397_v60, %v8971_v15  ;;  %v10782_v38 = vcombine.high %v10765_v59, %v10765_v59 }
 0x26d   : > { %8613 = vmatmul.mubr.msk.bf16.gmra.mrb[4].mxu1 %vm588_vm2, %v4847_v11  ;;  %v5252_v11 = vunpack.i.h.s16 %v10661_v22 }
 0x26e   : > { %8616 = vmatprep.mubr.msk.bf16.mxu1 %vm8897_vm1, %v11356_v23 }
 0x26f   : > { %v8273_v44 = vpack.i.b16 %v5199_v8, %v5252_v11  ;;  %v5711_v8 = vcombine.low %v8286_v37, %v8287_v43  ;;  %v5597_v11 = vcombine.high %v10736_v34, %v10736_v34 }
 0x271   : > { %v5376_v63 = vcombine.low %v8272_v9, %v8273_v44  ;;  %v5709_v9 = vcombine.low %v10726_v21, %v10706_v28  ;;  %v10774_v44 = vrot.slane %v5629_v31, %v8971_v15  ;;  %v5758_v31 = vcombine.low %v10765_v59, %v10790_v47 }
 0x273   : > { %v5390_v12 = vrot.slane %v5376_v63, %v8971_v15  ;;  %v5726_v63 = vrot.slane %v5710_v24, %v8971_v15  ;;  %v5719_v17 = vrot.slane %v5709_v9, %v8971_v15  ;;  %v5684_v7 = vunpack.i.h.s16 %v10774_v44 }
 0x274   : > { %v8294_v30 = vpack.i.b16 %v10774_v44, %v5682_v16  ;;  %v5768_v9 = vrot.slane %v5758_v31, %v8971_v15  ;;  %v6095_v31 = vunpack.i.h.s16 %v10790_v47 }
 0x275   : > { %8617 = vmatmul.mubr.msk.bf16.gmra.mrb[8].mxu1 %vm588_vm2, %v4886_v58  ;;  %v5398_v14 = vcombine.low %v5383_v20, %v5390_v12  ;;  %v5672_v58 = vunpack.i.h.s16 %v5596_v19  ;;  %v10794_v12 = vcombine.high %v10617_v57, %v10617_v57  ;;  %v8289_v19 = vpack.i.b16 %v10715_v0, %v10782_v38 }
 0x276   : > { %8622 = vmatprep.mubr.msk.bf16.mxu1 %vm8897_vm1, %v11356_v23  ;;  %v5741_v37 = vcombine.low %v5719_v17, %v5726_v63  ;;  %v5789_v57 = vrot.slane %v5761_v49, %v8971_v15  ;;  %v6083_v49 = vunpack.i.h.s16 %v10732_v35 }
 0x277   : > { %v5405_v10 = vrot.slane %v5398_v14, %v8971_v15  ;;  %v8295_v3 = vpack.i.b16 %v10794_v12, %v5684_v7  ;;  %v5686_v60 = vunpack.i.h.s16 %v10794_v12 }
 0x278   : > { %v6122_v17 = vpack.i.b16 %v5654_v61, %v6083_v49  ;;  %v6142_v61 = vcombine.low %v10694_v45, %v10698_v27  ;;  %v8319_v49 = vld.sshfl [vmem:[#allocation2 + $0x10] sm:$0x32 pattern:$0x75316420] }
 0x279   : > { %v5413_v43 = vcombine.low %v5405_v10, %v5412_v48  ;;  %v5808_v24 = vcombine.low %v8294_v30, %v8295_v3  ;;  %v5815_v48 = vrot.slane %v10627_v55, %v8971_v15  ;;  %v8321_v3 = vld.sshfl [vmem:[#allocation2 + $0x18] sm:$0x32 pattern:$0x75316420] }
 0x27a   : > { %v6164_v27 = vrot.slane %v6142_v61, %v8971_v15 }
 0x27d   : > { %8623 = vmatmul.mubr.msk.bf16.vlgmr.msra.gmra.mrb[0].mxu1 %vm588_vm2, %v10580_v51  ;;  %v8288_v51 = vpack.i.b16 %v10710_v50, %v5658_v41  ;;  %v8290_v41 = vpack.i.b16 %v10736_v34, %v5668_v56 }
 0x27e   : > { %8635 = vmatpush3.bf16.msra.mxu1 %v5856_v29  ;;  %8626 = vmatprep.mubr.msk.bf16.mxu1 %vm8897_vm1, %v11356_v23  ;;  %v8292_v29 = vpack.i.b16 %v5597_v11, %v5672_v58  ;;  %v5749_v11 = vrot.slane %v5741_v37, %v8971_v15  ;;  %v10822_v58 = vcombine.high %v10774_v44, %v10774_v44 }
 0x27f   : > { %8648 = vmatprep.subr.bf16.mxu1 %v11356_v23  ;;  %v5712_v52 = vcombine.low %v8288_v51, %v10746_v46  ;;  %v5759_v54 = vcombine.low %v8289_v19, %v8290_v41  ;;  %v6077_v41 = vunpack.i.h.s16 %v10726_v21  ;;  %v8308_v19 = vpack.i.b16 %v10732_v35, %v6081_v2 }
 0x280   : > { %v5760_v20 = vcombine.low %v8291_v53, %v8292_v29  ;;  %v8296_v29 = vpack.i.b16 %v10822_v58, %v5686_v60 }
 0x281   : > { %v5740_v5 = vrot.slane %v5712_v52, %v8971_v15  ;;  %v5775_v33 = vrot.slane %v5759_v54, %v8971_v15  ;;  %v8306_v54 = vpack.i.b16 %v10706_v28, %v6077_v41  ;;  %v6141_v30 = vcombine.low %v8308_v19, %v6122_v17  ;;  %v8320_v17 = vld.sshfl [vmem:[#allocation2 + $0x14] sm:$0x1 pattern:$0x75316420] }
 0x282   : > { %v5782_v52 = vrot.slane %v5760_v20, %v8971_v15  ;;  %v5829_v55 = vrot.slane %v8296_v29, %v8971_v15  ;;  %v6421_v28 = vcombine.high %v8321_v3, %v8321_v3 }
 0x283   : > { %v5790_v53 = vcombine.low %v5768_v9, %v5775_v33  ;;  %v8325_v9 = vld.sshfl [vmem:[#allocation2 + $0x28] sm:$0x32 pattern:$0x75316420] }
 0x284   : > { %v6497_v29 = vcombine.high %v8325_v9, %v8325_v9  ;;  %v6504_v61 = vrot.slane %v8325_v9, %v8971_v15  ;;  %v6580_v9 = vrot.slane %v10674_v36, %v8971_v15 }
 0x285   : > { %8627 = vmatmul.mubr.msk.bf16.gmra.mrb[4].mxu1 %vm588_vm2, %v10593_v62  ;;  %v5733_v62 = vrot.slane %v5711_v8, %v8971_v15  ;;  %v2913_v8 = vld [vmem:[%s11323_s2 + $0x1c] sm:$0xf] }
 0x286   : > { %8630 = vmatprep.mubr.msk.bf16.mxu1 %vm8897_vm1, %v11356_v23  ;;  %v6287_v16 = vsel %vm598_vm0, %v2913_v8, 0  ;;  %v6157_v8 = vrot.slane %v6141_v30, %v8971_v15  ;;  %v6588_v36 = vcombine.high %v6580_v9, %v6580_v9  ;;  %v8884_v9 = vld [vmem:[%s8956_s24 + $0x30] sm:$0xff] }
 0x287   : > { %v5742_v51 = vcombine.low %v5733_v62, %v5740_v5  ;;  %v5791_v62 = vcombine.low %v5782_v52, %v5789_v57  ;;  %v6091_v5 = vunpack.i.h.s16 %v10746_v46  ;;  %v5822_v46 = vrot.slane %v5808_v24, %v8971_v15 }
 0x288   : > { %v6097_v52 = vunpack.i.h.s16 %v10782_v38  ;;  %v6435_v57 = vrot.slane %v6421_v28, %v8971_v15  ;;  %v8311_v24 = vpack.i.b16 %v10782_v38, %v6095_v31  ;;  %v2914_v38 = vld [vmem:[%s11323_s2 + $0x20] sm:$0xf] }
 0x289   : > { %v5756_v14 = vrot.slane %v5742_v51, %v8971_v15  ;;  %v5805_v63 = vrot.slane %v5791_v62, %v8971_v15  ;;  %v8309_v7 = vpack.i.b16 %v10765_v59, %v6091_v5  ;;  %v8307_v51 = vpack.i.b16 %v10752_v1, %v6079_v6 }
 0x28a   : > { %v5830_v20 = vcombine.low %v5815_v48, %v5822_v46  ;;  %v5844_v1 = vrot.slane %v5829_v55, %v8971_v15  ;;  %v8315_v5 = vcombine.high %v10715_v0, %v10736_v34  ;;  %v6239_v48 = vcombine.low %v10774_v44, %v10794_v12 }
 0x28b   : > { %v5757_v10 = vcombine.low %v5749_v11, %v5756_v14  ;;  %v6143_v21 = vcombine.low %v10710_v50, %v8309_v7  ;;  %v6140_v32 = vcombine.low %v8306_v54, %v8307_v51  ;;  %v6093_v14 = vunpack.i.h.s16 %v10765_v59 }
 0x28c   : > { %v5837_v35 = vrot.slane %v5830_v20, %v8971_v15  ;;  %v6129_v11 = vpack.i.b16 %v5668_v56, %v6097_v52  ;;  %v8322_v56 = vld.sshfl [vmem:[#allocation2 + $0x1c] sm:$0x1 pattern:$0x75316420]  ;;  %v6213_v46 = vrot.slane %v8315_v5, %v8971_v15  ;;  %v6814_v41 = vsel %vm598_vm0, %v2914_v38, 0 }
 0x28d   : > { %8631 = vmatmul.mubr.msk.bf16.gmra.mrb[8].mxu1 %vm588_vm2, %v5413_v43  ;;  %v5798_v43 = vrot.slane %v5790_v53, %v8971_v15  ;;  %v6171_v50 = vrot.slane %v6143_v21, %v8971_v15  ;;  %v6150_v45 = vrot.slane %v6140_v32, %v8971_v15  ;;  %v8310_v60 = vpack.i.b16 %v10790_v47, %v6093_v14  ;;  %v8326_v52 = vld.sshfl [vmem:[#allocation2 + $0x2c] sm:$0x1 pattern:$0x75316420] }
 0x28e   : > { %8636 = vmatprep.mubr.msk.bf16.mxu1 %vm8897_vm1, %v11356_v23  ;;  %v5845_v33 = vcombine.low %v5837_v35, %v5844_v1  ;;  %v6190_v62 = vcombine.low %v6129_v11, %v10736_v34  ;;  %v6437_v53 = vcombine.high %v6435_v57, %v6435_v57  ;;  %v6383_v7 = vcombine.high %v8319_v49, %v8319_v49 }
 0x28f   : > { %v5806_v37 = vcombine.low %v5798_v43, %v5805_v63  ;;  %v6172_v59 = vcombine.low %v6150_v45, %v6157_v8  ;;  %v6189_v2 = vcombine.low %v8310_v60, %v8311_v24  ;;  %v10884_v63 = vld.sshfl [vmem:[#allocation2 + $0x20] sm:$0x32 pattern:$0x75316420]  ;;  %v6451_v43 = vrot.slane %v8322_v56, %v8971_v15 }
 0x290   : > { %v6206_v34 = vrot.slane %v6190_v62, %v8971_v15  ;;  %v6616_v51 = vunpack.i.h.s16 %v6437_v53  ;;  %v6222_v20 = vcombine.low %v6213_v46, %v10603_v40  ;;  %v6511_v44 = vrot.slane %v6497_v29, %v8971_v15  ;;  %v8324_v60 = vld.sshfl [vmem:[#allocation2 + $0x24] sm:$0x1 pattern:$0x75316420] }
 0x291   : > { %v6180_v6 = vrot.slane %v6172_v59, %v8971_v15  ;;  %v6199_v55 = vrot.slane %v6189_v2, %v8971_v15  ;;  %v6253_v12 = vrot.slane %v6239_v48, %v8971_v15  ;;  %v6612_v54 = vunpack.i.h.s16 %v6435_v57 }
 0x292   : > { %v6413_v32 = vrot.slane %v8320_v17, %v8971_v15  ;;  %v6246_v40 = vrot.slane %v6238_v18, %v8971_v15  ;;  %v6397_v35 = vrot.slane %v6383_v7, %v8971_v15  ;;  %v8334_v1 = vpack.i.b16 %v6451_v43, %v6616_v51 }
 0x293   : > { %v6221_v21 = vcombine.low %v6199_v55, %v6206_v34  ;;  %v6236_v14 = vrot.slane %v6222_v20, %v8971_v15  ;;  %v6513_v28 = vcombine.high %v6511_v44, %v6511_v44  ;;  %v6527_v24 = vrot.slane %v8326_v52, %v8971_v15 }
 0x294   : > { %v8331_v11 = vpack.i.b16 %v6435_v57, %v6413_v32  ;;  %v6261_v25 = vcombine.low %v6246_v40, %v6253_v12  ;;  %v6399_v18 = vcombine.high %v6397_v35, %v6397_v35  ;;  %v6626_v57 = vunpack.i.h.s16 %v6511_v44 }
 0x295   : > { %8637 = vmatmul.mubr.msk.bf16.vlgmr.msra.gmra.mrb[0].mxu1 %vm588_vm2, %v5757_v10  ;;  %v6428_v10 = vrot.slane %v8321_v3, %v8971_v15  ;;  %v6390_v3 = vrot.slane %v8319_v49, %v8971_v15  ;;  %v6229_v45 = vrot.slane %v6221_v21, %v8971_v15  ;;  %v6489_v38 = vrot.slane %v8324_v60, %v8971_v15 }
 0x296   : > { %8649 = vmatpush3.bf16.msra.mxu1 %v6287_v16  ;;  %8640 = vmatprep.mubr.msk.bf16.mxu1 %vm8897_vm1, %v11356_v23  ;;  %v6173_v16 = vcombine.low %v6164_v27, %v6171_v50  ;;  %v6260_v27 = vrot.slane %v10822_v58, %v8971_v15  ;;  %v6668_v58 = vcombine.low %v6399_v18, %v8331_v11  ;;  %v6640_v51 = vunpack.i.h.s16 %v10701_v26 }
 0x297   : > { %8662 = vmatprep.subr.bf16.mxu1 %v11356_v23  ;;  %v6436_v0 = vcombine.high %v6428_v10, %v6428_v10  ;;  %v6398_v39 = vcombine.high %v6390_v3, %v6390_v3  ;;  %v6630_v10 = vunpack.i.h.s16 %v6513_v28  ;;  %v8335_v17 = vpack.i.b16 %v6511_v44, %v6489_v38  ;;  %v8886_v38 = vld [vmem:[%s8956_s24 + $0x50] sm:$0xff] }
 0x298   : > { %v6187_v47 = vrot.slane %v6173_v16, %v8971_v15  ;;  %v6237_v16 = vcombine.low %v6229_v45, %v6236_v14  ;;  %v6275_v5 = vrot.slane %v6260_v27, %v8971_v15  ;;  %v6684_v29 = vrot.slane %v6668_v58, %v8971_v15 }
 0x299   : > { %v6614_v30 = vunpack.i.h.s16 %v6436_v0  ;;  %v8332_v50 = vpack.i.b16 %v6436_v0, %v6612_v54  ;;  %v8338_v2 = vpack.i.b16 %v6527_v24, %v6630_v10  ;;  %v6589_v43 = vcombine.high %v10701_v26, %v10701_v26 }
 0x29a   : > { %v6188_v19 = vcombine.low %v6180_v6, %v6187_v47  ;;  %v6667_v6 = vcombine.low %v6397_v35, %v6398_v39  ;;  %v6466_v55 = vrot.slane %v10884_v63, %v8971_v15  ;;  %v8340_v21 = vpack.i.b16 %v6588_v36, %v6640_v51 }
 0x29b   : > { %v8333_v31 = vpack.i.b16 %v6437_v53, %v6614_v30  ;;  %v6268_v53 = vrot.slane %v6261_v25, %v8971_v15  ;;  %v8330_v30 = vld.sshfl [vmem:[#allocation2 + $0x3c] sm:$0x1 pattern:$0x75316420]  ;;  %v6644_v14 = vunpack.i.h.s16 %v6589_v43  ;;  %v6907_v39 = vcombine.high %v8882_v13, %v8882_v13 }
 0x29c   : > { %v6677_v46 = vrot.slane %v6667_v6, %v8971_v15  ;;  %v6603_v40 = vrot.slane %v8330_v30, %v8971_v15  ;;  %v6914_v18 = vrot.slane %v8882_v13, %v8971_v15  ;;  %v7012_v58 = vrot.slane %v8884_v9, %v8971_v15  ;;  %v8885_v6 = vld [vmem:[%s8956_s24 + $0x40] sm:$0xff] }
 0x29d   : > { %8641 = vmatmul.mubr.msk.bf16.gmra.mrb[4].mxu1 %vm588_vm2, %v5806_v37  ;;  %v6459_v37 = vcombine.high %v10884_v63, %v10884_v63  ;;  %v6669_v62 = vcombine.low %v8332_v50, %v8333_v31  ;;  %v6276_v34 = vcombine.low %v6268_v53, %v6275_v5  ;;  %v6747_v63 = vrot.slane %v6719_v42, %v8971_v15 }
 0x29e   : > { %8644 = vmatprep.mubr.msk.bf16.mxu1 %vm8897_vm1, %v11356_v23  ;;  %v6699_v20 = vcombine.low %v6677_v46, %v6684_v29  ;;  %v8342_v31 = vpack.i.b16 %v6603_v40, %v6644_v14  ;;  %v6921_v60 = vrot.slane %v6907_v39, %v8971_v15  ;;  %v6922_v24 = vcombine.high %v6914_v18, %v6914_v18 }
 0x29f   : > { %v6473_v8 = vrot.slane %v6459_v37, %v8971_v15  ;;  %v6691_v49 = vrot.slane %v6669_v62, %v8971_v15  ;;  %v7005_v62 = vcombine.high %v8884_v9, %v8884_v9  ;;  %v7020_v46 = vcombine.high %v7012_v58, %v7012_v58 }
 0x2a0   : > { %v6707_v26 = vrot.slane %v6699_v20, %v8971_v15  ;;  %v6787_v45 = vrot.slane %v8342_v31, %v8971_v15  ;;  %v6923_v5 = vcombine.high %v6921_v60, %v6921_v60  ;;  %v10971_v53 = vrot.slane %v6922_v24, %v8971_v15 }
 0x2a1   : > { %v6670_v59 = vcombine.low %v8334_v1, %v6473_v8  ;;  %v8343_v37 = vcombine.high %v6466_v55, %v6473_v8  ;;  %v7019_v29 = vrot.slane %v7005_v62, %v8971_v15 }
 0x2a2   : > { %v6954_v51 = vcombine.high %v10971_v53, %v10971_v53 }
 0x2a3   : > { %v6698_v47 = vrot.slane %v6670_v59, %v8971_v15  ;;  %v8883_v59 = vld [vmem:[%s8956_s24 + $0x20] sm:$0xff] }
 0x2a5   : > { %8645 = vmatmul.mubr.msk.bf16.gmra.mrb[8].mxu1 %vm588_vm2, %v5845_v33  ;;  %v6512_v33 = vcombine.high %v6504_v61, %v6504_v61  ;;  %v6726_v61 = vrot.slane %v8343_v37, %v8971_v15 }
 0x2a6   : > { %8650 = vmatprep.mubr.msk.bf16.mxu1 %vm8897_vm1, %v11356_v23 }
 0x2a7   : > { %v6628_v56 = vunpack.i.h.s16 %v6512_v33  ;;  %v8336_v48 = vpack.i.b16 %v6512_v33, %v6626_v57  ;;  %v6802_v33 = vrot.slane %v6787_v45, %v8971_v15  ;;  %v10965_v57 = vrot.slane %v6914_v18, %v8971_v15  ;;  %v11041_v45 = vld [vmem:[%s11324_s3 + $0x3] ss:$0 sm:$0xff] }
 0x2a9   : > { %v8337_v0 = vpack.i.b16 %v6513_v28, %v6628_v56  ;;  %v6717_v12 = vcombine.low %v8335_v17, %v8336_v48  ;;  %v10968_v56 = vrot.slane %v6921_v60, %v8971_v15  ;;  %v7061_v48 = vrot.slane %v8885_v6, %v8971_v15 }
 0x2ab   : > { %v6718_v7 = vcombine.low %v8337_v0, %v8338_v2  ;;  %v6733_v32 = vrot.slane %v6717_v12, %v8971_v15  ;;  %v7103_v2 = vcombine.high %v8886_v38, %v8886_v38  ;;  %v10978_v0 = vrot.slane %v6923_v5, %v8971_v15 }
 0x2ac   : > { %v6953_v17 = vcombine.high %v10968_v56, %v10968_v56  ;;  %v11019_v40 = vrot.slane %v7061_v48, %v8971_v15 }
 0x2ad   : > { %8651 = vmatmul.mubr.msk.bf16.vlgmr.msra.gmra.mrb[0].mxu1 %vm588_vm2, %v6188_v19  ;;  %v6642_v19 = vunpack.i.h.s16 %v6588_v36  ;;  %v6740_v54 = vrot.slane %v6718_v7, %v8971_v15  ;;  %v6748_v8 = vcombine.low %v6726_v61, %v6733_v32  ;;  %v10988_v7 = vrot.slane %v7012_v58, %v8971_v15 }
 0x2ae   : > { %8663 = vmatpush3.bf16.msra.mxu1 %v6814_v41  ;;  %8654 = vmatprep.mubr.msk.bf16.mxu1 %vm8897_vm1, %v11356_v23  ;;  %v6700_v41 = vcombine.low %v6691_v49, %v6698_v47  ;;  %v7054_v47 = vcombine.high %v8885_v6, %v8885_v6  ;;  %v7117_v20 = vrot.slane %v7103_v2, %v8971_v15 }
 0x2af   : > { %v8341_v3 = vpack.i.b16 %v6589_v43, %v6642_v19  ;;  %v6749_v1 = vcombine.low %v6740_v54, %v6747_v63  ;;  %v6756_v42 = vrot.slane %v6748_v8, %v8971_v15  ;;  %v7110_v43 = vrot.slane %v8886_v38, %v8971_v15 }
 0x2b0   : > { %v6714_v44 = vrot.slane %v6700_v41, %v8971_v15  ;;  %v6952_v41 = vcombine.high %v10965_v57, %v10965_v57  ;;  %v7068_v55 = vrot.slane %v7054_v47, %v8971_v15  ;;  %v7069_v54 = vcombine.high %v7061_v48, %v7061_v48 }
 0x2b1   : > { %v6766_v28 = vcombine.low %v8340_v21, %v8341_v3  ;;  %v6763_v50 = vrot.slane %v6749_v1, %v8971_v15  ;;  %v6955_v30 = vcombine.high %v10978_v0, %v10978_v0  ;;  %v11009_v3 = vrot.slane %v7020_v46, %v8971_v15  ;;  %v11024_v1 = vld [vmem:[%s11324_s3 + $0x2] ss:$0 sm:$0xff] }
 0x2b2   : > { %v6715_v35 = vcombine.low %v6707_v26, %v6714_v44  ;;  %v7021_v44 = vcombine.high %v7019_v29, %v7019_v29  ;;  %v8887_v26 = vld [vmem:[%s8956_s24 + $0x60] sm:$0xff]  ;;  %v7050_v63 = vcombine.high %v10988_v7, %v10988_v7  ;;  %v11016_v61 = vrot.slane %v7019_v29, %v8971_v15 }
 0x2b3   : > { %v6780_v22 = vrot.slane %v6766_v28, %v8971_v15  ;;  %v6764_v52 = vcombine.low %v6756_v42, %v6763_v50  ;;  %v7159_v32 = vrot.slane %v8887_v26, %v8971_v15  ;;  %v7070_v28 = vcombine.high %v7068_v55, %v7068_v55 }
 0x2b4   : > { %v7119_v8 = vcombine.high %v7117_v20, %v7117_v20  ;;  %v7152_v50 = vcombine.high %v8887_v26, %v8887_v26  ;;  %v11036_v42 = vrot.slane %v7069_v54, %v8971_v15  ;;  %v7051_v18 = vcombine.high %v11016_v61, %v11016_v61 }
 0x2b5   : > { %8655 = vmatmul.mubr.msk.bf16.gmra.mrb[4].mxu1 %vm588_vm2, %v6237_v16  ;;  %v6788_v27 = vcombine.low %v6773_v4, %v6780_v22  ;;  %v6956_v16 = vcombine.high %v8883_v59, %v8883_v59  ;;  %v11033_v22 = vrot.slane %v7021_v44, %v8971_v15  ;;  %v11060_v24 = vrot.slane %v7070_v28, %v8971_v15 }
 0x2b6   : > { %8658 = vmatprep.mubr.msk.bf16.mxu1 %vm8897_vm1, %v11356_v23  ;;  %v11069_v9 = vrot.slane %v7152_v50, %v8971_v15  ;;  %v7101_v47 = vcombine.high %v11036_v42, %v11036_v42 }
 0x2b7   : > { %v6795_v11 = vrot.slane %v6788_v27, %v8971_v15  ;;  %v6970_v10 = vrot.slane %v6956_v16, %v8971_v15  ;;  %v7052_v27 = vcombine.high %v11009_v3, %v11009_v3  ;;  %v7053_v6 = vcombine.high %v11033_v22, %v11033_v22 }
 0x2b8   : > { %v11099_v54 = vrot.slane %v11069_v9, %v8971_v15 }
 0x2b9   : > { %v6803_v25 = vcombine.low %v6795_v11, %v6802_v33  ;;  %v6972_v49 = vcombine.high %v6970_v10, %v6970_v10  ;;  %v10994_v19 = vrot.slane %v6970_v10, %v8971_v15  ;;  %v11046_v11 = vrot.slane %v7068_v55, %v8971_v15 }
 0x2ba   : > { %v11049_v33 = vrot.slane %v7110_v43, %v8971_v15  ;;  %v11066_v10 = vrot.slane %v7119_v8, %v8971_v15 }
 0x2bb   : > { %v11002_v37 = vrot.slane %v6972_v49, %v8971_v15  ;;  %v7002_v14 = vcombine.high %v10994_v19, %v10994_v19 }
 0x2bd   : > { %8659 = vmatmul.mubr.msk.bf16.gmra.mrb[8].mxu1 %vm588_vm2, %v6276_v34  ;;  %v7004_v4 = vcombine.high %v11002_v37, %v11002_v37 }
 0x2be   : > { %8664 = vmatprep.mubr.msk.bf16.mxu1 %vm8897_vm1, %v11356_v23 }
 0x2c5   : > { %8665 = vmatmul.mubr.msk.bf16.vlgmr.msra.gmra.mrb[0].mxu1 %vm588_vm2, %v6715_v35  ;;  %v7118_v35 = vcombine.high %v7110_v43, %v7110_v43 }
 0x2c6   : > { %8668 = vmatprep.mubr.msk.bf16.mxu1 %vm8897_vm1, %v11356_v23 }
 0x2c7   : > { %v11057_v16 = vrot.slane %v7118_v35, %v8971_v15 }
 0x2cd   : > { %8669 = vmatmul.mubr.msk.bf16.gmra.mrb[4].mxu1 %vm588_vm2, %v6764_v52 }
 0x2ce   : > { %8672 = vmatprep.mubr.msk.bf16.mxu1 %vm8897_vm1, %v11356_v23  ;;  %v6963_v23 = vrot.slane %v8883_v59, %v8971_v15  ;;  %v7099_v59 = vcombine.high %v11019_v40, %v11019_v40 }
 0x2d0   : > { %v6971_v36 = vcombine.high %v6963_v23, %v6963_v23  ;;  %v10981_v34 = vrot.slane %v6963_v23, %v8971_v15  ;;  %v11063_v23 = vrot.slane %v7117_v20, %v8971_v15 }
 0x2d2   : > { %v10999_v12 = vrot.slane %v6971_v36, %v8971_v15  ;;  %v7001_v21 = vcombine.high %v10981_v34, %v10981_v34  ;;  %v11082_v36 = vrot.slane %v7159_v32, %v8971_v15 }
 0x2d4   : > { %v7003_v31 = vcombine.high %v10999_v12, %v10999_v12 }
 0x2d5   : > { %8673 = vmatmul.mubr.msk.bf16.gmra.mrb[8].mxu1 %vm588_vm2, %v6803_v25  ;;  %v7167_v25 = vcombine.high %v7159_v32, %v7159_v32 }
 0x2d7   : > { %v11085_v49 = vrot.slane %v7167_v25, %v8971_v15 }
 0x398   : > { %v6850_v52 = vpop.f32.mrb[0].mxu1 }
 0x399   : > { %v6884_v13 = vmul.f32 %v11024_v1, %v6850_v52  ;;  %v8666_v39 = vpop.f32.mrb[1].mxu1 }
 0x39a   : > { %v6853_v60 = vpop.f32.mrb[2].mxu1 }
 0x39b   : > { %v6895_v62 = vadd.f32 %v11041_v45, %v6884_v13  ;;  %v6885_v5 = vmul.f32 %v11024_v1, %v6853_v60  ;;  %v8667_v58 = vpop.f32.mrb[3].mxu1  ;;  %v7168_v13 = vcombine.high %v11069_v9, %v11069_v9 }
 0x39d   : > { %v7249_v29 = vcombine.high %v6895_v62, %v6895_v62  ;;  %v7256_v48 = vrot.slane %v6895_v62, %v8971_v15  ;;  %v6896_v46 = vadd.f32 %v11041_v45, %v6885_v5 }
 0x39f   : > { %v7263_v26 = vrot.slane %v7249_v29, %v8971_v15  ;;  %v7264_v32 = vcombine.high %v7256_v48, %v7256_v48  ;;  %v7272_v35 = vrot.slane %v7256_v48, %v8971_v15  ;;  %v7298_v28 = vcombine.high %v6896_v46, %v6896_v46 }
 0x3a0   : > { %v7305_v8 = vrot.slane %v6896_v46, %v8971_v15  ;;  %v11104_v50 = vpop.f32.mrb[4].mxu1 }
 0x3a1   : > { %v7265_v39 = vcombine.high %v7263_v26, %v7263_v26  ;;  %v7279_v60 = vrot.slane %v7263_v26, %v8971_v15  ;;  %v7286_v62 = vrot.slane %v7264_v32, %v8971_v15  ;;  %v7294_v5 = vcombine.high %v7272_v35, %v7272_v35  ;;  %v8670_v58 = vpop.f32.mrb[5].mxu1 }
 0x3a2   : > { %v7558_v29 = vadd.f32 %v7272_v35, %v10971_v53  ;;  %v7312_v48 = vrot.slane %v7298_v28, %v8971_v15  ;;  %v7313_v46 = vcombine.high %v7305_v8, %v7305_v8  ;;  %v7321_v52 = vrot.slane %v7305_v8, %v8971_v15  ;;  %v11117_v44 = vpop.f32.mrb[6].mxu1 }
 0x3a3   : > { %v7293_v25 = vrot.slane %v7265_v39, %v8971_v15  ;;  %v7295_v20 = vcombine.high %v7279_v60, %v7279_v60  ;;  %v7296_v43 = vcombine.high %v7286_v62, %v7286_v62  ;;  %v7559_v26 = vadd.f32 %v7286_v62, %v6952_v41  ;;  %v8671_v32 = vpop.f32.mrb[7].mxu1 }
 0x3a4   : > { %v7560_v35 = vadd.f32 %v7294_v5, %v6954_v51  ;;  %v7562_v28 = vadd.f32 %v7279_v60, %v10978_v0  ;;  %v7600_v58 = vmax.f32 %v7558_v29, 0.0  ;;  %v7314_v2 = vcombine.high %v7312_v48, %v7312_v48 }
 0x3a5   : > { %v7297_v8 = vcombine.high %v7293_v25, %v7293_v25  ;;  %v7561_v55 = vadd.f32 %v7296_v43, %v10968_v56  ;;  %v7563_v39 = vadd.f32 %v7293_v25, %v6953_v17  ;;  %v7564_v57 = vadd.f32 %v7295_v20, %v6955_v30 }
 0x3a6   : > { %v7601_v41 = vmax.f32 %v7559_v26, 0.0  ;;  %v7602_v62 = vmax.f32 %v7560_v35, 0.0  ;;  %v7604_v32 = vmax.f32 %v7562_v28, 0.0  ;;  %v7328_v53 = vrot.slane %v7312_v48, %v8971_v15 }
 0x3a7   : > { %v7603_v51 = vmax.f32 %v7561_v55, 0.0  ;;  %v7605_v60 = vmax.f32 %v7563_v39, 0.0  ;;  %v7606_v5 = vmax.f32 %v7564_v57, 0.0  ;;  %v7335_v29 = vrot.slane %v7313_v46, %v8971_v15 }
 0x3a8   : > { %v7684_v38 = vcombine.low %v7600_v58, %v7601_v41  ;;  %v7342_v43 = vrot.slane %v7314_v2, %v8971_v15  ;;  %v7343_v56 = vcombine.high %v7321_v52, %v7321_v52  ;;  %v7344_v17 = vcombine.high %v7328_v53, %v7328_v53  ;;  %v6866_v25 = vpop.f32.mrb[8].mxu1 }
 0x3a9   : > { %v7685_v0 = vcombine.low %v7602_v62, %v7603_v51  ;;  %v7686_v30 = vcombine.low %v7604_v32, %v7605_v60  ;;  %v7714_v20 = vrot.slane %v7606_v5, %v8971_v15  ;;  %v7345_v26 = vcombine.high %v7335_v29, %v7335_v29  ;;  %v8674_v35 = vpop.f32.mrb[9].mxu1 }
 0x3aa   : > { %v7693_v55 = vrot.slane %v7684_v38, %v8971_v15  ;;  %v7346_v48 = vcombine.high %v7342_v43, %v7342_v43  ;;  %v7565_v28 = vadd.f32 %v7297_v8, %v10999_v12  ;;  %v7566_v46 = vadd.f32 %v7321_v52, %v7001_v21  ;;  %v6869_v2 = vpop.f32.mrb[10].mxu1 }
 0x3ab   : > { %v7700_v58 = vrot.slane %v7685_v0, %v8971_v15  ;;  %v7707_v39 = vrot.slane %v7686_v30, %v8971_v15  ;;  %v7567_v57 = vadd.f32 %v7335_v29, %v7003_v31  ;;  %v7568_v41 = vadd.f32 %v7343_v56, %v10994_v19  ;;  %v8675_v62 = vpop.f32.mrb[11].mxu1 }
 0x3ac   : > { %v7569_v38 = vadd.f32 %v7345_v26, %v11002_v37  ;;  %v7570_v34 = vadd.f32 %v7328_v53, %v7002_v14  ;;  %v7571_v21 = vadd.f32 %v7342_v43, %v7004_v4  ;;  %v7572_v52 = vadd.f32 %v7344_v17, %v11009_v3 }
 0x3ad   : > { %v7715_v8 = vcombine.low %v7693_v55, %v7700_v58  ;;  %v7716_v32 = vcombine.low %v7707_v39, %v7714_v20  ;;  %v7573_v12 = vadd.f32 %v7346_v48, %v7050_v63  ;;  %v7607_v31 = vmax.f32 %v7565_v28, 0.0 }
 0x3ae   : > { %v7608_v51 = vmax.f32 %v7566_v46, 0.0  ;;  %v7609_v60 = vmax.f32 %v7567_v57, 0.0  ;;  %v7610_v5 = vmax.f32 %v7568_v41, 0.0  ;;  %v7611_v29 = vmax.f32 %v7569_v38, 0.0 }
 0x3af   : > { %v7723_v19 = vrot.slane %v7715_v8, %v8971_v15  ;;  %v7730_v14 = vrot.slane %v7716_v32, %v8971_v15  ;;  %v7612_v53 = vmax.f32 %v7570_v34, 0.0  ;;  %v7613_v37 = vmax.f32 %v7571_v21, 0.0 }
 0x3b0   : > { %v7614_v4 = vmax.f32 %v7572_v52, 0.0  ;;  %v7615_v7 = vmax.f32 %v7573_v12, 0.0  ;;  %v7732_v63 = vcombine.low %v7607_v31, %v7608_v51  ;;  %v7733_v43 = vcombine.low %v7609_v60, %v7610_v5 }
 0x3b1   : > { %v7731_v56 = vcombine.low %v7723_v19, %v7730_v14  ;;  %v7734_v17 = vcombine.low %v7611_v29, %v7612_v53  ;;  %v7762_v0 = vrot.slane %v7613_v37, %v8971_v15  ;;  %v6886_v30 = vmul.f32 %v11024_v1, %v11104_v50 }
 0x3b2   : > { %v7741_v20 = vrot.slane %v7732_v63, %v8971_v15  ;;  %v7748_v26 = vrot.slane %v7733_v43, %v8971_v15  ;;  %v11173_v35 = vcombine.low %v7614_v4, %v7615_v7  ;;  %v6887_v55 = vmul.f32 %v11024_v1, %v11117_v44 }
 0x3b3   : > { %7979 = vst.msk [vmem:[%s11166_s19] sm:$0x7f] %vm7978_vm9, %v7731_v56  ;;  %v7755_v48 = vrot.slane %v7734_v17, %v8971_v15  ;;  %v6897_v28 = vadd.f32 %v11041_v45, %v6886_v30  ;;  %v6888_v46 = vmul.f32 %v11024_v1, %v6866_v25  ;;  %v6889_v58 = vmul.f32 %v11024_v1, %v6869_v2 }
 0x3b4   : > { %v7763_v50 = vcombine.low %v7741_v20, %v7748_v26  ;;  %v7789_v39 = vrot.slane %v11173_v35, %v8971_v15  ;;  %v6898_v57 = vadd.f32 %v11041_v45, %v6887_v55  ;;  %v11190_v44 = vrot.slane %v7168_v13, %v8971_v15 }
 0x3b5   : > { %v7764_v41 = vcombine.low %v7755_v48, %v7762_v0  ;;  %v7347_v62 = vcombine.high %v6897_v28, %v6897_v28  ;;  %v7354_v38 = vrot.slane %v6897_v28, %v8971_v15  ;;  %v11194_v25 = vadd.f32 %v11041_v45, %v6888_v46 }
 0x3b6   : > { %v7771_v1 = vrot.slane %v7763_v50, %v8971_v15  ;;  %v7396_v2 = vcombine.high %v6898_v57, %v6898_v57  ;;  %v7403_v34 = vrot.slane %v6898_v57, %v8971_v15  ;;  %v11199_v21 = vadd.f32 %v11041_v45, %v6889_v58 }
 0x3b7   : > { %v7778_v52 = vrot.slane %v7764_v41, %v8971_v15  ;;  %v7361_v9 = vrot.slane %v7347_v62, %v8971_v15  ;;  %v7362_v13 = vcombine.high %v7354_v38, %v7354_v38  ;;  %v7370_v8 = vrot.slane %v7354_v38, %v8971_v15 }
 0x3b8   : > { %v7410_v32 = vrot.slane %v7396_v2, %v8971_v15  ;;  %v7411_v12 = vcombine.high %v7403_v34, %v7403_v34  ;;  %v7419_v31 = vrot.slane %v7403_v34, %v8971_v15  ;;  %v7445_v51 = vcombine.high %v11194_v25, %v11194_v25 }
 0x3b9   : > { %v7779_v60 = vcombine.low %v7771_v1, %v7778_v52  ;;  %v7363_v5 = vcombine.high %v7361_v9, %v7361_v9  ;;  %v7377_v45 = vrot.slane %v7361_v9, %v8971_v15  ;;  %v7384_v29 = vrot.slane %v7362_v13, %v8971_v15 }
 0x3ba   : > { %v7392_v19 = vcombine.high %v7370_v8, %v7370_v8  ;;  %v7574_v14 = vadd.f32 %v7370_v8, %v7052_v27  ;;  %v7412_v53 = vcombine.high %v7410_v32, %v7410_v32  ;;  %v7426_v37 = vrot.slane %v7410_v32, %v8971_v15 }
 0x3bb   : > { %7980 = vst.msk [vmem:[%s11166_s19 + $0x8] sm:$0x7f] %vm7978_vm9, %v7779_v60  ;;  %v7391_v4 = vrot.slane %v7363_v5, %v8971_v15  ;;  %v7393_v7 = vcombine.high %v7377_v45, %v7377_v45  ;;  %v7394_v63 = vcombine.high %v7384_v29, %v7384_v29  ;;  %v7575_v43 = vadd.f32 %v7384_v29, %v11016_v61 }
 0x3bc   : > { %v7576_v56 = vadd.f32 %v7392_v19, %v11033_v22  ;;  %v7578_v17 = vadd.f32 %v7377_v45, %v7053_v6  ;;  %v7616_v0 = vmax.f32 %v7574_v14, 0.0  ;;  %v7433_v3 = vrot.slane %v7411_v12, %v8971_v15 }
 0x3bd   : > { %v7395_v27 = vcombine.high %v7391_v4, %v7391_v4  ;;  %v7577_v30 = vadd.f32 %v7394_v63, %v7051_v18  ;;  %v7579_v20 = vadd.f32 %v7391_v4, %v11036_v42  ;;  %v7580_v26 = vadd.f32 %v7393_v7, %v7099_v59 }
 0x3be   : > { %v7617_v55 = vmax.f32 %v7575_v43, 0.0  ;;  %v7618_v48 = vmax.f32 %v7576_v56, 0.0  ;;  %v7620_v28 = vmax.f32 %v7578_v17, 0.0  ;;  %v7440_v22 = vrot.slane %v7412_v53, %v8971_v15 }
 0x3bf   : > { %v7619_v6 = vmax.f32 %v7577_v30, 0.0  ;;  %v7621_v46 = vmax.f32 %v7579_v20, 0.0  ;;  %v7622_v58 = vmax.f32 %v7580_v26, 0.0  ;;  %v7441_v50 = vcombine.high %v7419_v31, %v7419_v31 }
 0x3c0   : > { %v7781_v57 = vcombine.low %v7616_v0, %v7617_v55  ;;  %v7810_v41 = vrot.slane %v7620_v28, %v8971_v15  ;;  %v7442_v61 = vcombine.high %v7426_v37, %v7426_v37  ;;  %v7443_v18 = vcombine.high %v7433_v3, %v7433_v3 }
 0x3c1   : > { %v7782_v62 = vcombine.low %v7618_v48, %v7619_v6  ;;  %v7828_v38 = vcombine.low %v7621_v46, %v7622_v58  ;;  %v7444_v1 = vcombine.high %v7440_v22, %v7440_v22  ;;  %v7581_v40 = vadd.f32 %v7395_v27, %v7101_v47 }
 0x3c2   : > { %v7796_v59 = vrot.slane %v7781_v57, %v8971_v15  ;;  %v7582_v2 = vadd.f32 %v7419_v31, %v11046_v11  ;;  %v7583_v34 = vadd.f32 %v7433_v3, %v11060_v24  ;;  %v11409_v52 = vcombine.high %v11046_v11, %v11046_v11 }
 0x3c3   : > { %v7803_v13 = vrot.slane %v7782_v62, %v8971_v15  ;;  %v11410_v8 = vcombine.high %v11060_v24, %v11060_v24  ;;  %v7586_v12 = vadd.f32 %v7426_v37, %v11057_v16  ;;  %v11411_v42 = vcombine.high %v11049_v33, %v11049_v33 }
 0x3c4   : > { %v7584_v9 = vadd.f32 %v7441_v50, %v11409_v52  ;;  %v7811_v31 = vcombine.low %v7789_v39, %v7796_v59  ;;  %v11412_v11 = vcombine.high %v11057_v16, %v11057_v16  ;;  %v7589_v5 = vadd.f32 %v7444_v1, %v11063_v23 }
 0x3c5   : > { %v7585_v32 = vadd.f32 %v7443_v18, %v11410_v8  ;;  %v7587_v47 = vadd.f32 %v7440_v22, %v11411_v42  ;;  %v7623_v45 = vmax.f32 %v7581_v40, 0.0  ;;  %v7812_v29 = vcombine.low %v7803_v13, %v7810_v41 }
 0x3c6   : > { %v7588_v60 = vadd.f32 %v7442_v61, %v11412_v11  ;;  %v7624_v24 = vmax.f32 %v7582_v2, 0.0  ;;  %v7625_v19 = vmax.f32 %v7583_v34, 0.0  ;;  %v7626_v14 = vmax.f32 %v7584_v9, 0.0 }
 0x3c7   : > { %v7819_v53 = vrot.slane %v7811_v31, %v8971_v15  ;;  %v7627_v37 = vmax.f32 %v7585_v32, 0.0  ;;  %v7628_v33 = vmax.f32 %v7586_v12, 0.0  ;;  %v7629_v4 = vmax.f32 %v7587_v47, 0.0 }
 0x3c8   : > { %v7826_v7 = vrot.slane %v7812_v29, %v8971_v15  ;;  %v7630_v35 = vmax.f32 %v7588_v60, 0.0  ;;  %v7631_v39 = vmax.f32 %v7589_v5, 0.0  ;;  %v7829_v63 = vcombine.low %v7623_v45, %v7624_v24 }
 0x3c9   : > { %v7830_v16 = vcombine.low %v7625_v19, %v7626_v14  ;;  %v7837_v43 = vrot.slane %v7828_v38, %v8971_v15  ;;  %v7858_v56 = vrot.slane %v7627_v37, %v8971_v15  ;;  %v7876_v17 = vcombine.low %v7628_v33, %v7629_v4 }
 0x3ca   : > { %v7827_v0 = vcombine.low %v7819_v53, %v7826_v7  ;;  %v7844_v3 = vrot.slane %v7829_v63, %v8971_v15  ;;  %v7877_v27 = vcombine.low %v7630_v35, %v7631_v39  ;;  %v7452_v30 = vrot.slane %v11194_v25, %v8971_v15 }
 0x3cb   : > { %v7851_v20 = vrot.slane %v7830_v16, %v8971_v15  ;;  %v7459_v26 = vrot.slane %v7445_v51, %v8971_v15  ;;  %v7198_v55 = vcombine.high %v11099_v54, %v11099_v54  ;;  %v7200_v48 = vcombine.high %v11190_v44, %v11190_v44 }
 0x3cc   : > { %7981 = vst.msk [vmem:[%s11166_s19 + $0x10] sm:$0x7f] %vm7978_vm9, %v7827_v0  ;;  %v7859_v28 = vcombine.low %v7837_v43, %v7844_v3  ;;  %v7460_v22 = vcombine.high %v7452_v30, %v7452_v30  ;;  %v7468_v6 = vrot.slane %v7452_v30, %v8971_v15  ;;  %v7500_v46 = vrot.slane %v11199_v21, %v8971_v15 }
 0x3cd   : > { %v7860_v58 = vcombine.low %v7851_v20, %v7858_v56  ;;  %v7885_v50 = vrot.slane %v7876_v17, %v8971_v15  ;;  %v7461_v25 = vcombine.high %v7459_v26, %v7459_v26  ;;  %v7475_v51 = vrot.slane %v7459_v26, %v8971_v15 }
 0x3ce   : > { %v7867_v57 = vrot.slane %v7859_v28, %v8971_v15  ;;  %v7892_v41 = vrot.slane %v7877_v27, %v8971_v15  ;;  %v7482_v61 = vrot.slane %v7460_v22, %v8971_v15  ;;  %v7490_v18 = vcombine.high %v7468_v6, %v7468_v6 }
 0x3cf   : > { %v7874_v62 = vrot.slane %v7860_v58, %v8971_v15  ;;  %v7489_v38 = vrot.slane %v7461_v25, %v8971_v15  ;;  %v7491_v1 = vcombine.high %v7475_v51, %v7475_v51  ;;  %v7590_v21 = vadd.f32 %v7468_v6, %v11066_v10 }
 0x3d0   : > { %v7492_v40 = vcombine.high %v7482_v61, %v7482_v61  ;;  %v11413_v59 = vcombine.high %v11063_v23, %v11063_v23  ;;  %v11414_v34 = vcombine.high %v11066_v10, %v11066_v10  ;;  %v7501_v9 = vcombine.high %v7500_v46, %v7500_v46 }
 0x3d1   : > { %v7875_v13 = vcombine.low %v7867_v57, %v7874_v62  ;;  %v7493_v8 = vcombine.high %v7489_v38, %v7489_v38  ;;  %v11415_v32 = vcombine.high %v11082_v36, %v11082_v36  ;;  %v11416_v42 = vcombine.high %v11085_v49, %v11085_v49 }
 0x3d2   : > { %v7591_v2 = vadd.f32 %v7482_v61, %v11413_v59  ;;  %v7592_v52 = vadd.f32 %v7490_v18, %v11414_v34  ;;  %v7593_v31 = vadd.f32 %v7492_v40, %v11085_v49  ;;  %v7596_v23 = vadd.f32 %v7491_v1, %v11099_v54 }
 0x3d3   : > { %v7594_v12 = vadd.f32 %v7475_v51, %v11415_v32  ;;  %v7595_v47 = vadd.f32 %v7489_v38, %v11416_v42  ;;  %v7632_v11 = vmax.f32 %v7590_v21, 0.0  ;;  %7982 = vst.msk [vmem:[%s11166_s19 + $0x18] sm:$0x7f] %vm7978_vm9, %v7875_v13  ;;  %v7508_v29 = vrot.slane %v7500_v46, %v8971_v15 }
 0x3d4   : > { %v7633_v60 = vmax.f32 %v7591_v2, 0.0  ;;  %v7634_v10 = vmax.f32 %v7592_v52, 0.0  ;;  %v7635_v24 = vmax.f32 %v7593_v31, 0.0  ;;  %v7638_v36 = vmax.f32 %v7596_v23, 0.0 }
 0x3d5   : > { %v7636_v5 = vmax.f32 %v7594_v12, 0.0  ;;  %v7637_v45 = vmax.f32 %v7595_v47, 0.0  ;;  %v7515_v14 = vrot.slane %v7501_v9, %v8971_v15  ;;  %v7907_v53 = vcombine.low %v7885_v50, %v7892_v41 }
 0x3d6   : > { %v7878_v19 = vcombine.low %v7632_v11, %v7633_v60  ;;  %v7906_v37 = vrot.slane %v7634_v10, %v8971_v15  ;;  %v7597_v49 = vadd.f32 %v7493_v8, %v11190_v44  ;;  %v7598_v54 = vadd.f32 %v7508_v29, %v7198_v55 }
 0x3d7   : > { %v7924_v4 = vcombine.low %v7635_v24, %v7636_v5  ;;  %v7925_v7 = vcombine.low %v7637_v45, %v7638_v36  ;;  %v7599_v35 = vadd.f32 %v7515_v14, %v7200_v48  ;;  %v7915_v3 = vrot.slane %v7907_v53, %v8971_v15 }
 0x3d8   : > { %v7899_v33 = vrot.slane %v7878_v19, %v8971_v15  ;;  %v7639_v39 = vmax.f32 %v7597_v49, 0.0  ;;  %v7640_v63 = vmax.f32 %v7598_v54, 0.0 }
 0x3d9   : > { %v7933_v43 = vrot.slane %v7924_v4, %v8971_v15  ;;  %v7940_v56 = vrot.slane %v7925_v7, %v8971_v15  ;;  %v7641_v17 = vmax.f32 %v7599_v35, 0.0 }
 0x3da   : > { %v7908_v16 = vcombine.low %v7899_v33, %v7906_v37  ;;  %v7926_v0 = vcombine.low %v7639_v39, %v7640_v63 }
 0x3db   : > { %v7955_v27 = vcombine.low %v7933_v43, %v7940_v56  ;;  %v7954_v20 = vrot.slane %v7641_v17, %v8971_v15 }
 0x3dc   : > { %v7922_v44 = vrot.slane %v7908_v16, %v8971_v15  ;;  %v7947_v30 = vrot.slane %v7926_v0, %v8971_v15 }
 0x3dd   : > { %v7963_v48 = vrot.slane %v7955_v27, %v8971_v15 }
 0x3de   : > { %v7923_v26 = vcombine.low %v7915_v3, %v7922_v44  ;;  %v7956_v55 = vcombine.low %v7947_v30, %v7954_v20 }
 0x3e0   : > { %7983 = vst.msk [vmem:[%s11166_s19 + $0x20] sm:$0x7f] %vm7978_vm9, %v7923_v26  ;;  %v7970_v28 = vrot.slane %v7956_v55, %v8971_v15 }
 0x3e2   : > { %v7971_v22 = vcombine.low %v7963_v48, %v7970_v28 }
 0x3e4   : > { %7984 = vst.msk [vmem:[%s11166_s19 + $0x28] sm:$0x7f] %vm7978_vm9, %v7971_v22 }
 0x3e5 PF: > { %s14_s15 = sadd.s32 1, %s8894_s15  }
 0x3e6   : > { %p11_p4 = scmp.ge.s32.totalorder %s14_s15, 4  }
 0x3e8   :  { %13 = sbr.rel (!%p11_p4) target bundleno = 1 (0x1), region = 68 }

</bundles_post_ra>
